<compile_context>
chip_gen: v5e
topology: v5e:2x2
jax: 0.10.0
libtpu: 0.0.40
codegen_flags: <defaults>
</compile_context>

<pallas_src>
import functools

import jax
import jax.numpy as jnp
from jax import lax
from jax.experimental import pallas as pl
from jax.experimental.pallas import tpu as pltpu


def _tokenizer_kernel(x_ref, w_ref, b_ref, o_ref, *, TB, TI, Ho, Wo, D, C):
    """Fused Conv2d(3x3, pad 1) + MaxPool2d(3x3, stride 2, pad 1) for one tile.

    x_ref: (TB, 2, 2, Ho+2, Wo+1, C) bf16 parity planes of the zero-padded
           NHWC input; plane (r, c) at row m+1, col n holds padded[2m+r, 2n+c]
           (row 0 of every plane is a dummy halo row).
    w_ref: (9, C, D) bf16 conv weight, k = ki*3 + kj.
    b_ref: (1, D)    f32 conv bias.
    o_ref: (TB, TI*Wo, D) tokens for pooled rows [ii*TI, (ii+1)*TI).
    """
    ii = pl.program_id(1)
    i0 = ii * TI
    neg_inf = jnp.float32(-jnp.inf)
    # Keep the MXU operands bf16 when the (TB, nrows, Wo, C) -> (M, C)
    # collapse is aligned to packed bf16 sublane tiles; otherwise widen the
    # slab to f32 (8-row tiles) so the reshape is a pure metadata change.
    lhs_dtype = jnp.bfloat16 if Wo % 16 == 0 else jnp.float32

    def conv_quarter(q, p, row0, nrows):
        """Conv (no bias) at conv positions (2i+q, 2j+p); i spans `nrows`
        pooled rows whose ai=0 stored plane row is `row0`; j in [0, Wo)."""
        M = TB * nrows * Wo
        acc = jnp.zeros((M, D), jnp.float32)
        for ki in range(3):
            a = q + ki
            ar, ai = a % 2, a // 2
            for kj in range(3):
                bcol = p + kj
                br, aj = bcol % 2, bcol // 2
                slab = x_ref[:, ar, br, pl.ds(row0 + ai, nrows),
                             pl.ds(aj, Wo), :].astype(lhs_dtype)
                acc = acc + jnp.dot(
                    slab.reshape(M, C),
                    w_ref[ki * 3 + kj].astype(lhs_dtype),
                    preferred_element_type=jnp.float32)
        return acc

    # Parity quarters of the conv output.  Even conv rows (2i) for the TI
    # pooled rows of this tile; odd conv rows (2i+1) for pooled indices
    # [i0-1, i0+TI-1] (one extra row above: the pool window's top neighbour,
    # real data for every tile except the first, where it is masked).
    q00 = conv_quarter(0, 0, i0 + 1, TI)        # conv[2i,   2j  ]
    q01 = conv_quarter(0, 1, i0 + 1, TI)        # conv[2i,   2j+1]
    q10 = conv_quarter(1, 0, i0, TI + 1)        # conv[2i+1, 2j  ]
    q11 = conv_quarter(1, 1, i0, TI + 1)        # conv[2i+1, 2j+1]

    HWt = TI * Wo
    Me = TB * HWt
    Mo = TB * (TI + 1) * Wo
    j_e = lax.broadcasted_iota(jnp.int32, (Me, 1), 0)
    j_o = lax.broadcasted_iota(jnp.int32, (Mo, 1), 0)

    def left(x, is_j0):
        # value at conv column (2j-1) of the same conv row; -inf when j == 0.
        # roll wrap-around only lands on j==0 rows, which are masked anyway,
        # so stacked rows / batch elements never contaminate each other.
        return jnp.where(is_j0, neg_inf, pltpu.roll(x, shift=1, axis=0))

    # ---- column-direction 3-max (already stride-2 in the column via parity)
    ce = jnp.maximum(jnp.maximum(q00, q01), left(q01, (j_e % Wo) == 0))
    co = jnp.maximum(jnp.maximum(q10, q11), left(q11, (j_o % Wo) == 0))

    # ---- row-direction 3-max over conv rows {2i-1, 2i, 2i+1} ---------------
    co3 = co.reshape(TB, (TI + 1) * Wo, D)
    co_cur = co3[:, Wo:, :].reshape(Me, D)      # odd rows i0   .. i0+TI-1
    co_up = co3[:, :HWt, :].reshape(Me, D)      # odd rows i0-1 .. i0+TI-2
    no_up = jnp.logical_and((j_e % HWt) < Wo, ii == 0)   # conv row -1: absent
    co_up = jnp.where(no_up, neg_inf, co_up)

    # bias after the pool: max(conv + b) == max(conv) + b (b is per-channel)
    out = jnp.maximum(jnp.maximum(ce, co_cur), co_up) + b_ref[...]

    # ---- single dense vectorized store -------------------------------------
    o_ref[...] = out.reshape(TB, HWt, D).astype(o_ref.dtype)


def _padded_vmem_bytes(shape, itemsize):
    """VMEM footprint: last two dims tiled to (32 // itemsize, 128)."""
    shape = tuple(int(d) for d in shape)
    if len(shape) < 2:
        shape = (1,) * (2 - len(shape)) + shape
    *outer, s, l = shape
    n_outer = 1
    for d in outer:
        n_outer *= d
    sub = 32 // itemsize
    sp = -(-s // sub) * sub
    lp = -(-l // 128) * 128
    return n_outer * sp * lp * itemsize


def _step_vmem_bytes(TB, TI, Ho, Wo, C, D):
    """Per-grid-step VMEM footprint: double-buffered blocks + kernel temps."""
    Mo = TB * (TI + 1) * Wo
    x_blk = _padded_vmem_bytes((TB, 2, 2, Ho + 2, Wo + 1, C), 2)
    w_blk = _padded_vmem_bytes((9, C, D), 2)
    b_blk = _padded_vmem_bytes((1, D), 4)
    o_blk = _padded_vmem_bytes((TB, TI * Wo, D), 4)
    pipelined = 2 * (x_blk + w_blk + b_blk + o_blk)
    temps = (8 * _padded_vmem_bytes((Mo, D), 4)      # quarters + pool temps
             + 4 * _padded_vmem_bytes((Mo, C), 4))   # widened matmul slabs
    return pipelined + temps


def _vmem_capacity_bytes():
    try:
        cap = getattr(pltpu.get_tpu_info(), "vmem_capacity_bytes", None)
        if cap:
            return int(cap)
    except Exception:
        pass
    return 64 << 20   # conservative fallback (v7x per-TensorCore VMEM)


def _pick_tiles(B, Ho, Wo, C, D, budget_bytes, min_steps=4):
    """Largest (batch tile, row tile) fitting the VMEM budget; prefer configs
    with >= min_steps grid steps (pipelining + both v7x TensorCores)."""
    best_key, best = None, None
    for TB in range(1, B + 1):
        if B % TB:
            continue
        for TI in range(1, Ho + 1):
            if Ho % TI:
                continue
            if _step_vmem_bytes(TB, TI, Ho, Wo, C, D) > budget_bytes:
                continue
            steps = (B // TB) * (Ho // TI)
            key = (steps >= min_steps, TB * TI, -steps)
            if best_key is None or key > best_key:
                best_key, best = key, (TB, TI)
    if best is None:
        raise ValueError(
            "ConvTokenizer: even a (TB=1, TI=1) tile exceeds the VMEM budget "
            f"of {budget_bytes} bytes; add column tiling for this image size.")
    return best


def conv_tokenizer(x, weight, bias, *, kernel_size=3, conv_pad=1,
                   pool_kernel=3, pool_stride=2, pool_pad=1):
    """x: (B, C, H, W) f32; weight: (D, C, K, K); bias: (D,) -> (B, Ho*Wo, D)."""
    assert kernel_size == 3 and conv_pad == 1
    assert pool_kernel == 3 and pool_stride == 2 and pool_pad == 1
    B, C, H, W = x.shape
    D = weight.shape[0]
    assert H % 2 == 0 and W % 16 == 0, "need even H and W a multiple of 16"
    Ho, Wo = H // 2, W // 2

    # --- host prep: parity planes of the zero-padded NHWC input (bf16) ------
    # planes[b, r, c, m + 1, n, :] == padded[b, 2m + r, 2n + c, :]; plane row 0
    # is a dummy so the kernel's one-row-above halo read never leaves bounds.
    # One cheap pass over ~1.3x the raw input; the rev-2 9x im2col is gone.
    xh = jnp.transpose(x, (0, 2, 3, 1)).astype(jnp.float32)         # (B,H,W,C)
    xp = jnp.pad(xh, ((0, 0), (1, 1), (1, 1), (0, 0)))              # conv pad 1
    planes = xp.reshape(B, Ho + 1, 2, Wo + 1, 2, C)
    planes = jnp.transpose(planes, (0, 2, 4, 1, 3, 5))              # (B,2,2,Ho+1,Wo+1,C)
    planes = jnp.pad(planes, ((0, 0), (0, 0), (0, 0), (1, 0), (0, 0), (0, 0)))
    planes = planes.astype(jnp.bfloat16)                            # (B,2,2,Ho+2,Wo+1,C)

    # torch Conv2d weight (D, C, K, K) -> (K*K, C, D) with k = ki*3 + kj.
    w9 = jnp.transpose(weight, (2, 3, 1, 0)).reshape(9, C, D).astype(jnp.bfloat16)
    b2 = bias.reshape(1, D).astype(jnp.float32)

    vmem_cap = _vmem_capacity_bytes()
    TB, TI = _pick_tiles(B, Ho, Wo, C, D, budget_bytes=int(0.45 * vmem_cap))
    grid = (B // TB, Ho // TI)

    kern = functools.partial(_tokenizer_kernel,
                             TB=TB, TI=TI, Ho=Ho, Wo=Wo, D=D, C=C)
    out = pl.pallas_call(
        kern,
        out_shape=jax.ShapeDtypeStruct((B, Ho * Wo, D), jnp.float32),
        grid=grid,
        in_specs=[
            # full parity planes per batch tile; the block index depends only
            # on the batch axis, so the slab stays resident across row tiles.
            pl.BlockSpec((TB, 2, 2, Ho + 2, Wo + 1, C),
                         lambda bi, ii: (bi, 0, 0, 0, 0, 0)),
            pl.BlockSpec((9, C, D), lambda bi, ii: (0, 0, 0)),
            pl.BlockSpec((1, D), lambda bi, ii: (0, 0)),
        ],
        out_specs=pl.BlockSpec((TB, TI * Wo, D), lambda bi, ii: (bi, ii, 0)),
        compiler_params=pltpu.CompilerParams(
            dimension_semantics=("parallel", "parallel"),
            vmem_limit_bytes=min(int(0.9 * vmem_cap), 96 << 20)),
    )(planes, w9, b2)
    return out


def reference(x, weight, bias):
    """Pure-JAX reference of the PyTorch forward (for verification)."""
    conv = lax.conv_general_dilated(
        x, weight, window_strides=(1, 1), padding=((1, 1), (1, 1)),
        dimension_numbers=("NCHW", "OIHW", "NCHW")) + bias[None, :, None, None]
    pooled = lax.reduce_window(
        conv, -jnp.inf, lax.max,
        window_dimensions=(1, 1, 3, 3), window_strides=(1, 1, 2, 2),
        padding=((0, 0), (0, 0), (1, 1), (1, 1)))
    B, D, Ho, Wo = pooled.shape
    return jnp.transpose(pooled, (0, 2, 3, 1)).reshape(B, Ho * Wo, D)


if __name__ == "__main__":
    # Small shapes consistent with ConvTokenizer: in_channels=4, embed_dim=32.
    B, C, H, W, D, K = 2, 4, 16, 16, 32, 3

    key = jax.random.PRNGKey(0)
    kx, kw, kb = jax.random.split(key, 3)
    x = jax.random.normal(kx, (B, C, H, W), jnp.float32)
    fan_in = C * K * K
    bound = 1.0 / (fan_in ** 0.5)
    weight = jax.random.uniform(kw, (D, C, K, K), jnp.float32, -bound, bound)
    bias = jax.random.uniform(kb, (D,), jnp.float32, -bound, bound)

    out = conv_tokenizer(x, weight, bias)
    out = jax.block_until_ready(out)

    # Compare against the reference evaluated on the same bf16-rounded operands
    # the kernel consumes (the bf16 cast is an intentional bandwidth choice),
    # so the check isolates kernel correctness from quantization.
    x_r = x.astype(jnp.bfloat16).astype(jnp.float32)
    w_r = weight.astype(jnp.bfloat16).astype(jnp.float32)
    ref = reference(x_r, w_r, bias)
    assert out.shape == (B, (H // 2) * (W // 2), D), out.shape
    err = float(jnp.max(jnp.abs(out - ref)))
    assert bool(jnp.allclose(out, ref, atol=1e-3, rtol=1e-3)), err
    print("KERNEL_OK")
</pallas_src>

<mosaic_0001>
module attributes {stable_mosaic.version = 11 : i64} {
  func.func @_tokenizer_kernel(%arg0: i32, %arg1: i32, %arg2: memref<1x2x2x10x9x4xbf16, #tpu.memory_space<vmem>>, %arg3: memref<9x4x32xbf16, #tpu.memory_space<vmem>>, %arg4: memref<1x32xf32, #tpu.memory_space<vmem>>, %arg5: memref<1x32x32xf32, #tpu.memory_space<vmem>>) attributes {dimension_semantics = [#tpu.dimension_semantics<parallel>, #tpu.dimension_semantics<parallel>], iteration_bounds = array<i64: 2, 2>, scalar_prefetch = 0 : i64, scratch_operands = 0 : i64, tpu.core_type = #tpu.core_type<tc>, window_params = [{transform_indices = @transform_0, window_bounds = array<i64: 1, 2, 2, 10, 9, 4>}, {pipeline_mode = #tpu.pipeline_mode<synchronous>, transform_indices = @transform_1, window_bounds = array<i64: 9, 4, 32>}, {pipeline_mode = #tpu.pipeline_mode<synchronous>, transform_indices = @transform_2, window_bounds = array<i64: 1, 32>}, {transform_indices = @transform_3, window_bounds = array<i64: 1, 32, 32>}]} {
    %c4_i32 = arith.constant 4 : i32
    %0 = arith.muli %arg1, %c4_i32 : i32
    %c1_i32 = arith.constant 1 : i32
    %1 = arith.addi %0, %c1_i32 : i32
    %cst = arith.constant 0.000000e+00 : f32
    %2 = vector.broadcast %cst : f32 to vector<32x32xf32>
    %c0_i32 = arith.constant 0 : i32
    %3 = arith.addi %1, %c0_i32 : i32
    %c0 = arith.constant 0 : index
    %c0_0 = arith.constant 0 : index
    %c0_1 = arith.constant 0 : index
    %4 = arith.index_cast %3 : i32 to index
    %c0_2 = arith.constant 0 : index
    %c0_3 = arith.constant 0 : index
    %5 = vector.load %arg2[%c0, %c0_0, %c0_1, %4, %c0_2, %c0_3] : memref<1x2x2x10x9x4xbf16, #tpu.memory_space<vmem>>, vector<1x1x1x4x8x4xbf16>
    %6 = vector.shape_cast %5 : vector<1x1x1x4x8x4xbf16> to vector<1x4x8x4xbf16>
    %7 = arith.extf %6 : vector<1x4x8x4xbf16> to vector<1x4x8x4xf32>
    %8 = vector.shape_cast %7 : vector<1x4x8x4xf32> to vector<32x4xf32>
    %c0_4 = arith.constant 0 : index
    %c0_5 = arith.constant 0 : index
    %c0_6 = arith.constant 0 : index
    %9 = vector.load %arg3[%c0_4, %c0_5, %c0_6] : memref<9x4x32xbf16, #tpu.memory_space<vmem>>, vector<1x4x32xbf16>
    %10 = vector.shape_cast %9 : vector<1x4x32xbf16> to vector<4x32xbf16>
    %11 = arith.extf %10 : vector<4x32xbf16> to vector<4x32xf32>
    %cst_7 = arith.constant dense<0.000000e+00> : vector<32x32xf32>
    %12 = tpu.matmul %8, %11, %cst_7 {dimension_numbers = #tpu.dot_dimension_numbers<[1], [0], [0], [1], [0, 0, 1, 1], [], []>} : vector<32x4xf32>, vector<4x32xf32>, vector<32x32xf32> -> vector<32x32xf32>
    %13 = arith.addf %2, %12 : vector<32x32xf32>
    %c0_i32_8 = arith.constant 0 : i32
    %14 = arith.addi %1, %c0_i32_8 : i32
    %c0_9 = arith.constant 0 : index
    %c0_10 = arith.constant 0 : index
    %c1 = arith.constant 1 : index
    %15 = arith.index_cast %14 : i32 to index
    %c0_11 = arith.constant 0 : index
    %c0_12 = arith.constant 0 : index
    %16 = vector.load %arg2[%c0_9, %c0_10, %c1, %15, %c0_11, %c0_12] : memref<1x2x2x10x9x4xbf16, #tpu.memory_space<vmem>>, vector<1x1x1x4x8x4xbf16>
    %17 = vector.shape_cast %16 : vector<1x1x1x4x8x4xbf16> to vector<1x4x8x4xbf16>
    %18 = arith.extf %17 : vector<1x4x8x4xbf16> to vector<1x4x8x4xf32>
    %19 = vector.shape_cast %18 : vector<1x4x8x4xf32> to vector<32x4xf32>
    %c1_13 = arith.constant 1 : index
    %c0_14 = arith.constant 0 : index
    %c0_15 = arith.constant 0 : index
    %20 = vector.load %arg3[%c1_13, %c0_14, %c0_15] : memref<9x4x32xbf16, #tpu.memory_space<vmem>>, vector<1x4x32xbf16>
    %21 = vector.shape_cast %20 : vector<1x4x32xbf16> to vector<4x32xbf16>
    %22 = arith.extf %21 : vector<4x32xbf16> to vector<4x32xf32>
    %cst_16 = arith.constant dense<0.000000e+00> : vector<32x32xf32>
    %23 = tpu.matmul %19, %22, %cst_16 {dimension_numbers = #tpu.dot_dimension_numbers<[1], [0], [0], [1], [0, 0, 1, 1], [], []>} : vector<32x4xf32>, vector<4x32xf32>, vector<32x32xf32> -> vector<32x32xf32>
    %24 = arith.addf %13, %23 : vector<32x32xf32>
    %c0_i32_17 = arith.constant 0 : i32
    %25 = arith.addi %1, %c0_i32_17 : i32
    %c0_18 = arith.constant 0 : index
    %c0_19 = arith.constant 0 : index
    %c0_20 = arith.constant 0 : index
    %26 = arith.index_cast %25 : i32 to index
    %c1_21 = arith.constant 1 : index
    %c0_22 = arith.constant 0 : index
    %27 = vector.load %arg2[%c0_18, %c0_19, %c0_20, %26, %c1_21, %c0_22] : memref<1x2x2x10x9x4xbf16, #tpu.memory_space<vmem>>, vector<1x1x1x4x8x4xbf16>
    %28 = vector.shape_cast %27 : vector<1x1x1x4x8x4xbf16> to vector<1x4x8x4xbf16>
    %29 = arith.extf %28 : vector<1x4x8x4xbf16> to vector<1x4x8x4xf32>
    %30 = vector.shape_cast %29 : vector<1x4x8x4xf32> to vector<32x4xf32>
    %c2 = arith.constant 2 : index
    %c0_23 = arith.constant 0 : index
    %c0_24 = arith.constant 0 : index
    %31 = vector.load %arg3[%c2, %c0_23, %c0_24] : memref<9x4x32xbf16, #tpu.memory_space<vmem>>, vector<1x4x32xbf16>
    %32 = vector.shape_cast %31 : vector<1x4x32xbf16> to vector<4x32xbf16>
    %33 = arith.extf %32 : vector<4x32xbf16> to vector<4x32xf32>
    %cst_25 = arith.constant dense<0.000000e+00> : vector<32x32xf32>
    %34 = tpu.matmul %30, %33, %cst_25 {dimension_numbers = #tpu.dot_dimension_numbers<[1], [0], [0], [1], [0, 0, 1, 1], [], []>} : vector<32x4xf32>, vector<4x32xf32>, vector<32x32xf32> -> vector<32x32xf32>
    %35 = arith.addf %24, %34 : vector<32x32xf32>
    %c0_i32_26 = arith.constant 0 : i32
    %36 = arith.addi %1, %c0_i32_26 : i32
    %c0_27 = arith.constant 0 : index
    %c1_28 = arith.constant 1 : index
    %c0_29 = arith.constant 0 : index
    %37 = arith.index_cast %36 : i32 to index
    %c0_30 = arith.constant 0 : index
    %c0_31 = arith.constant 0 : index
    %38 = vector.load %arg2[%c0_27, %c1_28, %c0_29, %37, %c0_30, %c0_31] : memref<1x2x2x10x9x4xbf16, #tpu.memory_space<vmem>>, vector<1x1x1x4x8x4xbf16>
    %39 = vector.shape_cast %38 : vector<1x1x1x4x8x4xbf16> to vector<1x4x8x4xbf16>
    %40 = arith.extf %39 : vector<1x4x8x4xbf16> to vector<1x4x8x4xf32>
    %41 = vector.shape_cast %40 : vector<1x4x8x4xf32> to vector<32x4xf32>
    %c3 = arith.constant 3 : index
    %c0_32 = arith.constant 0 : index
    %c0_33 = arith.constant 0 : index
    %42 = vector.load %arg3[%c3, %c0_32, %c0_33] : memref<9x4x32xbf16, #tpu.memory_space<vmem>>, vector<1x4x32xbf16>
    %43 = vector.shape_cast %42 : vector<1x4x32xbf16> to vector<4x32xbf16>
    %44 = arith.extf %43 : vector<4x32xbf16> to vector<4x32xf32>
    %cst_34 = arith.constant dense<0.000000e+00> : vector<32x32xf32>
    %45 = tpu.matmul %41, %44, %cst_34 {dimension_numbers = #tpu.dot_dimension_numbers<[1], [0], [0], [1], [0, 0, 1, 1], [], []>} : vector<32x4xf32>, vector<4x32xf32>, vector<32x32xf32> -> vector<32x32xf32>
    %46 = arith.addf %35, %45 : vector<32x32xf32>
    %c0_i32_35 = arith.constant 0 : i32
    %47 = arith.addi %1, %c0_i32_35 : i32
    %c0_36 = arith.constant 0 : index
    %c1_37 = arith.constant 1 : index
    %c1_38 = arith.constant 1 : index
    %48 = arith.index_cast %47 : i32 to index
    %c0_39 = arith.constant 0 : index
    %c0_40 = arith.constant 0 : index
    %49 = vector.load %arg2[%c0_36, %c1_37, %c1_38, %48, %c0_39, %c0_40] : memref<1x2x2x10x9x4xbf16, #tpu.memory_space<vmem>>, vector<1x1x1x4x8x4xbf16>
    %50 = vector.shape_cast %49 : vector<1x1x1x4x8x4xbf16> to vector<1x4x8x4xbf16>
    %51 = arith.extf %50 : vector<1x4x8x4xbf16> to vector<1x4x8x4xf32>
    %52 = vector.shape_cast %51 : vector<1x4x8x4xf32> to vector<32x4xf32>
    %c4 = arith.constant 4 : index
    %c0_41 = arith.constant 0 : index
    %c0_42 = arith.constant 0 : index
    %53 = vector.load %arg3[%c4, %c0_41, %c0_42] : memref<9x4x32xbf16, #tpu.memory_space<vmem>>, vector<1x4x32xbf16>
    %54 = vector.shape_cast %53 : vector<1x4x32xbf16> to vector<4x32xbf16>
    %55 = arith.extf %54 : vector<4x32xbf16> to vector<4x32xf32>
    %cst_43 = arith.constant dense<0.000000e+00> : vector<32x32xf32>
    %56 = tpu.matmul %52, %55, %cst_43 {dimension_numbers = #tpu.dot_dimension_numbers<[1], [0], [0], [1], [0, 0, 1, 1], [], []>} : vector<32x4xf32>, vector<4x32xf32>, vector<32x32xf32> -> vector<32x32xf32>
    %57 = arith.addf %46, %56 : vector<32x32xf32>
    %c0_i32_44 = arith.constant 0 : i32
    %58 = arith.addi %1, %c0_i32_44 : i32
    %c0_45 = arith.constant 0 : index
    %c1_46 = arith.constant 1 : index
    %c0_47 = arith.constant 0 : index
    %59 = arith.index_cast %58 : i32 to index
    %c1_48 = arith.constant 1 : index
    %c0_49 = arith.constant 0 : index
    %60 = vector.load %arg2[%c0_45, %c1_46, %c0_47, %59, %c1_48, %c0_49] : memref<1x2x2x10x9x4xbf16, #tpu.memory_space<vmem>>, vector<1x1x1x4x8x4xbf16>
    %61 = vector.shape_cast %60 : vector<1x1x1x4x8x4xbf16> to vector<1x4x8x4xbf16>
    %62 = arith.extf %61 : vector<1x4x8x4xbf16> to vector<1x4x8x4xf32>
    %63 = vector.shape_cast %62 : vector<1x4x8x4xf32> to vector<32x4xf32>
    %c5 = arith.constant 5 : index
    %c0_50 = arith.constant 0 : index
    %c0_51 = arith.constant 0 : index
    %64 = vector.load %arg3[%c5, %c0_50, %c0_51] : memref<9x4x32xbf16, #tpu.memory_space<vmem>>, vector<1x4x32xbf16>
    %65 = vector.shape_cast %64 : vector<1x4x32xbf16> to vector<4x32xbf16>
    %66 = arith.extf %65 : vector<4x32xbf16> to vector<4x32xf32>
    %cst_52 = arith.constant dense<0.000000e+00> : vector<32x32xf32>
    %67 = tpu.matmul %63, %66, %cst_52 {dimension_numbers = #tpu.dot_dimension_numbers<[1], [0], [0], [1], [0, 0, 1, 1], [], []>} : vector<32x4xf32>, vector<4x32xf32>, vector<32x32xf32> -> vector<32x32xf32>
    %68 = arith.addf %57, %67 : vector<32x32xf32>
    %c1_i32_53 = arith.constant 1 : i32
    %69 = arith.addi %1, %c1_i32_53 : i32
    %c0_54 = arith.constant 0 : index
    %c0_55 = arith.constant 0 : index
    %c0_56 = arith.constant 0 : index
    %70 = arith.index_cast %69 : i32 to index
    %c0_57 = arith.constant 0 : index
    %c0_58 = arith.constant 0 : index
    %71 = vector.load %arg2[%c0_54, %c0_55, %c0_56, %70, %c0_57, %c0_58] : memref<1x2x2x10x9x4xbf16, #tpu.memory_space<vmem>>, vector<1x1x1x4x8x4xbf16>
    %72 = vector.shape_cast %71 : vector<1x1x1x4x8x4xbf16> to vector<1x4x8x4xbf16>
    %73 = arith.extf %72 : vector<1x4x8x4xbf16> to vector<1x4x8x4xf32>
    %74 = vector.shape_cast %73 : vector<1x4x8x4xf32> to vector<32x4xf32>
    %c6 = arith.constant 6 : index
    %c0_59 = arith.constant 0 : index
    %c0_60 = arith.constant 0 : index
    %75 = vector.load %arg3[%c6, %c0_59, %c0_60] : memref<9x4x32xbf16, #tpu.memory_space<vmem>>, vector<1x4x32xbf16>
    %76 = vector.shape_cast %75 : vector<1x4x32xbf16> to vector<4x32xbf16>
    %77 = arith.extf %76 : vector<4x32xbf16> to vector<4x32xf32>
    %cst_61 = arith.constant dense<0.000000e+00> : vector<32x32xf32>
    %78 = tpu.matmul %74, %77, %cst_61 {dimension_numbers = #tpu.dot_dimension_numbers<[1], [0], [0], [1], [0, 0, 1, 1], [], []>} : vector<32x4xf32>, vector<4x32xf32>, vector<32x32xf32> -> vector<32x32xf32>
    %79 = arith.addf %68, %78 : vector<32x32xf32>
    %c1_i32_62 = arith.constant 1 : i32
    %80 = arith.addi %1, %c1_i32_62 : i32
    %c0_63 = arith.constant 0 : index
    %c0_64 = arith.constant 0 : index
    %c1_65 = arith.constant 1 : index
    %81 = arith.index_cast %80 : i32 to index
    %c0_66 = arith.constant 0 : index
    %c0_67 = arith.constant 0 : index
    %82 = vector.load %arg2[%c0_63, %c0_64, %c1_65, %81, %c0_66, %c0_67] : memref<1x2x2x10x9x4xbf16, #tpu.memory_space<vmem>>, vector<1x1x1x4x8x4xbf16>
    %83 = vector.shape_cast %82 : vector<1x1x1x4x8x4xbf16> to vector<1x4x8x4xbf16>
    %84 = arith.extf %83 : vector<1x4x8x4xbf16> to vector<1x4x8x4xf32>
    %85 = vector.shape_cast %84 : vector<1x4x8x4xf32> to vector<32x4xf32>
    %c7 = arith.constant 7 : index
    %c0_68 = arith.constant 0 : index
    %c0_69 = arith.constant 0 : index
    %86 = vector.load %arg3[%c7, %c0_68, %c0_69] : memref<9x4x32xbf16, #tpu.memory_space<vmem>>, vector<1x4x32xbf16>
    %87 = vector.shape_cast %86 : vector<1x4x32xbf16> to vector<4x32xbf16>
    %88 = arith.extf %87 : vector<4x32xbf16> to vector<4x32xf32>
    %cst_70 = arith.constant dense<0.000000e+00> : vector<32x32xf32>
    %89 = tpu.matmul %85, %88, %cst_70 {dimension_numbers = #tpu.dot_dimension_numbers<[1], [0], [0], [1], [0, 0, 1, 1], [], []>} : vector<32x4xf32>, vector<4x32xf32>, vector<32x32xf32> -> vector<32x32xf32>
    %90 = arith.addf %79, %89 : vector<32x32xf32>
    %c1_i32_71 = arith.constant 1 : i32
    %91 = arith.addi %1, %c1_i32_71 : i32
    %c0_72 = arith.constant 0 : index
    %c0_73 = arith.constant 0 : index
    %c0_74 = arith.constant 0 : index
    %92 = arith.index_cast %91 : i32 to index
    %c1_75 = arith.constant 1 : index
    %c0_76 = arith.constant 0 : index
    %93 = vector.load %arg2[%c0_72, %c0_73, %c0_74, %92, %c1_75, %c0_76] : memref<1x2x2x10x9x4xbf16, #tpu.memory_space<vmem>>, vector<1x1x1x4x8x4xbf16>
    %94 = vector.shape_cast %93 : vector<1x1x1x4x8x4xbf16> to vector<1x4x8x4xbf16>
    %95 = arith.extf %94 : vector<1x4x8x4xbf16> to vector<1x4x8x4xf32>
    %96 = vector.shape_cast %95 : vector<1x4x8x4xf32> to vector<32x4xf32>
    %c8 = arith.constant 8 : index
    %c0_77 = arith.constant 0 : index
    %c0_78 = arith.constant 0 : index
    %97 = vector.load %arg3[%c8, %c0_77, %c0_78] : memref<9x4x32xbf16, #tpu.memory_space<vmem>>, vector<1x4x32xbf16>
    %98 = vector.shape_cast %97 : vector<1x4x32xbf16> to vector<4x32xbf16>
    %99 = arith.extf %98 : vector<4x32xbf16> to vector<4x32xf32>
    %cst_79 = arith.constant dense<0.000000e+00> : vector<32x32xf32>
    %100 = tpu.matmul %96, %99, %cst_79 {dimension_numbers = #tpu.dot_dimension_numbers<[1], [0], [0], [1], [0, 0, 1, 1], [], []>} : vector<32x4xf32>, vector<4x32xf32>, vector<32x32xf32> -> vector<32x32xf32>
    %101 = arith.addf %90, %100 : vector<32x32xf32>
    %c1_i32_80 = arith.constant 1 : i32
    %102 = arith.addi %0, %c1_i32_80 : i32
    %cst_81 = arith.constant 0.000000e+00 : f32
    %103 = vector.broadcast %cst_81 : f32 to vector<32x32xf32>
    %c0_i32_82 = arith.constant 0 : i32
    %104 = arith.addi %102, %c0_i32_82 : i32
    %c0_83 = arith.constant 0 : index
    %c0_84 = arith.constant 0 : index
    %c1_85 = arith.constant 1 : index
    %105 = arith.index_cast %104 : i32 to index
    %c0_86 = arith.constant 0 : index
    %c0_87 = arith.constant 0 : index
    %106 = vector.load %arg2[%c0_83, %c0_84, %c1_85, %105, %c0_86, %c0_87] : memref<1x2x2x10x9x4xbf16, #tpu.memory_space<vmem>>, vector<1x1x1x4x8x4xbf16>
    %107 = vector.shape_cast %106 : vector<1x1x1x4x8x4xbf16> to vector<1x4x8x4xbf16>
    %108 = arith.extf %107 : vector<1x4x8x4xbf16> to vector<1x4x8x4xf32>
    %109 = vector.shape_cast %108 : vector<1x4x8x4xf32> to vector<32x4xf32>
    %c0_88 = arith.constant 0 : index
    %c0_89 = arith.constant 0 : index
    %c0_90 = arith.constant 0 : index
    %110 = vector.load %arg3[%c0_88, %c0_89, %c0_90] : memref<9x4x32xbf16, #tpu.memory_space<vmem>>, vector<1x4x32xbf16>
    %111 = vector.shape_cast %110 : vector<1x4x32xbf16> to vector<4x32xbf16>
    %112 = arith.extf %111 : vector<4x32xbf16> to vector<4x32xf32>
    %cst_91 = arith.constant dense<0.000000e+00> : vector<32x32xf32>
    %113 = tpu.matmul %109, %112, %cst_91 {dimension_numbers = #tpu.dot_dimension_numbers<[1], [0], [0], [1], [0, 0, 1, 1], [], []>} : vector<32x4xf32>, vector<4x32xf32>, vector<32x32xf32> -> vector<32x32xf32>
    %114 = arith.addf %103, %113 : vector<32x32xf32>
    %c0_i32_92 = arith.constant 0 : i32
    %115 = arith.addi %102, %c0_i32_92 : i32
    %c0_93 = arith.constant 0 : index
    %c0_94 = arith.constant 0 : index
    %c0_95 = arith.constant 0 : index
    %116 = arith.index_cast %115 : i32 to index
    %c1_96 = arith.constant 1 : index
    %c0_97 = arith.constant 0 : index
    %117 = vector.load %arg2[%c0_93, %c0_94, %c0_95, %116, %c1_96, %c0_97] : memref<1x2x2x10x9x4xbf16, #tpu.memory_space<vmem>>, vector<1x1x1x4x8x4xbf16>
    %118 = vector.shape_cast %117 : vector<1x1x1x4x8x4xbf16> to vector<1x4x8x4xbf16>
    %119 = arith.extf %118 : vector<1x4x8x4xbf16> to vector<1x4x8x4xf32>
    %120 = vector.shape_cast %119 : vector<1x4x8x4xf32> to vector<32x4xf32>
    %c1_98 = arith.constant 1 : index
    %c0_99 = arith.constant 0 : index
    %c0_100 = arith.constant 0 : index
    %121 = vector.load %arg3[%c1_98, %c0_99, %c0_100] : memref<9x4x32xbf16, #tpu.memory_space<vmem>>, vector<1x4x32xbf16>
    %122 = vector.shape_cast %121 : vector<1x4x32xbf16> to vector<4x32xbf16>
    %123 = arith.extf %122 : vector<4x32xbf16> to vector<4x32xf32>
    %cst_101 = arith.constant dense<0.000000e+00> : vector<32x32xf32>
    %124 = tpu.matmul %120, %123, %cst_101 {dimension_numbers = #tpu.dot_dimension_numbers<[1], [0], [0], [1], [0, 0, 1, 1], [], []>} : vector<32x4xf32>, vector<4x32xf32>, vector<32x32xf32> -> vector<32x32xf32>
    %125 = arith.addf %114, %124 : vector<32x32xf32>
    %c0_i32_102 = arith.constant 0 : i32
    %126 = arith.addi %102, %c0_i32_102 : i32
    %c0_103 = arith.constant 0 : index
    %c0_104 = arith.constant 0 : index
    %c1_105 = arith.constant 1 : index
    %127 = arith.index_cast %126 : i32 to index
    %c1_106 = arith.constant 1 : index
    %c0_107 = arith.constant 0 : index
    %128 = vector.load %arg2[%c0_103, %c0_104, %c1_105, %127, %c1_106, %c0_107] : memref<1x2x2x10x9x4xbf16, #tpu.memory_space<vmem>>, vector<1x1x1x4x8x4xbf16>
    %129 = vector.shape_cast %128 : vector<1x1x1x4x8x4xbf16> to vector<1x4x8x4xbf16>
    %130 = arith.extf %129 : vector<1x4x8x4xbf16> to vector<1x4x8x4xf32>
    %131 = vector.shape_cast %130 : vector<1x4x8x4xf32> to vector<32x4xf32>
    %c2_108 = arith.constant 2 : index
    %c0_109 = arith.constant 0 : index
    %c0_110 = arith.constant 0 : index
    %132 = vector.load %arg3[%c2_108, %c0_109, %c0_110] : memref<9x4x32xbf16, #tpu.memory_space<vmem>>, vector<1x4x32xbf16>
    %133 = vector.shape_cast %132 : vector<1x4x32xbf16> to vector<4x32xbf16>
    %134 = arith.extf %133 : vector<4x32xbf16> to vector<4x32xf32>
    %cst_111 = arith.constant dense<0.000000e+00> : vector<32x32xf32>
    %135 = tpu.matmul %131, %134, %cst_111 {dimension_numbers = #tpu.dot_dimension_numbers<[1], [0], [0], [1], [0, 0, 1, 1], [], []>} : vector<32x4xf32>, vector<4x32xf32>, vector<32x32xf32> -> vector<32x32xf32>
    %136 = arith.addf %125, %135 : vector<32x32xf32>
    %c0_i32_112 = arith.constant 0 : i32
    %137 = arith.addi %102, %c0_i32_112 : i32
    %c0_113 = arith.constant 0 : index
    %c1_114 = arith.constant 1 : index
    %c1_115 = arith.constant 1 : index
    %138 = arith.index_cast %137 : i32 to index
    %c0_116 = arith.constant 0 : index
    %c0_117 = arith.constant 0 : index
    %139 = vector.load %arg2[%c0_113, %c1_114, %c1_115, %138, %c0_116, %c0_117] : memref<1x2x2x10x9x4xbf16, #tpu.memory_space<vmem>>, vector<1x1x1x4x8x4xbf16>
    %140 = vector.shape_cast %139 : vector<1x1x1x4x8x4xbf16> to vector<1x4x8x4xbf16>
    %141 = arith.extf %140 : vector<1x4x8x4xbf16> to vector<1x4x8x4xf32>
    %142 = vector.shape_cast %141 : vector<1x4x8x4xf32> to vector<32x4xf32>
    %c3_118 = arith.constant 3 : index
    %c0_119 = arith.constant 0 : index
    %c0_120 = arith.constant 0 : index
    %143 = vector.load %arg3[%c3_118, %c0_119, %c0_120] : memref<9x4x32xbf16, #tpu.memory_space<vmem>>, vector<1x4x32xbf16>
    %144 = vector.shape_cast %143 : vector<1x4x32xbf16> to vector<4x32xbf16>
    %145 = arith.extf %144 : vector<4x32xbf16> to vector<4x32xf32>
    %cst_121 = arith.constant dense<0.000000e+00> : vector<32x32xf32>
    %146 = tpu.matmul %142, %145, %cst_121 {dimension_numbers = #tpu.dot_dimension_numbers<[1], [0], [0], [1], [0, 0, 1, 1], [], []>} : vector<32x4xf32>, vector<4x32xf32>, vector<32x32xf32> -> vector<32x32xf32>
    %147 = arith.addf %136, %146 : vector<32x32xf32>
    %c0_i32_122 = arith.constant 0 : i32
    %148 = arith.addi %102, %c0_i32_122 : i32
    %c0_123 = arith.constant 0 : index
    %c1_124 = arith.constant 1 : index
    %c0_125 = arith.constant 0 : index
    %149 = arith.index_cast %148 : i32 to index
    %c1_126 = arith.constant 1 : index
    %c0_127 = arith.constant 0 : index
    %150 = vector.load %arg2[%c0_123, %c1_124, %c0_125, %149, %c1_126, %c0_127] : memref<1x2x2x10x9x4xbf16, #tpu.memory_space<vmem>>, vector<1x1x1x4x8x4xbf16>
    %151 = vector.shape_cast %150 : vector<1x1x1x4x8x4xbf16> to vector<1x4x8x4xbf16>
    %152 = arith.extf %151 : vector<1x4x8x4xbf16> to vector<1x4x8x4xf32>
    %153 = vector.shape_cast %152 : vector<1x4x8x4xf32> to vector<32x4xf32>
    %c4_128 = arith.constant 4 : index
    %c0_129 = arith.constant 0 : index
    %c0_130 = arith.constant 0 : index
    %154 = vector.load %arg3[%c4_128, %c0_129, %c0_130] : memref<9x4x32xbf16, #tpu.memory_space<vmem>>, vector<1x4x32xbf16>
    %155 = vector.shape_cast %154 : vector<1x4x32xbf16> to vector<4x32xbf16>
    %156 = arith.extf %155 : vector<4x32xbf16> to vector<4x32xf32>
    %cst_131 = arith.constant dense<0.000000e+00> : vector<32x32xf32>
    %157 = tpu.matmul %153, %156, %cst_131 {dimension_numbers = #tpu.dot_dimension_numbers<[1], [0], [0], [1], [0, 0, 1, 1], [], []>} : vector<32x4xf32>, vector<4x32xf32>, vector<32x32xf32> -> vector<32x32xf32>
    %158 = arith.addf %147, %157 : vector<32x32xf32>
    %c0_i32_132 = arith.constant 0 : i32
    %159 = arith.addi %102, %c0_i32_132 : i32
    %c0_133 = arith.constant 0 : index
    %c1_134 = arith.constant 1 : index
    %c1_135 = arith.constant 1 : index
    %160 = arith.index_cast %159 : i32 to index
    %c1_136 = arith.constant 1 : index
    %c0_137 = arith.constant 0 : index
    %161 = vector.load %arg2[%c0_133, %c1_134, %c1_135, %160, %c1_136, %c0_137] : memref<1x2x2x10x9x4xbf16, #tpu.memory_space<vmem>>, vector<1x1x1x4x8x4xbf16>
    %162 = vector.shape_cast %161 : vector<1x1x1x4x8x4xbf16> to vector<1x4x8x4xbf16>
    %163 = arith.extf %162 : vector<1x4x8x4xbf16> to vector<1x4x8x4xf32>
    %164 = vector.shape_cast %163 : vector<1x4x8x4xf32> to vector<32x4xf32>
    %c5_138 = arith.constant 5 : index
    %c0_139 = arith.constant 0 : index
    %c0_140 = arith.constant 0 : index
    %165 = vector.load %arg3[%c5_138, %c0_139, %c0_140] : memref<9x4x32xbf16, #tpu.memory_space<vmem>>, vector<1x4x32xbf16>
    %166 = vector.shape_cast %165 : vector<1x4x32xbf16> to vector<4x32xbf16>
    %167 = arith.extf %166 : vector<4x32xbf16> to vector<4x32xf32>
    %cst_141 = arith.constant dense<0.000000e+00> : vector<32x32xf32>
    %168 = tpu.matmul %164, %167, %cst_141 {dimension_numbers = #tpu.dot_dimension_numbers<[1], [0], [0], [1], [0, 0, 1, 1], [], []>} : vector<32x4xf32>, vector<4x32xf32>, vector<32x32xf32> -> vector<32x32xf32>
    %169 = arith.addf %158, %168 : vector<32x32xf32>
    %c1_i32_142 = arith.constant 1 : i32
    %170 = arith.addi %102, %c1_i32_142 : i32
    %c0_143 = arith.constant 0 : index
    %c0_144 = arith.constant 0 : index
    %c1_145 = arith.constant 1 : index
    %171 = arith.index_cast %170 : i32 to index
    %c0_146 = arith.constant 0 : index
    %c0_147 = arith.constant 0 : index
    %172 = vector.load %arg2[%c0_143, %c0_144, %c1_145, %171, %c0_146, %c0_147] : memref<1x2x2x10x9x4xbf16, #tpu.memory_space<vmem>>, vector<1x1x1x4x8x4xbf16>
    %173 = vector.shape_cast %172 : vector<1x1x1x4x8x4xbf16> to vector<1x4x8x4xbf16>
    %174 = arith.extf %173 : vector<1x4x8x4xbf16> to vector<1x4x8x4xf32>
    %175 = vector.shape_cast %174 : vector<1x4x8x4xf32> to vector<32x4xf32>
    %c6_148 = arith.constant 6 : index
    %c0_149 = arith.constant 0 : index
    %c0_150 = arith.constant 0 : index
    %176 = vector.load %arg3[%c6_148, %c0_149, %c0_150] : memref<9x4x32xbf16, #tpu.memory_space<vmem>>, vector<1x4x32xbf16>
    %177 = vector.shape_cast %176 : vector<1x4x32xbf16> to vector<4x32xbf16>
    %178 = arith.extf %177 : vector<4x32xbf16> to vector<4x32xf32>
    %cst_151 = arith.constant dense<0.000000e+00> : vector<32x32xf32>
    %179 = tpu.matmul %175, %178, %cst_151 {dimension_numbers = #tpu.dot_dimension_numbers<[1], [0], [0], [1], [0, 0, 1, 1], [], []>} : vector<32x4xf32>, vector<4x32xf32>, vector<32x32xf32> -> vector<32x32xf32>
    %180 = arith.addf %169, %179 : vector<32x32xf32>
    %c1_i32_152 = arith.constant 1 : i32
    %181 = arith.addi %102, %c1_i32_152 : i32
    %c0_153 = arith.constant 0 : index
    %c0_154 = arith.constant 0 : index
    %c0_155 = arith.constant 0 : index
    %182 = arith.index_cast %181 : i32 to index
    %c1_156 = arith.constant 1 : index
    %c0_157 = arith.constant 0 : index
    %183 = vector.load %arg2[%c0_153, %c0_154, %c0_155, %182, %c1_156, %c0_157] : memref<1x2x2x10x9x4xbf16, #tpu.memory_space<vmem>>, vector<1x1x1x4x8x4xbf16>
    %184 = vector.shape_cast %183 : vector<1x1x1x4x8x4xbf16> to vector<1x4x8x4xbf16>
    %185 = arith.extf %184 : vector<1x4x8x4xbf16> to vector<1x4x8x4xf32>
    %186 = vector.shape_cast %185 : vector<1x4x8x4xf32> to vector<32x4xf32>
    %c7_158 = arith.constant 7 : index
    %c0_159 = arith.constant 0 : index
    %c0_160 = arith.constant 0 : index
    %187 = vector.load %arg3[%c7_158, %c0_159, %c0_160] : memref<9x4x32xbf16, #tpu.memory_space<vmem>>, vector<1x4x32xbf16>
    %188 = vector.shape_cast %187 : vector<1x4x32xbf16> to vector<4x32xbf16>
    %189 = arith.extf %188 : vector<4x32xbf16> to vector<4x32xf32>
    %cst_161 = arith.constant dense<0.000000e+00> : vector<32x32xf32>
    %190 = tpu.matmul %186, %189, %cst_161 {dimension_numbers = #tpu.dot_dimension_numbers<[1], [0], [0], [1], [0, 0, 1, 1], [], []>} : vector<32x4xf32>, vector<4x32xf32>, vector<32x32xf32> -> vector<32x32xf32>
    %191 = arith.addf %180, %190 : vector<32x32xf32>
    %c1_i32_162 = arith.constant 1 : i32
    %192 = arith.addi %102, %c1_i32_162 : i32
    %c0_163 = arith.constant 0 : index
    %c0_164 = arith.constant 0 : index
    %c1_165 = arith.constant 1 : index
    %193 = arith.index_cast %192 : i32 to index
    %c1_166 = arith.constant 1 : index
    %c0_167 = arith.constant 0 : index
    %194 = vector.load %arg2[%c0_163, %c0_164, %c1_165, %193, %c1_166, %c0_167] : memref<1x2x2x10x9x4xbf16, #tpu.memory_space<vmem>>, vector<1x1x1x4x8x4xbf16>
    %195 = vector.shape_cast %194 : vector<1x1x1x4x8x4xbf16> to vector<1x4x8x4xbf16>
    %196 = arith.extf %195 : vector<1x4x8x4xbf16> to vector<1x4x8x4xf32>
    %197 = vector.shape_cast %196 : vector<1x4x8x4xf32> to vector<32x4xf32>
    %c8_168 = arith.constant 8 : index
    %c0_169 = arith.constant 0 : index
    %c0_170 = arith.constant 0 : index
    %198 = vector.load %arg3[%c8_168, %c0_169, %c0_170] : memref<9x4x32xbf16, #tpu.memory_space<vmem>>, vector<1x4x32xbf16>
    %199 = vector.shape_cast %198 : vector<1x4x32xbf16> to vector<4x32xbf16>
    %200 = arith.extf %199 : vector<4x32xbf16> to vector<4x32xf32>
    %cst_171 = arith.constant dense<0.000000e+00> : vector<32x32xf32>
    %201 = tpu.matmul %197, %200, %cst_171 {dimension_numbers = #tpu.dot_dimension_numbers<[1], [0], [0], [1], [0, 0, 1, 1], [], []>} : vector<32x4xf32>, vector<4x32xf32>, vector<32x32xf32> -> vector<32x32xf32>
    %202 = arith.addf %191, %201 : vector<32x32xf32>
    %cst_172 = arith.constant 0.000000e+00 : f32
    %203 = vector.broadcast %cst_172 : f32 to vector<40x32xf32>
    %c0_i32_173 = arith.constant 0 : i32
    %204 = arith.addi %0, %c0_i32_173 : i32
    %c0_174 = arith.constant 0 : index
    %c1_175 = arith.constant 1 : index
    %c0_176 = arith.constant 0 : index
    %205 = arith.index_cast %204 : i32 to index
    %c0_177 = arith.constant 0 : index
    %c0_178 = arith.constant 0 : index
    %206 = vector.load %arg2[%c0_174, %c1_175, %c0_176, %205, %c0_177, %c0_178] : memref<1x2x2x10x9x4xbf16, #tpu.memory_space<vmem>>, vector<1x1x1x5x8x4xbf16>
    %207 = vector.shape_cast %206 : vector<1x1x1x5x8x4xbf16> to vector<1x5x8x4xbf16>
    %208 = arith.extf %207 : vector<1x5x8x4xbf16> to vector<1x5x8x4xf32>
    %209 = vector.shape_cast %208 : vector<1x5x8x4xf32> to vector<40x4xf32>
    %c0_179 = arith.constant 0 : index
    %c0_180 = arith.constant 0 : index
    %c0_181 = arith.constant 0 : index
    %210 = vector.load %arg3[%c0_179, %c0_180, %c0_181] : memref<9x4x32xbf16, #tpu.memory_space<vmem>>, vector<1x4x32xbf16>
    %211 = vector.shape_cast %210 : vector<1x4x32xbf16> to vector<4x32xbf16>
    %212 = arith.extf %211 : vector<4x32xbf16> to vector<4x32xf32>
    %cst_182 = arith.constant dense<0.000000e+00> : vector<40x32xf32>
    %213 = tpu.matmul %209, %212, %cst_182 {dimension_numbers = #tpu.dot_dimension_numbers<[1], [0], [0], [1], [0, 0, 1, 1], [], []>} : vector<40x4xf32>, vector<4x32xf32>, vector<40x32xf32> -> vector<40x32xf32>
    %214 = arith.addf %203, %213 : vector<40x32xf32>
    %c0_i32_183 = arith.constant 0 : i32
    %215 = arith.addi %0, %c0_i32_183 : i32
    %c0_184 = arith.constant 0 : index
    %c1_185 = arith.constant 1 : index
    %c1_186 = arith.constant 1 : index
    %216 = arith.index_cast %215 : i32 to index
    %c0_187 = arith.constant 0 : index
    %c0_188 = arith.constant 0 : index
    %217 = vector.load %arg2[%c0_184, %c1_185, %c1_186, %216, %c0_187, %c0_188] : memref<1x2x2x10x9x4xbf16, #tpu.memory_space<vmem>>, vector<1x1x1x5x8x4xbf16>
    %218 = vector.shape_cast %217 : vector<1x1x1x5x8x4xbf16> to vector<1x5x8x4xbf16>
    %219 = arith.extf %218 : vector<1x5x8x4xbf16> to vector<1x5x8x4xf32>
    %220 = vector.shape_cast %219 : vector<1x5x8x4xf32> to vector<40x4xf32>
    %c1_189 = arith.constant 1 : index
    %c0_190 = arith.constant 0 : index
    %c0_191 = arith.constant 0 : index
    %221 = vector.load %arg3[%c1_189, %c0_190, %c0_191] : memref<9x4x32xbf16, #tpu.memory_space<vmem>>, vector<1x4x32xbf16>
    %222 = vector.shape_cast %221 : vector<1x4x32xbf16> to vector<4x32xbf16>
    %223 = arith.extf %222 : vector<4x32xbf16> to vector<4x32xf32>
    %cst_192 = arith.constant dense<0.000000e+00> : vector<40x32xf32>
    %224 = tpu.matmul %220, %223, %cst_192 {dimension_numbers = #tpu.dot_dimension_numbers<[1], [0], [0], [1], [0, 0, 1, 1], [], []>} : vector<40x4xf32>, vector<4x32xf32>, vector<40x32xf32> -> vector<40x32xf32>
    %225 = arith.addf %214, %224 : vector<40x32xf32>
    %c0_i32_193 = arith.constant 0 : i32
    %226 = arith.addi %0, %c0_i32_193 : i32
    %c0_194 = arith.constant 0 : index
    %c1_195 = arith.constant 1 : index
    %c0_196 = arith.constant 0 : index
    %227 = arith.index_cast %226 : i32 to index
    %c1_197 = arith.constant 1 : index
    %c0_198 = arith.constant 0 : index
    %228 = vector.load %arg2[%c0_194, %c1_195, %c0_196, %227, %c1_197, %c0_198] : memref<1x2x2x10x9x4xbf16, #tpu.memory_space<vmem>>, vector<1x1x1x5x8x4xbf16>
    %229 = vector.shape_cast %228 : vector<1x1x1x5x8x4xbf16> to vector<1x5x8x4xbf16>
    %230 = arith.extf %229 : vector<1x5x8x4xbf16> to vector<1x5x8x4xf32>
    %231 = vector.shape_cast %230 : vector<1x5x8x4xf32> to vector<40x4xf32>
    %c2_199 = arith.constant 2 : index
    %c0_200 = arith.constant 0 : index
    %c0_201 = arith.constant 0 : index
    %232 = vector.load %arg3[%c2_199, %c0_200, %c0_201] : memref<9x4x32xbf16, #tpu.memory_space<vmem>>, vector<1x4x32xbf16>
    %233 = vector.shape_cast %232 : vector<1x4x32xbf16> to vector<4x32xbf16>
    %234 = arith.extf %233 : vector<4x32xbf16> to vector<4x32xf32>
    %cst_202 = arith.constant dense<0.000000e+00> : vector<40x32xf32>
    %235 = tpu.matmul %231, %234, %cst_202 {dimension_numbers = #tpu.dot_dimension_numbers<[1], [0], [0], [1], [0, 0, 1, 1], [], []>} : vector<40x4xf32>, vector<4x32xf32>, vector<40x32xf32> -> vector<40x32xf32>
    %236 = arith.addf %225, %235 : vector<40x32xf32>
    %c1_i32_203 = arith.constant 1 : i32
    %237 = arith.addi %0, %c1_i32_203 : i32
    %c0_204 = arith.constant 0 : index
    %c0_205 = arith.constant 0 : index
    %c0_206 = arith.constant 0 : index
    %238 = arith.index_cast %237 : i32 to index
    %c0_207 = arith.constant 0 : index
    %c0_208 = arith.constant 0 : index
    %239 = vector.load %arg2[%c0_204, %c0_205, %c0_206, %238, %c0_207, %c0_208] : memref<1x2x2x10x9x4xbf16, #tpu.memory_space<vmem>>, vector<1x1x1x5x8x4xbf16>
    %240 = vector.shape_cast %239 : vector<1x1x1x5x8x4xbf16> to vector<1x5x8x4xbf16>
    %241 = arith.extf %240 : vector<1x5x8x4xbf16> to vector<1x5x8x4xf32>
    %242 = vector.shape_cast %241 : vector<1x5x8x4xf32> to vector<40x4xf32>
    %c3_209 = arith.constant 3 : index
    %c0_210 = arith.constant 0 : index
    %c0_211 = arith.constant 0 : index
    %243 = vector.load %arg3[%c3_209, %c0_210, %c0_211] : memref<9x4x32xbf16, #tpu.memory_space<vmem>>, vector<1x4x32xbf16>
    %244 = vector.shape_cast %243 : vector<1x4x32xbf16> to vector<4x32xbf16>
    %245 = arith.extf %244 : vector<4x32xbf16> to vector<4x32xf32>
    %cst_212 = arith.constant dense<0.000000e+00> : vector<40x32xf32>
    %246 = tpu.matmul %242, %245, %cst_212 {dimension_numbers = #tpu.dot_dimension_numbers<[1], [0], [0], [1], [0, 0, 1, 1], [], []>} : vector<40x4xf32>, vector<4x32xf32>, vector<40x32xf32> -> vector<40x32xf32>
    %247 = arith.addf %236, %246 : vector<40x32xf32>
    %c1_i32_213 = arith.constant 1 : i32
    %248 = arith.addi %0, %c1_i32_213 : i32
    %c0_214 = arith.constant 0 : index
    %c0_215 = arith.constant 0 : index
    %c1_216 = arith.constant 1 : index
    %249 = arith.index_cast %248 : i32 to index
    %c0_217 = arith.constant 0 : index
    %c0_218 = arith.constant 0 : index
    %250 = vector.load %arg2[%c0_214, %c0_215, %c1_216, %249, %c0_217, %c0_218] : memref<1x2x2x10x9x4xbf16, #tpu.memory_space<vmem>>, vector<1x1x1x5x8x4xbf16>
    %251 = vector.shape_cast %250 : vector<1x1x1x5x8x4xbf16> to vector<1x5x8x4xbf16>
    %252 = arith.extf %251 : vector<1x5x8x4xbf16> to vector<1x5x8x4xf32>
    %253 = vector.shape_cast %252 : vector<1x5x8x4xf32> to vector<40x4xf32>
    %c4_219 = arith.constant 4 : index
    %c0_220 = arith.constant 0 : index
    %c0_221 = arith.constant 0 : index
    %254 = vector.load %arg3[%c4_219, %c0_220, %c0_221] : memref<9x4x32xbf16, #tpu.memory_space<vmem>>, vector<1x4x32xbf16>
    %255 = vector.shape_cast %254 : vector<1x4x32xbf16> to vector<4x32xbf16>
    %256 = arith.extf %255 : vector<4x32xbf16> to vector<4x32xf32>
    %cst_222 = arith.constant dense<0.000000e+00> : vector<40x32xf32>
    %257 = tpu.matmul %253, %256, %cst_222 {dimension_numbers = #tpu.dot_dimension_numbers<[1], [0], [0], [1], [0, 0, 1, 1], [], []>} : vector<40x4xf32>, vector<4x32xf32>, vector<40x32xf32> -> vector<40x32xf32>
    %258 = arith.addf %247, %257 : vector<40x32xf32>
    %c1_i32_223 = arith.constant 1 : i32
    %259 = arith.addi %0, %c1_i32_223 : i32
    %c0_224 = arith.constant 0 : index
    %c0_225 = arith.constant 0 : index
    %c0_226 = arith.constant 0 : index
    %260 = arith.index_cast %259 : i32 to index
    %c1_227 = arith.constant 1 : index
    %c0_228 = arith.constant 0 : index
    %261 = vector.load %arg2[%c0_224, %c0_225, %c0_226, %260, %c1_227, %c0_228] : memref<1x2x2x10x9x4xbf16, #tpu.memory_space<vmem>>, vector<1x1x1x5x8x4xbf16>
    %262 = vector.shape_cast %261 : vector<1x1x1x5x8x4xbf16> to vector<1x5x8x4xbf16>
    %263 = arith.extf %262 : vector<1x5x8x4xbf16> to vector<1x5x8x4xf32>
    %264 = vector.shape_cast %263 : vector<1x5x8x4xf32> to vector<40x4xf32>
    %c5_229 = arith.constant 5 : index
    %c0_230 = arith.constant 0 : index
    %c0_231 = arith.constant 0 : index
    %265 = vector.load %arg3[%c5_229, %c0_230, %c0_231] : memref<9x4x32xbf16, #tpu.memory_space<vmem>>, vector<1x4x32xbf16>
    %266 = vector.shape_cast %265 : vector<1x4x32xbf16> to vector<4x32xbf16>
    %267 = arith.extf %266 : vector<4x32xbf16> to vector<4x32xf32>
    %cst_232 = arith.constant dense<0.000000e+00> : vector<40x32xf32>
    %268 = tpu.matmul %264, %267, %cst_232 {dimension_numbers = #tpu.dot_dimension_numbers<[1], [0], [0], [1], [0, 0, 1, 1], [], []>} : vector<40x4xf32>, vector<4x32xf32>, vector<40x32xf32> -> vector<40x32xf32>
    %269 = arith.addf %258, %268 : vector<40x32xf32>
    %c1_i32_233 = arith.constant 1 : i32
    %270 = arith.addi %0, %c1_i32_233 : i32
    %c0_234 = arith.constant 0 : index
    %c1_235 = arith.constant 1 : index
    %c0_236 = arith.constant 0 : index
    %271 = arith.index_cast %270 : i32 to index
    %c0_237 = arith.constant 0 : index
    %c0_238 = arith.constant 0 : index
    %272 = vector.load %arg2[%c0_234, %c1_235, %c0_236, %271, %c0_237, %c0_238] : memref<1x2x2x10x9x4xbf16, #tpu.memory_space<vmem>>, vector<1x1x1x5x8x4xbf16>
    %273 = vector.shape_cast %272 : vector<1x1x1x5x8x4xbf16> to vector<1x5x8x4xbf16>
    %274 = arith.extf %273 : vector<1x5x8x4xbf16> to vector<1x5x8x4xf32>
    %275 = vector.shape_cast %274 : vector<1x5x8x4xf32> to vector<40x4xf32>
    %c6_239 = arith.constant 6 : index
    %c0_240 = arith.constant 0 : index
    %c0_241 = arith.constant 0 : index
    %276 = vector.load %arg3[%c6_239, %c0_240, %c0_241] : memref<9x4x32xbf16, #tpu.memory_space<vmem>>, vector<1x4x32xbf16>
    %277 = vector.shape_cast %276 : vector<1x4x32xbf16> to vector<4x32xbf16>
    %278 = arith.extf %277 : vector<4x32xbf16> to vector<4x32xf32>
    %cst_242 = arith.constant dense<0.000000e+00> : vector<40x32xf32>
    %279 = tpu.matmul %275, %278, %cst_242 {dimension_numbers = #tpu.dot_dimension_numbers<[1], [0], [0], [1], [0, 0, 1, 1], [], []>} : vector<40x4xf32>, vector<4x32xf32>, vector<40x32xf32> -> vector<40x32xf32>
    %280 = arith.addf %269, %279 : vector<40x32xf32>
    %c1_i32_243 = arith.constant 1 : i32
    %281 = arith.addi %0, %c1_i32_243 : i32
    %c0_244 = arith.constant 0 : index
    %c1_245 = arith.constant 1 : index
    %c1_246 = arith.constant 1 : index
    %282 = arith.index_cast %281 : i32 to index
    %c0_247 = arith.constant 0 : index
    %c0_248 = arith.constant 0 : index
    %283 = vector.load %arg2[%c0_244, %c1_245, %c1_246, %282, %c0_247, %c0_248] : memref<1x2x2x10x9x4xbf16, #tpu.memory_space<vmem>>, vector<1x1x1x5x8x4xbf16>
    %284 = vector.shape_cast %283 : vector<1x1x1x5x8x4xbf16> to vector<1x5x8x4xbf16>
    %285 = arith.extf %284 : vector<1x5x8x4xbf16> to vector<1x5x8x4xf32>
    %286 = vector.shape_cast %285 : vector<1x5x8x4xf32> to vector<40x4xf32>
    %c7_249 = arith.constant 7 : index
    %c0_250 = arith.constant 0 : index
    %c0_251 = arith.constant 0 : index
    %287 = vector.load %arg3[%c7_249, %c0_250, %c0_251] : memref<9x4x32xbf16, #tpu.memory_space<vmem>>, vector<1x4x32xbf16>
    %288 = vector.shape_cast %287 : vector<1x4x32xbf16> to vector<4x32xbf16>
    %289 = arith.extf %288 : vector<4x32xbf16> to vector<4x32xf32>
    %cst_252 = arith.constant dense<0.000000e+00> : vector<40x32xf32>
    %290 = tpu.matmul %286, %289, %cst_252 {dimension_numbers = #tpu.dot_dimension_numbers<[1], [0], [0], [1], [0, 0, 1, 1], [], []>} : vector<40x4xf32>, vector<4x32xf32>, vector<40x32xf32> -> vector<40x32xf32>
    %291 = arith.addf %280, %290 : vector<40x32xf32>
    %c1_i32_253 = arith.constant 1 : i32
    %292 = arith.addi %0, %c1_i32_253 : i32
    %c0_254 = arith.constant 0 : index
    %c1_255 = arith.constant 1 : index
    %c0_256 = arith.constant 0 : index
    %293 = arith.index_cast %292 : i32 to index
    %c1_257 = arith.constant 1 : index
    %c0_258 = arith.constant 0 : index
    %294 = vector.load %arg2[%c0_254, %c1_255, %c0_256, %293, %c1_257, %c0_258] : memref<1x2x2x10x9x4xbf16, #tpu.memory_space<vmem>>, vector<1x1x1x5x8x4xbf16>
    %295 = vector.shape_cast %294 : vector<1x1x1x5x8x4xbf16> to vector<1x5x8x4xbf16>
    %296 = arith.extf %295 : vector<1x5x8x4xbf16> to vector<1x5x8x4xf32>
    %297 = vector.shape_cast %296 : vector<1x5x8x4xf32> to vector<40x4xf32>
    %c8_259 = arith.constant 8 : index
    %c0_260 = arith.constant 0 : index
    %c0_261 = arith.constant 0 : index
    %298 = vector.load %arg3[%c8_259, %c0_260, %c0_261] : memref<9x4x32xbf16, #tpu.memory_space<vmem>>, vector<1x4x32xbf16>
    %299 = vector.shape_cast %298 : vector<1x4x32xbf16> to vector<4x32xbf16>
    %300 = arith.extf %299 : vector<4x32xbf16> to vector<4x32xf32>
    %cst_262 = arith.constant dense<0.000000e+00> : vector<40x32xf32>
    %301 = tpu.matmul %297, %300, %cst_262 {dimension_numbers = #tpu.dot_dimension_numbers<[1], [0], [0], [1], [0, 0, 1, 1], [], []>} : vector<40x4xf32>, vector<4x32xf32>, vector<40x32xf32> -> vector<40x32xf32>
    %302 = arith.addf %291, %301 : vector<40x32xf32>
    %cst_263 = arith.constant 0.000000e+00 : f32
    %303 = vector.broadcast %cst_263 : f32 to vector<40x32xf32>
    %c0_i32_264 = arith.constant 0 : i32
    %304 = arith.addi %0, %c0_i32_264 : i32
    %c0_265 = arith.constant 0 : index
    %c1_266 = arith.constant 1 : index
    %c1_267 = arith.constant 1 : index
    %305 = arith.index_cast %304 : i32 to index
    %c0_268 = arith.constant 0 : index
    %c0_269 = arith.constant 0 : index
    %306 = vector.load %arg2[%c0_265, %c1_266, %c1_267, %305, %c0_268, %c0_269] : memref<1x2x2x10x9x4xbf16, #tpu.memory_space<vmem>>, vector<1x1x1x5x8x4xbf16>
    %307 = vector.shape_cast %306 : vector<1x1x1x5x8x4xbf16> to vector<1x5x8x4xbf16>
    %308 = arith.extf %307 : vector<1x5x8x4xbf16> to vector<1x5x8x4xf32>
    %309 = vector.shape_cast %308 : vector<1x5x8x4xf32> to vector<40x4xf32>
    %c0_270 = arith.constant 0 : index
    %c0_271 = arith.constant 0 : index
    %c0_272 = arith.constant 0 : index
    %310 = vector.load %arg3[%c0_270, %c0_271, %c0_272] : memref<9x4x32xbf16, #tpu.memory_space<vmem>>, vector<1x4x32xbf16>
    %311 = vector.shape_cast %310 : vector<1x4x32xbf16> to vector<4x32xbf16>
    %312 = arith.extf %311 : vector<4x32xbf16> to vector<4x32xf32>
    %cst_273 = arith.constant dense<0.000000e+00> : vector<40x32xf32>
    %313 = tpu.matmul %309, %312, %cst_273 {dimension_numbers = #tpu.dot_dimension_numbers<[1], [0], [0], [1], [0, 0, 1, 1], [], []>} : vector<40x4xf32>, vector<4x32xf32>, vector<40x32xf32> -> vector<40x32xf32>
    %314 = arith.addf %303, %313 : vector<40x32xf32>
    %c0_i32_274 = arith.constant 0 : i32
    %315 = arith.addi %0, %c0_i32_274 : i32
    %c0_275 = arith.constant 0 : index
    %c1_276 = arith.constant 1 : index
    %c0_277 = arith.constant 0 : index
    %316 = arith.index_cast %315 : i32 to index
    %c1_278 = arith.constant 1 : index
    %c0_279 = arith.constant 0 : index
    %317 = vector.load %arg2[%c0_275, %c1_276, %c0_277, %316, %c1_278, %c0_279] : memref<1x2x2x10x9x4xbf16, #tpu.memory_space<vmem>>, vector<1x1x1x5x8x4xbf16>
    %318 = vector.shape_cast %317 : vector<1x1x1x5x8x4xbf16> to vector<1x5x8x4xbf16>
    %319 = arith.extf %318 : vector<1x5x8x4xbf16> to vector<1x5x8x4xf32>
    %320 = vector.shape_cast %319 : vector<1x5x8x4xf32> to vector<40x4xf32>
    %c1_280 = arith.constant 1 : index
    %c0_281 = arith.constant 0 : index
    %c0_282 = arith.constant 0 : index
    %321 = vector.load %arg3[%c1_280, %c0_281, %c0_282] : memref<9x4x32xbf16, #tpu.memory_space<vmem>>, vector<1x4x32xbf16>
    %322 = vector.shape_cast %321 : vector<1x4x32xbf16> to vector<4x32xbf16>
    %323 = arith.extf %322 : vector<4x32xbf16> to vector<4x32xf32>
    %cst_283 = arith.constant dense<0.000000e+00> : vector<40x32xf32>
    %324 = tpu.matmul %320, %323, %cst_283 {dimension_numbers = #tpu.dot_dimension_numbers<[1], [0], [0], [1], [0, 0, 1, 1], [], []>} : vector<40x4xf32>, vector<4x32xf32>, vector<40x32xf32> -> vector<40x32xf32>
    %325 = arith.addf %314, %324 : vector<40x32xf32>
    %c0_i32_284 = arith.constant 0 : i32
    %326 = arith.addi %0, %c0_i32_284 : i32
    %c0_285 = arith.constant 0 : index
    %c1_286 = arith.constant 1 : index
    %c1_287 = arith.constant 1 : index
    %327 = arith.index_cast %326 : i32 to index
    %c1_288 = arith.constant 1 : index
    %c0_289 = arith.constant 0 : index
    %328 = vector.load %arg2[%c0_285, %c1_286, %c1_287, %327, %c1_288, %c0_289] : memref<1x2x2x10x9x4xbf16, #tpu.memory_space<vmem>>, vector<1x1x1x5x8x4xbf16>
    %329 = vector.shape_cast %328 : vector<1x1x1x5x8x4xbf16> to vector<1x5x8x4xbf16>
    %330 = arith.extf %329 : vector<1x5x8x4xbf16> to vector<1x5x8x4xf32>
    %331 = vector.shape_cast %330 : vector<1x5x8x4xf32> to vector<40x4xf32>
    %c2_290 = arith.constant 2 : index
    %c0_291 = arith.constant 0 : index
    %c0_292 = arith.constant 0 : index
    %332 = vector.load %arg3[%c2_290, %c0_291, %c0_292] : memref<9x4x32xbf16, #tpu.memory_space<vmem>>, vector<1x4x32xbf16>
    %333 = vector.shape_cast %332 : vector<1x4x32xbf16> to vector<4x32xbf16>
    %334 = arith.extf %333 : vector<4x32xbf16> to vector<4x32xf32>
    %cst_293 = arith.constant dense<0.000000e+00> : vector<40x32xf32>
    %335 = tpu.matmul %331, %334, %cst_293 {dimension_numbers = #tpu.dot_dimension_numbers<[1], [0], [0], [1], [0, 0, 1, 1], [], []>} : vector<40x4xf32>, vector<4x32xf32>, vector<40x32xf32> -> vector<40x32xf32>
    %336 = arith.addf %325, %335 : vector<40x32xf32>
    %c1_i32_294 = arith.constant 1 : i32
    %337 = arith.addi %0, %c1_i32_294 : i32
    %c0_295 = arith.constant 0 : index
    %c0_296 = arith.constant 0 : index
    %c1_297 = arith.constant 1 : index
    %338 = arith.index_cast %337 : i32 to index
    %c0_298 = arith.constant 0 : index
    %c0_299 = arith.constant 0 : index
    %339 = vector.load %arg2[%c0_295, %c0_296, %c1_297, %338, %c0_298, %c0_299] : memref<1x2x2x10x9x4xbf16, #tpu.memory_space<vmem>>, vector<1x1x1x5x8x4xbf16>
    %340 = vector.shape_cast %339 : vector<1x1x1x5x8x4xbf16> to vector<1x5x8x4xbf16>
    %341 = arith.extf %340 : vector<1x5x8x4xbf16> to vector<1x5x8x4xf32>
    %342 = vector.shape_cast %341 : vector<1x5x8x4xf32> to vector<40x4xf32>
    %c3_300 = arith.constant 3 : index
    %c0_301 = arith.constant 0 : index
    %c0_302 = arith.constant 0 : index
    %343 = vector.load %arg3[%c3_300, %c0_301, %c0_302] : memref<9x4x32xbf16, #tpu.memory_space<vmem>>, vector<1x4x32xbf16>
    %344 = vector.shape_cast %343 : vector<1x4x32xbf16> to vector<4x32xbf16>
    %345 = arith.extf %344 : vector<4x32xbf16> to vector<4x32xf32>
    %cst_303 = arith.constant dense<0.000000e+00> : vector<40x32xf32>
    %346 = tpu.matmul %342, %345, %cst_303 {dimension_numbers = #tpu.dot_dimension_numbers<[1], [0], [0], [1], [0, 0, 1, 1], [], []>} : vector<40x4xf32>, vector<4x32xf32>, vector<40x32xf32> -> vector<40x32xf32>
    %347 = arith.addf %336, %346 : vector<40x32xf32>
    %c1_i32_304 = arith.constant 1 : i32
    %348 = arith.addi %0, %c1_i32_304 : i32
    %c0_305 = arith.constant 0 : index
    %c0_306 = arith.constant 0 : index
    %c0_307 = arith.constant 0 : index
    %349 = arith.index_cast %348 : i32 to index
    %c1_308 = arith.constant 1 : index
    %c0_309 = arith.constant 0 : index
    %350 = vector.load %arg2[%c0_305, %c0_306, %c0_307, %349, %c1_308, %c0_309] : memref<1x2x2x10x9x4xbf16, #tpu.memory_space<vmem>>, vector<1x1x1x5x8x4xbf16>
    %351 = vector.shape_cast %350 : vector<1x1x1x5x8x4xbf16> to vector<1x5x8x4xbf16>
    %352 = arith.extf %351 : vector<1x5x8x4xbf16> to vector<1x5x8x4xf32>
    %353 = vector.shape_cast %352 : vector<1x5x8x4xf32> to vector<40x4xf32>
    %c4_310 = arith.constant 4 : index
    %c0_311 = arith.constant 0 : index
    %c0_312 = arith.constant 0 : index
    %354 = vector.load %arg3[%c4_310, %c0_311, %c0_312] : memref<9x4x32xbf16, #tpu.memory_space<vmem>>, vector<1x4x32xbf16>
    %355 = vector.shape_cast %354 : vector<1x4x32xbf16> to vector<4x32xbf16>
    %356 = arith.extf %355 : vector<4x32xbf16> to vector<4x32xf32>
    %cst_313 = arith.constant dense<0.000000e+00> : vector<40x32xf32>
    %357 = tpu.matmul %353, %356, %cst_313 {dimension_numbers = #tpu.dot_dimension_numbers<[1], [0], [0], [1], [0, 0, 1, 1], [], []>} : vector<40x4xf32>, vector<4x32xf32>, vector<40x32xf32> -> vector<40x32xf32>
    %358 = arith.addf %347, %357 : vector<40x32xf32>
    %c1_i32_314 = arith.constant 1 : i32
    %359 = arith.addi %0, %c1_i32_314 : i32
    %c0_315 = arith.constant 0 : index
    %c0_316 = arith.constant 0 : index
    %c1_317 = arith.constant 1 : index
    %360 = arith.index_cast %359 : i32 to index
    %c1_318 = arith.constant 1 : index
    %c0_319 = arith.constant 0 : index
    %361 = vector.load %arg2[%c0_315, %c0_316, %c1_317, %360, %c1_318, %c0_319] : memref<1x2x2x10x9x4xbf16, #tpu.memory_space<vmem>>, vector<1x1x1x5x8x4xbf16>
    %362 = vector.shape_cast %361 : vector<1x1x1x5x8x4xbf16> to vector<1x5x8x4xbf16>
    %363 = arith.extf %362 : vector<1x5x8x4xbf16> to vector<1x5x8x4xf32>
    %364 = vector.shape_cast %363 : vector<1x5x8x4xf32> to vector<40x4xf32>
    %c5_320 = arith.constant 5 : index
    %c0_321 = arith.constant 0 : index
    %c0_322 = arith.constant 0 : index
    %365 = vector.load %arg3[%c5_320, %c0_321, %c0_322] : memref<9x4x32xbf16, #tpu.memory_space<vmem>>, vector<1x4x32xbf16>
    %366 = vector.shape_cast %365 : vector<1x4x32xbf16> to vector<4x32xbf16>
    %367 = arith.extf %366 : vector<4x32xbf16> to vector<4x32xf32>
    %cst_323 = arith.constant dense<0.000000e+00> : vector<40x32xf32>
    %368 = tpu.matmul %364, %367, %cst_323 {dimension_numbers = #tpu.dot_dimension_numbers<[1], [0], [0], [1], [0, 0, 1, 1], [], []>} : vector<40x4xf32>, vector<4x32xf32>, vector<40x32xf32> -> vector<40x32xf32>
    %369 = arith.addf %358, %368 : vector<40x32xf32>
    %c1_i32_324 = arith.constant 1 : i32
    %370 = arith.addi %0, %c1_i32_324 : i32
    %c0_325 = arith.constant 0 : index
    %c1_326 = arith.constant 1 : index
    %c1_327 = arith.constant 1 : index
    %371 = arith.index_cast %370 : i32 to index
    %c0_328 = arith.constant 0 : index
    %c0_329 = arith.constant 0 : index
    %372 = vector.load %arg2[%c0_325, %c1_326, %c1_327, %371, %c0_328, %c0_329] : memref<1x2x2x10x9x4xbf16, #tpu.memory_space<vmem>>, vector<1x1x1x5x8x4xbf16>
    %373 = vector.shape_cast %372 : vector<1x1x1x5x8x4xbf16> to vector<1x5x8x4xbf16>
    %374 = arith.extf %373 : vector<1x5x8x4xbf16> to vector<1x5x8x4xf32>
    %375 = vector.shape_cast %374 : vector<1x5x8x4xf32> to vector<40x4xf32>
    %c6_330 = arith.constant 6 : index
    %c0_331 = arith.constant 0 : index
    %c0_332 = arith.constant 0 : index
    %376 = vector.load %arg3[%c6_330, %c0_331, %c0_332] : memref<9x4x32xbf16, #tpu.memory_space<vmem>>, vector<1x4x32xbf16>
    %377 = vector.shape_cast %376 : vector<1x4x32xbf16> to vector<4x32xbf16>
    %378 = arith.extf %377 : vector<4x32xbf16> to vector<4x32xf32>
    %cst_333 = arith.constant dense<0.000000e+00> : vector<40x32xf32>
    %379 = tpu.matmul %375, %378, %cst_333 {dimension_numbers = #tpu.dot_dimension_numbers<[1], [0], [0], [1], [0, 0, 1, 1], [], []>} : vector<40x4xf32>, vector<4x32xf32>, vector<40x32xf32> -> vector<40x32xf32>
    %380 = arith.addf %369, %379 : vector<40x32xf32>
    %c1_i32_334 = arith.constant 1 : i32
    %381 = arith.addi %0, %c1_i32_334 : i32
    %c0_335 = arith.constant 0 : index
    %c1_336 = arith.constant 1 : index
    %c0_337 = arith.constant 0 : index
    %382 = arith.index_cast %381 : i32 to index
    %c1_338 = arith.constant 1 : index
    %c0_339 = arith.constant 0 : index
    %383 = vector.load %arg2[%c0_335, %c1_336, %c0_337, %382, %c1_338, %c0_339] : memref<1x2x2x10x9x4xbf16, #tpu.memory_space<vmem>>, vector<1x1x1x5x8x4xbf16>
    %384 = vector.shape_cast %383 : vector<1x1x1x5x8x4xbf16> to vector<1x5x8x4xbf16>
    %385 = arith.extf %384 : vector<1x5x8x4xbf16> to vector<1x5x8x4xf32>
    %386 = vector.shape_cast %385 : vector<1x5x8x4xf32> to vector<40x4xf32>
    %c7_340 = arith.constant 7 : index
    %c0_341 = arith.constant 0 : index
    %c0_342 = arith.constant 0 : index
    %387 = vector.load %arg3[%c7_340, %c0_341, %c0_342] : memref<9x4x32xbf16, #tpu.memory_space<vmem>>, vector<1x4x32xbf16>
    %388 = vector.shape_cast %387 : vector<1x4x32xbf16> to vector<4x32xbf16>
    %389 = arith.extf %388 : vector<4x32xbf16> to vector<4x32xf32>
    %cst_343 = arith.constant dense<0.000000e+00> : vector<40x32xf32>
    %390 = tpu.matmul %386, %389, %cst_343 {dimension_numbers = #tpu.dot_dimension_numbers<[1], [0], [0], [1], [0, 0, 1, 1], [], []>} : vector<40x4xf32>, vector<4x32xf32>, vector<40x32xf32> -> vector<40x32xf32>
    %391 = arith.addf %380, %390 : vector<40x32xf32>
    %c1_i32_344 = arith.constant 1 : i32
    %392 = arith.addi %0, %c1_i32_344 : i32
    %c0_345 = arith.constant 0 : index
    %c1_346 = arith.constant 1 : index
    %c1_347 = arith.constant 1 : index
    %393 = arith.index_cast %392 : i32 to index
    %c1_348 = arith.constant 1 : index
    %c0_349 = arith.constant 0 : index
    %394 = vector.load %arg2[%c0_345, %c1_346, %c1_347, %393, %c1_348, %c0_349] : memref<1x2x2x10x9x4xbf16, #tpu.memory_space<vmem>>, vector<1x1x1x5x8x4xbf16>
    %395 = vector.shape_cast %394 : vector<1x1x1x5x8x4xbf16> to vector<1x5x8x4xbf16>
    %396 = arith.extf %395 : vector<1x5x8x4xbf16> to vector<1x5x8x4xf32>
    %397 = vector.shape_cast %396 : vector<1x5x8x4xf32> to vector<40x4xf32>
    %c8_350 = arith.constant 8 : index
    %c0_351 = arith.constant 0 : index
    %c0_352 = arith.constant 0 : index
    %398 = vector.load %arg3[%c8_350, %c0_351, %c0_352] : memref<9x4x32xbf16, #tpu.memory_space<vmem>>, vector<1x4x32xbf16>
    %399 = vector.shape_cast %398 : vector<1x4x32xbf16> to vector<4x32xbf16>
    %400 = arith.extf %399 : vector<4x32xbf16> to vector<4x32xf32>
    %cst_353 = arith.constant dense<0.000000e+00> : vector<40x32xf32>
    %401 = tpu.matmul %397, %400, %cst_353 {dimension_numbers = #tpu.dot_dimension_numbers<[1], [0], [0], [1], [0, 0, 1, 1], [], []>} : vector<40x4xf32>, vector<4x32xf32>, vector<40x32xf32> -> vector<40x32xf32>
    %402 = arith.addf %391, %401 : vector<40x32xf32>
    %403 = tpu.iota {dimensions = array<i32: 0>} : vector<32x1xi32>
    %404 = tpu.iota {dimensions = array<i32: 0>} : vector<40x1xi32>
    %405 = arith.maximumf %101, %202 : vector<32x32xf32>
    %c8_i32 = arith.constant 8 : i32
    %c0_i32_354 = arith.constant 0 : i32
    %406 = arith.cmpi eq, %c8_i32, %c0_i32_354 : i32
    %c1_i32_355 = arith.constant 1 : i32
    %407 = arith.select %406, %c1_i32_355, %c8_i32 : i32
    %408 = vector.broadcast %407 : i32 to vector<32x1xi32>
    %409 = arith.remsi %403, %408 : vector<32x1xi32>
    %c0_i32_356 = arith.constant 0 : i32
    %410 = vector.broadcast %c0_i32_356 : i32 to vector<32x1xi32>
    %411 = arith.cmpi ne, %409, %410 : vector<32x1xi32>
    %c0_i32_357 = arith.constant 0 : i32
    %412 = vector.broadcast %c0_i32_357 : i32 to vector<32x1xi32>
    %413 = arith.cmpi slt, %409, %412 : vector<32x1xi32>
    %c0_i32_358 = arith.constant 0 : i32
    %414 = arith.cmpi slt, %407, %c0_i32_358 : i32
    %415 = vector.broadcast %414 : i1 to vector<32x1xi1>
    %416 = vector.broadcast %415 : vector<32x1xi1> to vector<32x1xi1>
    %417 = arith.xori %413, %416 : vector<32x1xi1>
    %418 = arith.andi %417, %411 : vector<32x1xi1>
    %419 = vector.broadcast %407 : i32 to vector<32x1xi32>
    %420 = arith.addi %409, %419 : vector<32x1xi32>
    %421 = arith.select %418, %420, %409 : vector<32x1xi1>, vector<32x1xi32>
    %c0_i32_359 = arith.constant 0 : i32
    %422 = vector.broadcast %c0_i32_359 : i32 to vector<32x1xi32>
    %423 = arith.cmpi eq, %421, %422 : vector<32x1xi32>
    %c1_i32_360 = arith.constant 1 : i32
    %424 = tpu.dynamic_rotate %202 by %c1_i32_360 dim 0 : vector<32x32xf32>, i32 -> vector<32x32xf32>
    %cst_361 = arith.constant 0xFF800000 : f32
    %425 = vector.shape_cast %423 : vector<32x1xi1> to vector<32x1xi1>
    %426 = vector.broadcast %425 : vector<32x1xi1> to vector<32x32xi1>
    %427 = vector.broadcast %cst_361 : f32 to vector<32x32xf32>
    %428 = arith.select %426, %427, %424 : vector<32x32xi1>, vector<32x32xf32>
    %429 = arith.maximumf %405, %428 : vector<32x32xf32>
    %430 = arith.maximumf %302, %402 : vector<40x32xf32>
    %c8_i32_362 = arith.constant 8 : i32
    %c0_i32_363 = arith.constant 0 : i32
    %431 = arith.cmpi eq, %c8_i32_362, %c0_i32_363 : i32
    %c1_i32_364 = arith.constant 1 : i32
    %432 = arith.select %431, %c1_i32_364, %c8_i32_362 : i32
    %433 = vector.broadcast %432 : i32 to vector<40x1xi32>
    %434 = arith.remsi %404, %433 : vector<40x1xi32>
    %c0_i32_365 = arith.constant 0 : i32
    %435 = vector.broadcast %c0_i32_365 : i32 to vector<40x1xi32>
    %436 = arith.cmpi ne, %434, %435 : vector<40x1xi32>
    %c0_i32_366 = arith.constant 0 : i32
    %437 = vector.broadcast %c0_i32_366 : i32 to vector<40x1xi32>
    %438 = arith.cmpi slt, %434, %437 : vector<40x1xi32>
    %c0_i32_367 = arith.constant 0 : i32
    %439 = arith.cmpi slt, %432, %c0_i32_367 : i32
    %440 = vector.broadcast %439 : i1 to vector<40x1xi1>
    %441 = vector.broadcast %440 : vector<40x1xi1> to vector<40x1xi1>
    %442 = arith.xori %438, %441 : vector<40x1xi1>
    %443 = arith.andi %442, %436 : vector<40x1xi1>
    %444 = vector.broadcast %432 : i32 to vector<40x1xi32>
    %445 = arith.addi %434, %444 : vector<40x1xi32>
    %446 = arith.select %443, %445, %434 : vector<40x1xi1>, vector<40x1xi32>
    %c0_i32_368 = arith.constant 0 : i32
    %447 = vector.broadcast %c0_i32_368 : i32 to vector<40x1xi32>
    %448 = arith.cmpi eq, %446, %447 : vector<40x1xi32>
    %c1_i32_369 = arith.constant 1 : i32
    %449 = tpu.dynamic_rotate %402 by %c1_i32_369 dim 0 : vector<40x32xf32>, i32 -> vector<40x32xf32>
    %cst_370 = arith.constant 0xFF800000 : f32
    %450 = vector.shape_cast %448 : vector<40x1xi1> to vector<40x1xi1>
    %451 = vector.broadcast %450 : vector<40x1xi1> to vector<40x32xi1>
    %452 = vector.broadcast %cst_370 : f32 to vector<40x32xf32>
    %453 = arith.select %451, %452, %449 : vector<40x32xi1>, vector<40x32xf32>
    %454 = arith.maximumf %430, %453 : vector<40x32xf32>
    %455 = vector.shape_cast %454 : vector<40x32xf32> to vector<1x40x32xf32>
    %456 = vector.extract_strided_slice %455 {offsets = [0, 8, 0], sizes = [1, 32, 32], strides = [1, 1, 1]} : vector<1x40x32xf32> to vector<1x32x32xf32>
    %457 = vector.shape_cast %456 : vector<1x32x32xf32> to vector<32x32xf32>
    %458 = vector.extract_strided_slice %455 {offsets = [0, 0, 0], sizes = [1, 32, 32], strides = [1, 1, 1]} : vector<1x40x32xf32> to vector<1x32x32xf32>
    %459 = vector.shape_cast %458 : vector<1x32x32xf32> to vector<32x32xf32>
    %c32_i32 = arith.constant 32 : i32
    %c0_i32_371 = arith.constant 0 : i32
    %460 = arith.cmpi eq, %c32_i32, %c0_i32_371 : i32
    %c1_i32_372 = arith.constant 1 : i32
    %461 = arith.select %460, %c1_i32_372, %c32_i32 : i32
    %462 = vector.broadcast %461 : i32 to vector<32x1xi32>
    %463 = arith.remsi %403, %462 : vector<32x1xi32>
    %c0_i32_373 = arith.constant 0 : i32
    %464 = vector.broadcast %c0_i32_373 : i32 to vector<32x1xi32>
    %465 = arith.cmpi ne, %463, %464 : vector<32x1xi32>
    %c0_i32_374 = arith.constant 0 : i32
    %466 = vector.broadcast %c0_i32_374 : i32 to vector<32x1xi32>
    %467 = arith.cmpi slt, %463, %466 : vector<32x1xi32>
    %c0_i32_375 = arith.constant 0 : i32
    %468 = arith.cmpi slt, %461, %c0_i32_375 : i32
    %469 = vector.broadcast %468 : i1 to vector<32x1xi1>
    %470 = vector.broadcast %469 : vector<32x1xi1> to vector<32x1xi1>
    %471 = arith.xori %467, %470 : vector<32x1xi1>
    %472 = arith.andi %471, %465 : vector<32x1xi1>
    %473 = vector.broadcast %461 : i32 to vector<32x1xi32>
    %474 = arith.addi %463, %473 : vector<32x1xi32>
    %475 = arith.select %472, %474, %463 : vector<32x1xi1>, vector<32x1xi32>
    %c8_i32_376 = arith.constant 8 : i32
    %476 = vector.broadcast %c8_i32_376 : i32 to vector<32x1xi32>
    %477 = arith.cmpi slt, %475, %476 : vector<32x1xi32>
    %c0_i32_377 = arith.constant 0 : i32
    %478 = arith.cmpi eq, %arg1, %c0_i32_377 : i32
    %479 = vector.broadcast %478 : i1 to vector<32x1xi1>
    %480 = arith.andi %477, %479 : vector<32x1xi1>
    %cst_378 = arith.constant 0xFF800000 : f32
    %481 = vector.shape_cast %480 : vector<32x1xi1> to vector<32x1xi1>
    %482 = vector.broadcast %481 : vector<32x1xi1> to vector<32x32xi1>
    %483 = vector.broadcast %cst_378 : f32 to vector<32x32xf32>
    %484 = arith.select %482, %483, %459 : vector<32x32xi1>, vector<32x32xf32>
    %485 = arith.maximumf %429, %457 : vector<32x32xf32>
    %486 = arith.maximumf %485, %484 : vector<32x32xf32>
    %c0_379 = arith.constant 0 : index
    %c0_380 = arith.constant 0 : index
    %487 = vector.load %arg4[%c0_379, %c0_380] : memref<1x32xf32, #tpu.memory_space<vmem>>, vector<1x32xf32>
    %488 = vector.broadcast %487 : vector<1x32xf32> to vector<32x32xf32>
    %489 = arith.addf %486, %488 : vector<32x32xf32>
    %490 = vector.shape_cast %489 : vector<32x32xf32> to vector<1x32x32xf32>
    %c0_381 = arith.constant 0 : index
    %c0_382 = arith.constant 0 : index
    %c0_383 = arith.constant 0 : index
    %491 = vector.load %arg5[%c0_381, %c0_382, %c0_383] : memref<1x32x32xf32, #tpu.memory_space<vmem>>, vector<1x32x32xf32>
    tpu.vector_store %arg5[%c0_381, %c0_382, %c0_383], %490 {strides = array<i32>} : memref<1x32x32xf32, #tpu.memory_space<vmem>>, vector<1x32x32xf32>,
    return
  }
  func.func @transform_0(%arg0: i32, %arg1: i32) -> (i32, i32, i32, i32, i32, i32) {
    %c0_i32 = arith.constant 0 : i32
    %c0_i32_0 = arith.constant 0 : i32
    %c0_i32_1 = arith.constant 0 : i32
    %c0_i32_2 = arith.constant 0 : i32
    %c0_i32_3 = arith.constant 0 : i32
    %c0_i32_4 = arith.constant 0 : i32
    return %arg0, %c0_i32, %c0_i32_0, %c0_i32_1, %c0_i32_2, %c0_i32_3 : i32, i32, i32, i32, i32, i32
  }
  func.func @transform_1(%arg0: i32, %arg1: i32) -> (i32, i32, i32) {
    %c0_i32 = arith.constant 0 : i32
    %c0_i32_0 = arith.constant 0 : i32
    %c0_i32_1 = arith.constant 0 : i32
    %c0_i32_2 = arith.constant 0 : i32
    return %c0_i32, %c0_i32_0, %c0_i32_1 : i32, i32, i32
  }
  func.func @transform_2(%arg0: i32, %arg1: i32) -> (i32, i32) {
    %c0_i32 = arith.constant 0 : i32
    %c0_i32_0 = arith.constant 0 : i32
    %c0_i32_1 = arith.constant 0 : i32
    return %c0_i32, %c0_i32_0 : i32, i32
  }
  func.func @transform_3(%arg0: i32, %arg1: i32) -> (i32, i32, i32) {
    %c0_i32 = arith.constant 0 : i32
    %c0_i32_0 = arith.constant 0 : i32
    return %arg0, %arg1, %c0_i32 : i32, i32, i32
  }
}

</mosaic_0001>

<bundles_post_ra>
// kernel: tpu_custom_call.1
= control target key start
LH: loop header
LB: loop body
LE: loop exit
PB: predicated region body
PF: predicated region fallthrough
CT: control target
= control target key end

     0   :  { %s3220_s12 = smov 0   ;;  %s3222_s13 = smov 0   ;;  %s4255_s0 = inlined_call_operand.vmem [shape: bf16[2,2,2,10,9,4], index: 0, kind: input, shape index: {}]   ;;  %s4256_s1 = inlined_call_operand.vmem [shape: bf16[9,4,32], index: 1, kind: input, shape index: {}]   ;;  %s4257_s2 = inlined_call_operand.vmem [shape: f32[1,32], index: 2, kind: input, shape index: {}]   ;;  %s4258_s3 = inlined_call_operand.vmem [shape: f32[2,64,32], index: 3, kind: output, shape index: {}]  }
   0x1   :  { %s3224_s14 = smov 0   ;;  %s3226_s15 = smov 0  }
   0x2   :  { %s3228_s16 = smov 0  }
   0x3 LB: > { %s22_s17 = sadd.s32 1, %s3190_s14  ;;  %s25_s18 = sadd.s32 1, %s3194_s15  ;;  %s3198_s16 = sphi %s3228_s16, %s13_s16   ;;  %s3194_s15 = sphi %s3226_s15, %s4284_s15   ;;  %s3190_s14 = sphi %s3224_s14, %s4283_s14   ;;  %s3186_s13 = sphi %s3222_s13, %s4282_s13   ;;  %s3182_s12 = sphi %s3220_s12, %s4281_s12  }
   0x4   : > { %p23_p0 = scmp.ge.s32.totalorder %s22_s17, 2  ;;  %p2711_p1 = scmp.ge.s32.totalorder %s3198_s16, 1 }
   0x5   : > { %p151_p2 = scmp.lt.s32.totalorder %s3198_s16, 5 }
   0x6   : > { %s4286_s17 = smov (%p23_p0, %s22_s17), 0  ;;  %s4288_s18 = smov (!%p23_p0, %s25_s18), %s3194_s15 }
   0x7   : > { %p152_p3 = pnand %p2711_p1, %p151_p2  ;;  %p27_p4 = scmp.ge.s32.totalorder %s4288_s18, 2 }
   0x8   : > { %p179_p5 = scmp.lt.s32.totalorder (!%p152_p3), %s3186_s13, 1  ;;  %s3106_s9 = sshll.u32 (!%p152_p3), %s3182_s12, 5 }
   0x9   : > { %s4290_s18 = smov (%p27_p4, %s4288_s18), 0  ;;  %155 = sbr.rel (%p152_p3) target bundleno = 497 (0x1f1), region = 32 }
   0xa   : > { %s2713_s23 = sshll.u32 (!%p152_p3), %s3182_s12, 2  ;;  %p2546_p7 = scmp.eq.s32.totalorder (!%p152_p3), %s3182_s12, 0 }
   0xb   : > { %p187_p6 = scmp.lt.s32.totalorder (!%p152_p3), %s2713_s23, 7 }
   0xe   : > { %v2729_v0 = vld [vmem:[%s4256_s1 + $0x2] sm:$0x3]  ;;  %vm236_vm0 = vcmask 1043456   ;;  %v207_v2 = vld [vmem:[%s4256_s1] sm:$0x3]  ;;  %s4292_s13 = smov (!%p179_p5, %s3186_s13), 1 }
   0xf   : > { %v3255_v1 = vunpack.c.l.bf16 %v2729_v0  ;;  %v2748_v3 = vld [vmem:[%s4256_s1 + $0x4] sm:$0x3]  ;;  %v2761_v4 = vld [vmem:[%s4256_s1 + $0x6] sm:$0x3]  ;;  %v3268_v5 = vunpack.c.l.bf16 %v207_v2  ;;  %v2800_v8 = vld [vmem:[%s4256_s1 + $0xc] sm:$0x3] }
  0x10   : > { %v3270_v6 = vunpack.c.l.bf16 %v2748_v3  ;;  %v3272_v7 = vunpack.c.l.bf16 %v2761_v4  ;;  %v2813_v9 = vld [vmem:[%s4256_s1 + $0xe] sm:$0x3]  ;;  %v3282_v10 = vunpack.c.l.bf16 %v2800_v8  ;;  %v2774_v12 = vld [vmem:[%s4256_s1 + $0x8] sm:$0x3]  ;;  %v2788_v13 = vld [vmem:[%s4256_s1 + $0xa] sm:$0x3] }
  0x11   : > { %2730 = vmatpush.msk.msra.mxu0 %vm236_vm0, %v3255_v1  ;;  %v3284_v11 = vunpack.c.l.bf16 %v2813_v9  ;;  %s3118_s8 = smul.u32 320, %s4292_s13  ;;  %2735 = vmatpush.msk.msra.mxu1 %vm236_vm0, %v3268_v5  ;;  %v3298_v14 = vunpack.c.l.bf16 %v2774_v12  ;;  %v3300_v15 = vunpack.c.l.bf16 %v2788_v13  ;;  %vm223_vm1 = vcmask 31744   ;;  %v2827_v51 = vld [vmem:[%s4256_s1 + $0x10] sm:$0x3]  ;;  %s4294_s23 = smov (!%p187_p6, %s2713_s23), 7 }
  0x12   : > { %2749 = vmatpush.msk.msra.mxu2 %vm236_vm0, %v3270_v6  ;;  %2762 = vmatpush.msk.msra.mxu3 %vm236_vm0, %v3272_v7  ;;  %vm337_vm2 = vcmask 1046528   ;;  %v3370_v55 = vunpack.c.l.bf16 %v2827_v51  ;;  %s2714_s24 = sshll.u32 %s4292_s13, 3  ;;  %vm2582_vm8 = vcmask 261120  }
  0x13   : > { %s183_s19 = scalar_lea.vmem %s4255_s0, %s3118_s8  ;;  %2775 = vmatpush.msk.msrb.mxu0 %vm236_vm0, %v3298_v14  ;;  %2789 = vmatpush.msk.msrb.mxu1 %vm236_vm0, %v3300_v15  ;;  %s190_s25 = sadd.s32 %s2714_s24, %s4294_s23 }
  0x14   : > { %2801 = vmatpush.msk.msrb.mxu2 %vm236_vm0, %v3282_v10  ;;  %2814 = vmatpush.msk.msrb.mxu3 %vm236_vm0, %v3284_v11  ;;  %s3313_s20 = scalar_lea.vmem %s183_s19, %s3106_s9  ;;  %s2715_s13 = sshll.u32 %s190_s25, 3 }
  0x15   : > { %v3318_v16 = vld [vmem:[%s3313_s20 + $0x58] sm:$0xf]  ;;  %v2718_v17 = vld [vmem:[%s3313_s20 + $0x8] sm:$0xf]  ;;  %v2741_v21 = vld [vmem:[%s3313_s20 + $0xc] sm:$0x1]  ;;  %s4212_s30 = scalar_lea.vmem %s4258_s3, %s2715_s13 }
  0x16   : > { %v2740_v18 = vld [vmem:[%s3313_s20 + $0x8] sm:$0xf]  ;;  %v216_v19 = vunpack.c.l.bf16 %v3318_v16  ;;  %v203_v20 = vunpack.c.l.bf16 %v2718_v17  ;;  %v322_v24 = vunpack.c.l.bf16 %v2741_v21  ;;  %v2742_v26 = vld [vmem:[%s3313_s20 + $0x10] sm:$0xf]  ;;  %v2743_v27 = vld [vmem:[%s3313_s20 + $0x14] sm:$0x1] }
  0x17   : > { %v321_v22 = vunpack.c.l.bf16 %v2740_v18  ;;  %v2757_v23 = vld [vmem:[%s3313_s20 + $0xa8] sm:$0xf]  ;;  %v3333_v30 = vld [vmem:[%s3313_s20 + $0x60] sm:$0xf]  ;;  %v2719_v31 = vld [vmem:[%s3313_s20 + $0x10] sm:$0xf]  ;;  %v323_v32 = vunpack.c.l.bf16 %v2742_v26  ;;  %v324_v33 = vunpack.c.l.bf16 %v2743_v27 }
  0x18   : > { %v404_v25 = vunpack.c.l.bf16 %v2757_v23  ;;  %2731 = vmatmul.msk.f32.vlgmr.msra.gmra.mxu0 %vm223_vm1, %v216_v19  ;;  %2736 = vmatmul.msk.f32.vlgmr.msra.gmra.mxu1 %vm223_vm1, %v203_v20  ;;  %v339_v29 = vrot.slane %v322_v24, 1  ;;  %v2758_v34 = vld [vmem:[%s3313_s20 + $0xb0] sm:$0xf]  ;;  %v217_v36 = vunpack.c.l.bf16 %v3333_v30  ;;  %v204_v37 = vunpack.c.l.bf16 %v2719_v31  ;;  %v2744_v41 = vld [vmem:[%s3313_s20 + $0x18] sm:$0xf] }
  0x19   : > { %v338_v28 = vrot.slane %v321_v22, 1  ;;  %2833 = vmatpush.msk.msra.mxu1 %vm236_vm0, %v3255_v1  ;;  %v341_v38 = vrot.slane %v323_v32, 1  ;;  %v342_v39 = vrot.slane %v324_v33, 1  ;;  %v405_v40 = vunpack.c.l.bf16 %v2758_v34  ;;  %v2745_v42 = vld [vmem:[%s3313_s20 + $0x1c] sm:$0x1]  ;;  %2828 = vmatpush.msk.msra.mxu0 %vm236_vm0, %v3370_v55 }
  0x1a   : > { %2763 = vmatmul.msk.f32.vlgmr.msra.gmra.mxu3 %vm223_vm1, %v404_v25  ;;  %v3360_v44 = vld [vmem:[%s3313_s20 + $0x68] sm:$0xf]  ;;  %v2720_v45 = vld [vmem:[%s3313_s20 + $0x18] sm:$0xf]  ;;  %v325_v46 = vunpack.c.l.bf16 %v2744_v41  ;;  %v326_v47 = vunpack.c.l.bf16 %v2745_v42  ;;  %v2746_v56 = vld [vmem:[%s3313_s20 + $0x20] sm:$0xf] }
  0x1b   : > { %2851 = vmatpush.msk.msra.mxu3 %vm236_vm0, %v3270_v6  ;;  %v3342_v35 = vsel %vm337_vm2, %v338_v28, %v339_v29  ;;  %v3356_v43 = vsel %vm337_vm2, %v341_v38, %v342_v39  ;;  %v2759_v48 = vld [vmem:[%s3313_s20 + $0xb8] sm:$0xf]  ;;  %v218_v49 = vunpack.c.l.bf16 %v3360_v44  ;;  %v205_v50 = vunpack.c.l.bf16 %v2720_v45  ;;  %v2747_v57 = vld [vmem:[%s3313_s20 + $0x24] sm:$0x1]  ;;  %v3385_v59 = vld [vmem:[%s3313_s20 + $0x70] sm:$0xf] }
  0x1c   : > { %2750 = vmatmul.msk.f32.vlgmr.msra.gmra.mxu2 %vm223_vm1, %v3342_v35  ;;  %v344_v52 = vrot.slane %v325_v46, 1  ;;  %v345_v53 = vrot.slane %v326_v47, 1  ;;  %v406_v54 = vunpack.c.l.bf16 %v2759_v48  ;;  %v2721_v60 = vld [vmem:[%s3313_s20 + $0x20] sm:$0xf]  ;;  %v327_v61 = vunpack.c.l.bf16 %v2746_v56  ;;  %v2780_v0 = vld [vmem:[%s3313_s20 + $0xa8] sm:$0xf] }
  0x1d   : > { %2838 = vmatpush.msk.msra.mxu2 %vm236_vm0, %v3268_v5  ;;  %v328_v62 = vunpack.c.l.bf16 %v2747_v57  ;;  %v2760_v63 = vld [vmem:[%s3313_s20 + $0xc0] sm:$0xf]  ;;  %v2781_v2 = vld [vmem:[%s3313_s20 + $0xac] sm:$0x1]  ;;  %v219_v3 = vunpack.c.l.bf16 %v3385_v59  ;;  %v206_v4 = vunpack.c.l.bf16 %v2721_v60  ;;  %v529_v13 = vunpack.c.l.bf16 %v2780_v0  ;;  %v3403_v20 = vld [vmem:[%s3313_s20 + $0xf8] sm:$0xf] }
  0x1e   : > { %v3381_v58 = vsel %vm337_vm2, %v344_v52, %v345_v53  ;;  %v407_v8 = vunpack.c.l.bf16 %v2760_v63  ;;  %v347_v9 = vrot.slane %v327_v61, 1  ;;  %v530_v17 = vunpack.c.l.bf16 %v2781_v2  ;;  %v3406_v23 = vld [vmem:[%s3313_s20 + $0x60] sm:$0xf]  ;;  %v2782_v24 = vld [vmem:[%s3313_s20 + $0xb0] sm:$0xf] }
  0x1f   : > { %v348_v12 = vrot.slane %v328_v62, 1  ;;  %v545_v21 = vrot.slane %v529_v13, 1  ;;  %v2783_v25 = vld [vmem:[%s3313_s20 + $0xb4] sm:$0x1]  ;;  %v466_v26 = vunpack.c.l.bf16 %v3403_v20  ;;  %v2796_v28 = vld [vmem:[%s3313_s20 + $0x10] sm:$0xf]  ;;  %v674_v29 = vunpack.c.l.bf16 %v3406_v23 }
  0x20   : > { %2732 = vmatmul.msk.f32.gmra.mxu0 %vm223_vm1, %v217_v36  ;;  %2737 = vmatmul.msk.f32.gmra.mxu1 %vm223_vm1, %v204_v37  ;;  %v546_v22 = vrot.slane %v530_v17, 1  ;;  %v531_v31 = vunpack.c.l.bf16 %v2782_v24  ;;  %v532_v32 = vunpack.c.l.bf16 %v2783_v25  ;;  %v612_v33 = vunpack.c.l.bf16 %v2796_v28  ;;  %v3427_v34 = vld [vmem:[%s3313_s20 + $0x100] sm:$0xf]  ;;  %v3432_v39 = vld [vmem:[%s3313_s20 + $0x68] sm:$0xf] }
  0x21   : > { %v3399_v18 = vsel %vm337_vm2, %v347_v9, %v348_v12  ;;  %v2785_v41 = vld [vmem:[%s3313_s20 + $0xbc] sm:$0x1]  ;;  %v467_v42 = vunpack.c.l.bf16 %v3427_v34  ;;  %v2797_v46 = vld [vmem:[%s3313_s20 + $0x18] sm:$0xf]  ;;  %v675_v47 = vunpack.c.l.bf16 %v3432_v39  ;;  %v3458_v52 = vld [vmem:[%s3313_s20 + $0x108] sm:$0xf] }
  0x22   : > { %2764 = vmatmul.msk.f32.gmra.mxu3 %vm223_vm1, %v405_v40  ;;  %v3414_v27 = vsel %vm337_vm2, %v545_v21, %v546_v22  ;;  %v548_v37 = vrot.slane %v531_v31, 1  ;;  %v549_v38 = vrot.slane %v532_v32, 1  ;;  %v2784_v40 = vld [vmem:[%s3313_s20 + $0xb8] sm:$0xf]  ;;  %v613_v51 = vunpack.c.l.bf16 %v2797_v46  ;;  %v3461_v56 = vld [vmem:[%s3313_s20 + $0x70] sm:$0xf] }
  0x23   : > { %v533_v48 = vunpack.c.l.bf16 %v2784_v40  ;;  %v2786_v57 = vld [vmem:[%s3313_s20 + $0xc0] sm:$0xf]  ;;  %v2787_v60 = vld [vmem:[%s3313_s20 + $0xc4] sm:$0x1]  ;;  %v468_v61 = vunpack.c.l.bf16 %v3458_v52  ;;  %v676_v0 = vunpack.c.l.bf16 %v3461_v56  ;;  %v3481_v9 = vld [vmem:[%s3313_s20 + $0x110] sm:$0xf] }
  0x24   : > { %2751 = vmatmul.msk.f32.gmra.mxu2 %vm223_vm1, %v3356_v43  ;;  %v3443_v45 = vsel %vm337_vm2, %v548_v37, %v549_v38  ;;  %v2798_v63 = vld [vmem:[%s3313_s20 + $0x20] sm:$0xf]  ;;  %v535_v2 = vunpack.c.l.bf16 %v2786_v57  ;;  %v3484_v17 = vld [vmem:[%s3313_s20 + $0x78] sm:$0xf]  ;;  %v2819_v21 = vld [vmem:[%s3313_s20 + $0x10] sm:$0xf]  ;;  %v469_v28 = vunpack.c.l.bf16 %v3481_v9 }
  0x25   : > { %v551_v53 = vrot.slane %v533_v48, 1  ;;  %v2820_v22 = vld [vmem:[%s3313_s20 + $0x14] sm:$0x1]  ;;  %v2843_v24 = vld [vmem:[%s3313_s20 + $0x58] sm:$0xf]  ;;  %v737_v37 = vunpack.c.l.bf16 %v2819_v21 }
  0x26   : > { %v554_v12 = vrot.slane %v535_v2, 1  ;;  %v2844_v25 = vld [vmem:[%s3313_s20 + $0x5c] sm:$0x1]  ;;  %v2799_v32 = vld [vmem:[%s3313_s20 + $0x28] sm:$0xf]  ;;  %v738_v38 = vunpack.c.l.bf16 %v2820_v22  ;;  %v878_v40 = vunpack.c.l.bf16 %v2843_v24 }
  0x27   : > { %v615_v46 = vunpack.c.l.bf16 %v2799_v32  ;;  %v753_v48 = vrot.slane %v737_v37, 1  ;;  %v2822_v57 = vld [vmem:[%s3313_s20 + $0x1c] sm:$0x1]  ;;  %v2823_v37 = vld [vmem:[%s3313_s20 + $0x20] sm:$0xf] }
  0x28   : > { %2733 = vmatmul.msk.f32.gmra.mxu0 %vm223_vm1, %v218_v49  ;;  %2738 = vmatmul.msk.f32.gmra.mxu1 %vm223_vm1, %v205_v50  ;;  %v534_v50 = vunpack.c.l.bf16 %v2785_v41  ;;  %v879_v41 = vunpack.c.l.bf16 %v2844_v25  ;;  %v2870_v23 = vld [vmem:[%s3313_s20 + $0x108] sm:$0xf]  ;;  %v2872_v34 = vld [vmem:[%s3313_s20 + $0x110] sm:$0xf]  ;;  %s2547_s12 = scalar_select %p2546_p7, 1, 0 }
  0x2a   : > { %2765 = vmatmul.msk.f32.gmra.mxu3 %vm223_vm1, %v406_v54  ;;  %v552_v54 = vrot.slane %v534_v50, 1  ;;  %v754_v50 = vrot.slane %v738_v38, 1  ;;  %v2824_v38 = vld [vmem:[%s3313_s20 + $0x24] sm:$0x1] }
  0x2c   : > { %2752 = vmatmul.msk.f32.gmra.mxu2 %vm223_vm1, %v3381_v58  ;;  %v3468_v62 = vsel %vm337_vm2, %v551_v53, %v552_v54  ;;  %v895_v53 = vrot.slane %v879_v41, 1  ;;  %v2821_v54 = vld [vmem:[%s3313_s20 + $0x18] sm:$0xf]  ;;  %v3511_v2 = vsel %vm337_vm2, %v753_v48, %v754_v50  ;;  %v2848_v41 = vld [vmem:[%s3313_s20 + $0x6c] sm:$0x1]  ;;  %v742_v48 = vunpack.c.l.bf16 %v2824_v38 }
  0x30   : > { %2734 = vmatmul.msk.f32.gmra.mxu0 %vm223_vm1, %v219_v3  ;;  %2739 = vmatmul.msk.f32.gmra.mxu1 %vm223_vm1, %v206_v4  ;;  %v536_v4 = vunpack.c.l.bf16 %v2787_v60  ;;  %v2845_v60 = vld [vmem:[%s3313_s20 + $0x60] sm:$0xf] }
  0x32   : > { %2766 = vmatmul.msk.f32.gmra.mxu3 %vm223_vm1, %v407_v8  ;;  %v614_v8 = vunpack.c.l.bf16 %v2798_v63  ;;  %v555_v13 = vrot.slane %v536_v4, 1  ;;  %v2846_v63 = vld [vmem:[%s3313_s20 + $0x64] sm:$0x1]  ;;  %v739_v4 = vunpack.c.l.bf16 %v2821_v54 }
  0x33   : > { %v881_v21 = vunpack.c.l.bf16 %v2846_v63  ;;  %v2826_v63 = vld [vmem:[%s3313_s20 + $0x2c] sm:$0x1] }
  0x34   : > { %2753 = vmatmul.msk.f32.gmra.mxu2 %vm223_vm1, %v3399_v18  ;;  %v3493_v31 = vsel %vm337_vm2, %v554_v12, %v555_v13  ;;  %v880_v13 = vunpack.c.l.bf16 %v2845_v60  ;;  %v756_v22 = vrot.slane %v739_v4, 1  ;;  %v2825_v60 = vld [vmem:[%s3313_s20 + $0x28] sm:$0xf]  ;;  %v2849_v4 = vld [vmem:[%s3313_s20 + $0x70] sm:$0xf] }
  0x35   : > { %v898_v32 = vrot.slane %v881_v21, 1 }
  0x36   : > { %v897_v25 = vrot.slane %v880_v13, 1  ;;  %v743_v13 = vunpack.c.l.bf16 %v2825_v60 }
  0x38   : > { %2776 = vmatmul.msk.f32.vlgmr.msrb.gmra.mxu0 %vm223_vm1, %v466_v26  ;;  %2790 = vmatmul.msk.f32.vlgmr.msrb.gmra.mxu1 %vm223_vm1, %v3414_v27  ;;  %v899_v50 = vsel %vm337_vm2, %v897_v25, %v898_v32  ;;  %v762_v30 = vrot.slane %v743_v13, 1  ;;  %v2892_v13 = vld [vmem:[%s3313_s20 + $0x6c] sm:$0x1] }
  0x39   : > { %2856 = vmatpush.msk.msrb.mxu0 %vm236_vm0, %v3272_v7  ;;  %2861 = vmatpush.msk.msrb.mxu1 %vm236_vm0, %v3298_v14 }
  0x3a   : > { %2815 = vmatmul.msk.f32.vlgmr.msrb.gmra.mxu3 %vm223_vm1, %v674_v29 }
  0x3b   : > { %2879 = vmatpush.msk.msrb.mxu3 %vm236_vm0, %v3282_v10 }
  0x3c   : > { %2802 = vmatmul.msk.f32.vlgmr.msrb.gmra.mxu2 %vm223_vm1, %v612_v33  ;;  %v677_v33 = vunpack.c.l.bf16 %v3484_v17 }
  0x3d   : > { %2874 = vmatpush.msk.msrb.mxu2 %vm236_vm0, %v3300_v15 }
  0x40   : > { %2777 = vmatmul.msk.f32.gmra.mxu0 %vm223_vm1, %v467_v42  ;;  %2791 = vmatmul.msk.f32.gmra.mxu1 %vm223_vm1, %v3443_v45 }
  0x42   : > { %2816 = vmatmul.msk.f32.gmra.mxu3 %vm223_vm1, %v675_v47 }
  0x44   : > { %2803 = vmatmul.msk.f32.gmra.mxu2 %vm223_vm1, %v613_v51  ;;  %v894_v51 = vrot.slane %v878_v40, 1  ;;  %v2847_v40 = vld [vmem:[%s3313_s20 + $0x68] sm:$0xf] }
  0x46   : > { %v896_v12 = vsel %vm337_vm2, %v894_v51, %v895_v53  ;;  %v882_v51 = vunpack.c.l.bf16 %v2847_v40  ;;  %v883_v53 = vunpack.c.l.bf16 %v2848_v41  ;;  %v2866_v40 = vld [vmem:[%s3313_s20 + $0xf8] sm:$0xf]  ;;  %v2867_v41 = vld [vmem:[%s3313_s20 + $0xfc] sm:$0x1] }
  0x48   : > { %2778 = vmatmul.msk.f32.gmra.mxu0 %vm223_vm1, %v468_v61  ;;  %2792 = vmatmul.msk.f32.gmra.mxu1 %vm223_vm1, %v3468_v62  ;;  %v900_v54 = vrot.slane %v882_v51, 1  ;;  %v1025_v51 = vunpack.c.l.bf16 %v2870_v23  ;;  %v2895_v23 = vld [vmem:[%s3313_s20 + $0x78] sm:$0xf] }
  0x4a   : > { %2817 = vmatmul.msk.f32.gmra.mxu3 %vm223_vm1, %v676_v0 }
  0x4c   : > { %2804 = vmatmul.msk.f32.gmra.mxu2 %vm223_vm1, %v614_v8  ;;  %v740_v8 = vunpack.c.l.bf16 %v2822_v57  ;;  %v901_v57 = vrot.slane %v883_v53, 1 }
  0x4e   : > { %v757_v24 = vrot.slane %v740_v8, 1  ;;  %v2850_v8 = vld [vmem:[%s3313_s20 + $0x74] sm:$0x1]  ;;  %v902_v21 = vsel %vm337_vm2, %v900_v54, %v901_v57  ;;  %v2890_v57 = vld [vmem:[%s3313_s20 + $0x64] sm:$0x1] }
  0x4f   : > { %v2873_v54 = vld [vmem:[%s3313_s20 + $0x114] sm:$0x1] }
  0x50   : > { %2779 = vmatmul.msk.f32.gmra.mxu0 %vm223_vm1, %v469_v28  ;;  %2793 = vmatmul.msk.f32.gmra.mxu1 %vm223_vm1, %v3493_v31 }
  0x52   : > { %2818 = vmatmul.msk.f32.gmra.mxu3 %vm223_vm1, %v677_v33 }
  0x54   : > { %2805 = vmatmul.msk.f32.gmra.mxu2 %vm223_vm1, %v615_v46  ;;  %v741_v46 = vunpack.c.l.bf16 %v2823_v37 }
  0x56   : > { %v759_v16 = vrot.slane %v741_v46, 1  ;;  %v1022_v46 = vunpack.c.l.bf16 %v2867_v41 }
  0x58   : > { %2829 = vmatmul.msk.f32.vlgmr.msra.gmra.mxu0 %vm223_vm1, %v3511_v2  ;;  %2834 = vmatmul.msk.f32.vlgmr.msra.gmra.mxu1 %vm223_vm1, %v3342_v35  ;;  %v3533_v35 = vsel %vm337_vm2, %v756_v22, %v757_v24  ;;  %v884_v22 = vunpack.c.l.bf16 %v2849_v4  ;;  %v885_v24 = vunpack.c.l.bf16 %v2850_v8  ;;  %v2904_v4 = vld [vmem:[%s3313_s20 + $0xa0] sm:$0xf]  ;;  %v2891_v8 = vld [vmem:[%s3313_s20 + $0x68] sm:$0xf] }
  0x59   : > { %2884 = vmatpush.msk.msra.mxu0 %vm236_vm0, %v3284_v11  ;;  %2897 = vmatpush.msk.msra.mxu1 %vm236_vm0, %v3370_v55  ;;  %v1166_v17 = vunpack.c.l.bf16 %v2891_v8 }
  0x5a   : > { %2852 = vmatmul.msk.f32.vlgmr.msra.gmra.mxu3 %vm223_vm1, %v896_v12  ;;  %v903_v25 = vrot.slane %v884_v22, 1  ;;  %v904_v32 = vrot.slane %v885_v24, 1  ;;  %v1167_v22 = vunpack.c.l.bf16 %v2892_v13  ;;  %v3692_v13 = vld [vmem:[%s3313_s20 + $0x108] sm:$0xf] }
  0x5b   : > { %2922 = vmatpush.msk.msra.mxu3 %vm236_vm0, %v3268_v5  ;;  %v1183_v24 = vrot.slane %v1166_v17, 1 }
  0x5c   : > { %2839 = vmatmul.msk.f32.vlgmr.msra.gmra.mxu2 %vm223_vm1, %v216_v19  ;;  %v760_v19 = vrot.slane %v742_v48, 1  ;;  %v905_v38 = vsel %vm337_vm2, %v903_v25, %v904_v32  ;;  %v2868_v48 = vld [vmem:[%s3313_s20 + $0x100] sm:$0xf]  ;;  %v2893_v25 = vld [vmem:[%s3313_s20 + $0x70] sm:$0xf] }
  0x5d   : > { %2916 = vmatpush.msk.msra.mxu2 %vm236_vm0, %v3255_v1  ;;  %v1023_v59 = vunpack.c.l.bf16 %v2868_v48  ;;  %v2894_v32 = vld [vmem:[%s3313_s20 + $0x74] sm:$0x1] }
  0x5e   : > { %v3551_v12 = vsel %vm337_vm2, %v759_v16, %v760_v19  ;;  %v1043_v16 = vrot.slane %v1025_v51, 1 }
  0x5f   : > { %v1040_v20 = vrot.slane %v1023_v59, 1 }
  0x60   : > { %2830 = vmatmul.msk.f32.gmra.mxu0 %vm223_vm1, %v3533_v35  ;;  %2835 = vmatmul.msk.f32.gmra.mxu1 %vm223_vm1, %v3356_v43  ;;  %v744_v43 = vunpack.c.l.bf16 %v2826_v63 }
  0x62   : > { %2853 = vmatmul.msk.f32.gmra.mxu3 %vm223_vm1, %v899_v50  ;;  %v2869_v50 = vld [vmem:[%s3313_s20 + $0x104] sm:$0x1] }
  0x64   : > { %2840 = vmatmul.msk.f32.gmra.mxu2 %vm223_vm1, %v217_v36  ;;  %v763_v36 = vrot.slane %v744_v43, 1  ;;  %v3637_v43 = vld [vmem:[%s3313_s20 + $0xf0] sm:$0xf] }
  0x66   : > { %v3563_v37 = vsel %vm337_vm2, %v762_v30, %v763_v36  ;;  %v1184_v30 = vrot.slane %v1167_v22, 1  ;;  %v2905_v36 = vld [vmem:[%s3313_s20 + $0xa8] sm:$0xf]  ;;  %v1259_v22 = vunpack.c.l.bf16 %v3692_v13 }
  0x68   : > { %2831 = vmatmul.msk.f32.gmra.mxu0 %vm223_vm1, %v3551_v12  ;;  %2836 = vmatmul.msk.f32.gmra.mxu1 %vm223_vm1, %v3381_v58  ;;  %v1021_v58 = vunpack.c.l.bf16 %v2866_v40 }
  0x6a   : > { %2854 = vmatmul.msk.f32.gmra.mxu3 %vm223_vm1, %v902_v21  ;;  %v1037_v44 = vrot.slane %v1021_v58, 1  ;;  %v1242_v21 = vunpack.c.l.bf16 %v2904_v4  ;;  %v1185_v58 = vsel %vm337_vm2, %v1183_v24, %v1184_v30 }
  0x6c   : > { %2841 = vmatmul.msk.f32.gmra.mxu2 %vm223_vm1, %v218_v49  ;;  %v1038_v49 = vrot.slane %v1022_v46, 1  ;;  %v3658_v46 = vld [vmem:[%s3313_s20 + $0xf8] sm:$0xf] }
  0x70   : > { %2832 = vmatmul.msk.f32.gmra.mxu0 %vm223_vm1, %v3563_v37  ;;  %2837 = vmatmul.msk.f32.gmra.mxu1 %vm223_vm1, %v3399_v18  ;;  %v1039_v18 = vsel %vm337_vm2, %v1037_v44, %v1038_v49  ;;  %v1243_v44 = vunpack.c.l.bf16 %v2905_v36  ;;  %v1169_v49 = vunpack.c.l.bf16 %v2894_v32  ;;  %v2944_v36 = vld [vmem:[%s3313_s20 + $0x8] sm:$0xf]  ;;  %v2908_v32 = vld [vmem:[%s3313_s20 + $0xc0] sm:$0xf] }
  0x72   : > { %2855 = vmatmul.msk.f32.gmra.mxu3 %vm223_vm1, %v905_v38 }
  0x74   : > { %2842 = vmatmul.msk.f32.gmra.mxu2 %vm223_vm1, %v219_v3  ;;  %v1024_v3 = vunpack.c.l.bf16 %v2869_v50 }
  0x78   : > { %2857 = vmatmul.msk.f32.vlgmr.msrb.gmra.mxu0 %vm223_vm1, %v466_v26  ;;  %2862 = vmatmul.msk.f32.vlgmr.msrb.gmra.mxu1 %vm223_vm1, %v3414_v27  ;;  %v1041_v26 = vrot.slane %v1024_v3, 1  ;;  %v2871_v27 = vld [vmem:[%s3313_s20 + $0x10c] sm:$0x1]  ;;  %v1187_v3 = vrot.slane %v1169_v49, 1 }
  0x79   : > { %2938 = vmatpush.msk.msrb.mxu0 %vm236_vm0, %v3270_v6  ;;  %2949 = vmatpush.msk.msrb.mxu1 %vm236_vm0, %v3272_v7  ;;  %v1026_v53 = vunpack.c.l.bf16 %v2871_v27  ;;  %v2896_v27 = vld [vmem:[%s3313_s20 + $0x7c] sm:$0x1] }
  0x7a   : > { %2880 = vmatmul.msk.f32.vlgmr.msrb.gmra.mxu3 %vm223_vm1, %v674_v29  ;;  %v1042_v29 = vsel %vm337_vm2, %v1040_v20, %v1041_v26  ;;  %v2906_v26 = vld [vmem:[%s3313_s20 + $0xb0] sm:$0xf] }
  0x7b   : > { %2976 = vmatpush.msk.msrb.mxu3 %vm236_vm0, %v3300_v15  ;;  %v1044_v19 = vrot.slane %v1026_v53, 1 }
  0x7c   : > { %2875 = vmatmul.msk.f32.vlgmr.msrb.gmra.mxu2 %vm223_vm1, %v1039_v18  ;;  %v1257_v18 = vunpack.c.l.bf16 %v3658_v46 }
  0x7d   : > { %2960 = vmatpush.msk.msrb.mxu2 %vm236_vm0, %v3298_v14  ;;  %v1045_v39 = vsel %vm337_vm2, %v1043_v16, %v1044_v19  ;;  %v3675_v19 = vld [vmem:[%s3313_s20 + $0x100] sm:$0xf] }
  0x80   : > { %2858 = vmatmul.msk.f32.gmra.mxu0 %vm223_vm1, %v467_v42  ;;  %2863 = vmatmul.msk.f32.gmra.mxu1 %vm223_vm1, %v3443_v45  ;;  %v1027_v42 = vunpack.c.l.bf16 %v2872_v34  ;;  %v1028_v45 = vunpack.c.l.bf16 %v2873_v54  ;;  %v1244_v34 = vunpack.c.l.bf16 %v2906_v26  ;;  %v1170_v54 = vunpack.c.l.bf16 %v2895_v23 }
  0x82   : > { %2881 = vmatmul.msk.f32.gmra.mxu3 %vm223_vm1, %v675_v47  ;;  %v2889_v47 = vld [vmem:[%s3313_s20 + $0x60] sm:$0xf]  ;;  %v1046_v52 = vrot.slane %v1027_v42, 1 }
  0x83   : > { %v1164_v60 = vunpack.c.l.bf16 %v2889_v47  ;;  %v1258_v47 = vunpack.c.l.bf16 %v3675_v19 }
  0x84   : > { %2876 = vmatmul.msk.f32.gmra.mxu2 %vm223_vm1, %v1042_v29 }
  0x88   : > { %2859 = vmatmul.msk.f32.gmra.mxu0 %vm223_vm1, %v468_v61  ;;  %2864 = vmatmul.msk.f32.gmra.mxu1 %vm223_vm1, %v3468_v62  ;;  %v1047_v61 = vrot.slane %v1028_v45, 1  ;;  %v1165_v62 = vunpack.c.l.bf16 %v2890_v57  ;;  %v1189_v57 = vrot.slane %v1170_v54, 1  ;;  %v2945_v54 = vld [vmem:[%s3313_s20 + $0x10] sm:$0xf] }
  0x8a   : > { %2882 = vmatmul.msk.f32.gmra.mxu3 %vm223_vm1, %v676_v0  ;;  %v1048_v56 = vsel %vm337_vm2, %v1046_v52, %v1047_v61  ;;  %v1180_v0 = vrot.slane %v1164_v60, 1  ;;  %v1181_v63 = vrot.slane %v1165_v62, 1  ;;  %v2907_v60 = vld [vmem:[%s3313_s20 + $0xb8] sm:$0xf]  ;;  %v2928_v62 = vld [vmem:[%s3313_s20 + $0xa0] sm:$0xf] }
  0x8c   : > { %2877 = vmatmul.msk.f32.gmra.mxu2 %vm223_vm1, %v1045_v39  ;;  %v1171_v39 = vunpack.c.l.bf16 %v2896_v27 }
  0x8e   : > { %v1190_v52 = vrot.slane %v1171_v39, 1 }
  0x90   : > { %2860 = vmatmul.msk.f32.gmra.mxu0 %vm223_vm1, %v469_v28  ;;  %2865 = vmatmul.msk.f32.gmra.mxu1 %vm223_vm1, %v3493_v31  ;;  %v1182_v31 = vsel %vm337_vm2, %v1180_v0, %v1181_v63  ;;  %v1191_v8 = vsel %vm337_vm2, %v1189_v57, %v1190_v52  ;;  %v2932_v57 = vld [vmem:[%s3313_s20 + $0xb0] sm:$0xf]  ;;  %v2933_v52 = vld [vmem:[%s3313_s20 + $0xb4] sm:$0x1] }
  0x92   : > { %2883 = vmatmul.msk.f32.gmra.mxu3 %vm223_vm1, %v677_v33  ;;  %v1256_v33 = vunpack.c.l.bf16 %v3637_v43 }
  0x94   : > { %2878 = vmatmul.msk.f32.gmra.mxu2 %vm223_vm1, %v1048_v56  ;;  %v2929_v56 = vld [vmem:[%s3313_s20 + $0xa4] sm:$0x1] }
  0x95   : > { %v257_v9 = vpop.f32.mrf.mxu0  ;;  %v301_v28 = vpop.f32.mrf.mxu1 }
  0x98   : > { %2885 = vmatmul.msk.f32.vlgmr.msra.gmra.mxu0 %vm223_vm1, %v3511_v2  ;;  %2898 = vmatmul.msk.f32.vlgmr.msra.gmra.mxu1 %vm223_vm1, %v1182_v31  ;;  %v302_v2 = vadd.f32 %v301_v28, %v257_v9  ;;  %v1245_v9 = vunpack.c.l.bf16 %v2907_v60  ;;  %v1365_v28 = vunpack.c.l.bf16 %v2928_v62  ;;  %v1366_v31 = vunpack.c.l.bf16 %v2929_v56  ;;  %v2968_v60 = vld [vmem:[%s3313_s20 + $0x10] sm:$0xf]  ;;  %v2969_v62 = vld [vmem:[%s3313_s20 + $0x14] sm:$0x1] }
  0x99   : > { %2987 = vmatpush.msk.msra.mxu0 %vm236_vm0, %v3282_v10  ;;  %2998 = vmatpush.msk.msra.mxu1 %vm236_vm0, %v3284_v11 }
  0x9a   : > { %2923 = vmatmul.msk.f32.vlgmr.msra.gmra.mxu3 %vm223_vm1, %v1242_v21  ;;  %v1385_v24 = vrot.slane %v1365_v28, 1  ;;  %v1386_v30 = vrot.slane %v1366_v31, 1  ;;  %v1583_v31 = vunpack.c.l.bf16 %v2968_v60 }
  0x9b   : > { %3020 = vmatpush.msk.msra.mxu3 %vm236_vm0, %v3255_v1  ;;  %v1168_v1 = vunpack.c.l.bf16 %v2893_v25 }
  0x9c   : > { %2917 = vmatmul.msk.f32.vlgmr.msra.gmra.mxu2 %vm223_vm1, %v1256_v33 }
  0x9d   : > { %v443_v38 = vpop.f32.mrf.mxu3  ;;  %v260_v40 = vpop.f32.mrf.mxu0  ;;  %3014 = vmatpush.msk.msra.mxu2 %vm236_vm0, %v3370_v55  ;;  %v1186_v59 = vrot.slane %v1168_v1, 1 }
  0x9e   : > { %v304_v41 = vpop.f32.mrf.mxu1 }
  0x9f   : > { %v381_v48 = vpop.f32.mrf.mxu2  ;;  %v305_v29 = vadd.f32 %v304_v41, %v260_v40  ;;  %v1188_v16 = vsel %vm337_vm2, %v1186_v59, %v1187_v3  ;;  %v2966_v40 = vld [vmem:[%s3313_s20 + $0x8] sm:$0xf]  ;;  %v2967_v41 = vld [vmem:[%s3313_s20 + $0xc] sm:$0x1]  ;;  %v1246_v59 = vunpack.c.l.bf16 %v2908_v32 }
  0xa0   : > { %v393_v50 = vadd.f32 %v381_v48, %v302_v2  ;;  %2886 = vmatmul.msk.f32.gmra.mxu0 %vm223_vm1, %v3533_v35  ;;  %2899 = vmatmul.msk.f32.gmra.mxu1 %vm223_vm1, %v1185_v58  ;;  %v2930_v2 = vld [vmem:[%s3313_s20 + $0xa8] sm:$0xf]  ;;  %v3711_v48 = vsel %vm337_vm2, %v1385_v24, %v1386_v30  ;;  %v1581_v27 = vunpack.c.l.bf16 %v2966_v40  ;;  %v1604_v40 = vrot.slane %v1583_v31, 1 }
  0xa1   : > { %v1367_v3 = vunpack.c.l.bf16 %v2930_v2  ;;  %v2946_v2 = vld [vmem:[%s3313_s20 + $0x18] sm:$0xf] }
  0xa2   : > { %2924 = vmatmul.msk.f32.gmra.mxu3 %vm223_vm1, %v1243_v44  ;;  %v455_v20 = vadd.f32 %v443_v38, %v393_v50  ;;  %v2931_v38 = vld [vmem:[%s3313_s20 + $0xac] sm:$0x1]  ;;  %v1452_v44 = vunpack.c.l.bf16 %v2944_v36  ;;  %v3714_v50 = vld [vmem:[%s3313_s20 + $0x110] sm:$0xf] }
  0xa3   : > { %v1368_v26 = vunpack.c.l.bf16 %v2931_v38 }
  0xa4   : > { %2918 = vmatmul.msk.f32.gmra.mxu2 %vm223_vm1, %v1257_v18 }
  0xa5   : > { %v446_v51 = vpop.f32.mrf.mxu3  ;;  %v263_v35 = vpop.f32.mrf.mxu0 }
  0xa6   : > { %v307_v53 = vpop.f32.mrf.mxu1 }
  0xa7   : > { %v384_v42 = vpop.f32.mrf.mxu2  ;;  %v308_v0 = vadd.f32 %v307_v53, %v263_v35 }
  0xa8   : > { %v394_v45 = vadd.f32 %v384_v42, %v305_v29  ;;  %2887 = vmatmul.msk.f32.gmra.mxu0 %vm223_vm1, %v3551_v12  ;;  %2900 = vmatmul.msk.f32.gmra.mxu1 %vm223_vm1, %v1188_v16  ;;  %v1582_v29 = vunpack.c.l.bf16 %v2967_v41  ;;  %v4265_v16 = vunpack.c.l.bf16 %v3714_v50  ;;  %v1601_v42 = vrot.slane %v1581_v27, 1  ;;  %v3767_v27 = vld [vmem:[%s3313_s20 + $0x60] sm:$0xf] }
  0xaa   : > { %2925 = vmatmul.msk.f32.gmra.mxu3 %vm223_vm1, %v1244_v34  ;;  %v3682_v61 = vadd.f32 %v446_v51, %v394_v45  ;;  %v1388_v34 = vrot.slane %v1367_v3, 1  ;;  %v1602_v45 = vrot.slane %v1582_v29, 1 }
  0xac   : > { %2919 = vmatmul.msk.f32.gmra.mxu2 %vm223_vm1, %v1258_v47  ;;  %v3743_v28 = vsel %vm337_vm2, %v1601_v42, %v1602_v45 }
  0xad   : > { %v449_v12 = vpop.f32.mrf.mxu3  ;;  %v266_v63 = vpop.f32.mrf.mxu0 }
  0xae   : > { %v310_v4 = vpop.f32.mrf.mxu1 }
  0xaf   : > { %v387_v21 = vpop.f32.mrf.mxu2  ;;  %v311_v58 = vadd.f32 %v310_v4, %v266_v63  ;;  %v3739_v4 = vld [vmem:[%s3313_s20 + $0x58] sm:$0xf] }
  0xb0   : > { %v395_v17 = vadd.f32 %v387_v21, %v308_v0  ;;  %2888 = vmatmul.msk.f32.gmra.mxu0 %vm223_vm1, %v3563_v37  ;;  %2901 = vmatmul.msk.f32.gmra.mxu1 %vm223_vm1, %v1191_v8  ;;  %v1453_v0 = vunpack.c.l.bf16 %v2945_v54  ;;  %v1369_v8 = vunpack.c.l.bf16 %v2932_v57  ;;  %v1584_v21 = vunpack.c.l.bf16 %v2969_v62  ;;  %v2947_v57 = vld [vmem:[%s3313_s20 + $0x20] sm:$0xf] }
  0xb1   : > { %v1514_v36 = vunpack.c.l.bf16 %v3739_v4 }
  0xb2   : > { %2926 = vmatmul.msk.f32.gmra.mxu3 %vm223_vm1, %v1245_v9  ;;  %v3700_v25 = vadd.f32 %v449_v12, %v395_v17  ;;  %v1370_v9 = vunpack.c.l.bf16 %v2933_v52  ;;  %v1605_v41 = vrot.slane %v1584_v21, 1 }
  0xb4   : > { %2920 = vmatmul.msk.f32.gmra.mxu2 %vm223_vm1, %v1259_v22  ;;  %v1392_v32 = vrot.slane %v1370_v9, 1  ;;  %v1455_v9 = vunpack.c.l.bf16 %v2947_v57 }
  0xb5   : > { %v452_v37 = vpop.f32.mrf.mxu3  ;;  %v505_v1 = vpop.f32.mrf.mxu0 }
  0xb6   : > { %v588_v49 = vpop.f32.mrf.mxu1  ;;  %v517_v23 = vadd.f32 %v505_v1, %v455_v20  ;;  %v1389_v20 = vrot.slane %v1368_v26, 1  ;;  %v2971_v1 = vld [vmem:[%s3313_s20 + $0x1c] sm:$0x1] }
  0xb7   : > { %v390_v51 = vpop.f32.mrf.mxu2 }
  0xb8   : > { %v396_v35 = vadd.f32 %v390_v51, %v311_v58  ;;  %v600_v53 = vadd.f32 %v588_v49, %v517_v23  ;;  %2939 = vmatmul.msk.f32.vlgmr.msrb.gmra.mxu0 %vm223_vm1, %v3711_v48  ;;  %2950 = vmatmul.msk.f32.vlgmr.msrb.gmra.mxu1 %vm223_vm1, %v1452_v44  ;;  %v2934_v58 = vld [vmem:[%s3313_s20 + $0xb8] sm:$0xf] }
  0xb9   : > { %3026 = vmatpush.msk.msrb.mxu0 %vm236_vm0, %v3268_v5  ;;  %3042 = vmatpush.msk.msrb.mxu1 %vm236_vm0, %v3270_v6  ;;  %v3736_v5 = vsel %vm337_vm2, %v1388_v34, %v1389_v20  ;;  %v2970_v44 = vld [vmem:[%s3313_s20 + $0x18] sm:$0xf]  ;;  %v1371_v29 = vunpack.c.l.bf16 %v2934_v58  ;;  %v1586_v34 = vunpack.c.l.bf16 %v2971_v1 }
  0xba   : > { %2927 = vmatmul.msk.f32.gmra.mxu3 %vm223_vm1, %v1246_v59  ;;  %v3724_v39 = vadd.f32 %v452_v37, %v396_v35  ;;  %v2935_v37 = vld [vmem:[%s3313_s20 + $0xbc] sm:$0x1]  ;;  %v1454_v59 = vunpack.c.l.bf16 %v2946_v2  ;;  %v3773_v35 = vsel %vm337_vm2, %v1604_v40, %v1605_v41 }
  0xbb   : > { %v1372_v51 = vunpack.c.l.bf16 %v2935_v37  ;;  %v1608_v62 = vrot.slane %v1586_v34, 1 }
  0xbc   : > { %2921 = vmatmul.msk.f32.gmra.mxu2 %vm223_vm1, %v4265_v16 }
  0xbd   : > { %v713_v56 = vpop.f32.mrf.mxu3  ;;  %v508_v12 = vpop.f32.mrf.mxu0  ;;  %v1395_v45 = vrot.slane %v1372_v51, 1  ;;  %v2975_v51 = vld [vmem:[%s3313_s20 + $0x2c] sm:$0x1] }
  0xbe   : > { %v591_v63 = vpop.f32.mrf.mxu1  ;;  %v518_v6 = vadd.f32 %v508_v12, %v3682_v61  ;;  %v1391_v61 = vrot.slane %v1369_v8, 1  ;;  %v2972_v12 = vld [vmem:[%s3313_s20 + $0x20] sm:$0xf]  ;;  %v1590_v57 = vunpack.c.l.bf16 %v2975_v51 }
  0xbf   : > { %v651_v17 = vpop.f32.mrf.mxu2  ;;  %v1587_v2 = vunpack.c.l.bf16 %v2972_v12  ;;  %v3834_v12 = vld [vmem:[%s3313_s20 + $0xf8] sm:$0xf] }
  0xc0   : > { %v663_v24 = vadd.f32 %v651_v17, %v600_v53  ;;  %v601_v30 = vadd.f32 %v591_v63, %v518_v6  ;;  %2940 = vmatmul.msk.f32.gmra.mxu0 %vm223_vm1, %v3736_v5  ;;  %2951 = vmatmul.msk.f32.gmra.mxu1 %vm223_vm1, %v1453_v0  ;;  %v3764_v23 = vsel %vm337_vm2, %v1391_v61, %v1392_v32  ;;  %v1585_v53 = vunpack.c.l.bf16 %v2970_v44  ;;  %v2937_v0 = vld [vmem:[%s3313_s20 + $0xc4] sm:$0x1]  ;;  %v3795_v17 = vld [vmem:[%s3313_s20 + $0x68] sm:$0xf] }
  0xc1   : > { %v2973_v63 = vld [vmem:[%s3313_s20 + $0x24] sm:$0x1]  ;;  %v1516_v44 = vunpack.c.l.bf16 %v3795_v17 }
  0xc2   : > { %2977 = vmatmul.msk.f32.vlgmr.msrb.gmra.mxu3 %vm223_vm1, %v3743_v28  ;;  %v3752_v38 = vadd.f32 %v713_v56, %v663_v24  ;;  %v1607_v60 = vrot.slane %v1585_v53, 1  ;;  %v2936_v56 = vld [vmem:[%s3313_s20 + $0xc0] sm:$0xf]  ;;  %v1588_v40 = vunpack.c.l.bf16 %v2973_v63 }
  0xc3   : > { %3054 = vmatpush.msk.msrb.mxu3 %vm236_vm0, %v3298_v14  ;;  %v1373_v24 = vunpack.c.l.bf16 %v2936_v56 }
  0xc4   : > { %2961 = vmatmul.msk.f32.vlgmr.msrb.gmra.mxu2 %vm223_vm1, %v1514_v36  ;;  %v3799_v32 = vsel %vm337_vm2, %v1607_v60, %v1608_v62 }
  0xc5   : > { %v716_v49 = vpop.f32.mrf.mxu3  ;;  %v511_v3 = vpop.f32.mrf.mxu0  ;;  %3048 = vmatpush.msk.msrb.mxu2 %vm236_vm0, %v3272_v7  ;;  %v1515_v7 = vunpack.c.l.bf16 %v3767_v27 }
  0xc6   : > { %v594_v26 = vpop.f32.mrf.mxu1  ;;  %v519_v14 = vadd.f32 %v511_v3, %v3700_v25  ;;  %v1394_v25 = vrot.slane %v1371_v29, 1  ;;  %v1610_v3 = vrot.slane %v1587_v2, 1  ;;  %v2974_v29 = vld [vmem:[%s3313_s20 + $0x28] sm:$0xf]  ;;  %v3845_v2 = vld [vmem:[%s3313_s20 + $0x78] sm:$0xf] }
  0xc7   : > { %v654_v20 = vpop.f32.mrf.mxu2 }
  0xc8   : > { %v664_v54 = vadd.f32 %v654_v20, %v601_v30  ;;  %v602_v42 = vadd.f32 %v594_v26, %v519_v14  ;;  %2941 = vmatmul.msk.f32.gmra.mxu0 %vm223_vm1, %v3764_v23  ;;  %2952 = vmatmul.msk.f32.gmra.mxu1 %vm223_vm1, %v1454_v59  ;;  %v3792_v21 = vsel %vm337_vm2, %v1394_v25, %v1395_v45  ;;  %v1374_v30 = vunpack.c.l.bf16 %v2937_v0  ;;  %v2982_v0 = vld [vmem:[%s3313_s20 + $0xa8] sm:$0xf] }
  0xc9   : > { %v1611_v26 = vrot.slane %v1588_v40, 1  ;;  %v1589_v45 = vunpack.c.l.bf16 %v2974_v29 }
  0xca   : > { %2978 = vmatmul.msk.f32.gmra.mxu3 %vm223_vm1, %v3773_v35  ;;  %v3782_v52 = vadd.f32 %v716_v49, %v664_v54  ;;  %v1398_v1 = vrot.slane %v1374_v30, 1  ;;  %v2948_v49 = vld [vmem:[%s3313_s20 + $0x28] sm:$0xf] }
  0xcb   : > { %v1456_v53 = vunpack.c.l.bf16 %v2948_v49  ;;  %v3824_v25 = vsel %vm337_vm2, %v1610_v3, %v1611_v26  ;;  %v2983_v49 = vld [vmem:[%s3313_s20 + $0xb0] sm:$0xf]  ;;  %v3861_v3 = vld [vmem:[%s3313_s20 + $0x100] sm:$0xf] }
  0xcc   : > { %2962 = vmatmul.msk.f32.gmra.mxu2 %vm223_vm1, %v1515_v7 }
  0xcd   : > { %v719_v8 = vpop.f32.mrf.mxu3  ;;  %v514_v6 = vpop.f32.mrf.mxu0 }
  0xce   : > { %v597_v31 = vpop.f32.mrf.mxu1  ;;  %v520_v61 = vadd.f32 %v514_v6, %v3724_v39  ;;  %v1397_v39 = vrot.slane %v1373_v24, 1  ;;  %v4263_v24 = vunpack.c.l.bf16 %v3834_v12 }
  0xcf   : > { %v657_v41 = vpop.f32.mrf.mxu2 }
  0xd0   : > { %v665_v58 = vadd.f32 %v657_v41, %v602_v42  ;;  %v603_v37 = vadd.f32 %v597_v31, %v520_v61  ;;  %2942 = vmatmul.msk.f32.gmra.mxu0 %vm223_vm1, %v3792_v21  ;;  %2953 = vmatmul.msk.f32.gmra.mxu1 %vm223_vm1, %v1455_v9  ;;  %v3818_v54 = vsel %vm337_vm2, %v1397_v39, %v1398_v1  ;;  %v3821_v42 = vld [vmem:[%s3313_s20 + $0x70] sm:$0xf]  ;;  %v1614_v9 = vrot.slane %v1590_v57, 1  ;;  %v3004_v41 = vld [vmem:[%s3313_s20 + $0xa8] sm:$0xf] }
  0xd1   : > { %v4264_v56 = vunpack.c.l.bf16 %v3821_v42  ;;  %v1668_v31 = vunpack.c.l.bf16 %v2982_v0  ;;  %v4262_v1 = vunpack.c.l.bf16 %v3845_v2  ;;  %v1797_v26 = vunpack.c.l.bf16 %v3004_v41  ;;  %v3007_v0 = vld [vmem:[%s3313_s20 + $0xb4] sm:$0x1] }
  0xd2   : > { %2979 = vmatmul.msk.f32.gmra.mxu3 %vm223_vm1, %v3799_v32  ;;  %v3808_v59 = vadd.f32 %v719_v8, %v665_v58  ;;  %v1613_v8 = vrot.slane %v1589_v45, 1  ;;  %v3005_v58 = vld [vmem:[%s3313_s20 + $0xac] sm:$0x1] }
  0xd3   : > { %v1798_v29 = vunpack.c.l.bf16 %v3005_v58  ;;  %v1800_v58 = vunpack.c.l.bf16 %v3007_v0  ;;  %v2985_v0 = vld [vmem:[%s3313_s20 + $0xc0] sm:$0xf] }
  0xd4   : > { %2963 = vmatmul.msk.f32.gmra.mxu2 %vm223_vm1, %v1516_v44  ;;  %v3848_v40 = vsel %vm337_vm2, %v1613_v8, %v1614_v9 }
  0xd5   : > { %v722_v14 = vpop.f32.mrf.mxu3  ;;  %v3815_v34 = vpop.f32.mrf.mxu0 }
  0xd6   : > { %v829_v20 = vpop.f32.mrf.mxu1 }
  0xd7   : > { %v660_v60 = vpop.f32.mrf.mxu2 }
  0xd8   : > { %v666_v62 = vadd.f32 %v660_v60, %v603_v37  ;;  %2943 = vmatmul.msk.f32.gmra.mxu0 %vm223_vm1, %v3818_v54  ;;  %2954 = vmatmul.msk.f32.gmra.mxu1 %vm223_vm1, %v1456_v53  ;;  %v1669_v53 = vunpack.c.l.bf16 %v2983_v49  ;;  %v1817_v60 = vrot.slane %v1797_v26, 1 }
  0xda   : > { %2980 = vmatmul.msk.f32.gmra.mxu3 %vm223_vm1, %v3824_v25  ;;  %v3836_v63 = vadd.f32 %v722_v14, %v666_v62  ;;  %v1818_v62 = vrot.slane %v1798_v29, 1 }
  0xdc   : > { %2964 = vmatmul.msk.f32.gmra.mxu2 %vm223_vm1, %v4264_v56 }
  0xdd   : > { %v931_v6 = vpop.f32.mrf.mxu3  ;;  %v3842_v30 = vpop.f32.mrf.mxu0 }
  0xde   : > { %v832_v61 = vpop.f32.mrf.mxu1 }
  0xdf   : > { %v858_v37 = vpop.f32.mrf.mxu2 }
  0xe0   : > { %v859_v39 = vadd.f32 %v858_v37, %v829_v20  ;;  %2988 = vmatmul.msk.f32.vlgmr.msra.gmra.mxu0 %vm223_vm1, %v1668_v31  ;;  %2999 = vmatmul.msk.f32.vlgmr.msra.gmra.mxu1 %vm223_vm1, %v4263_v24  ;;  %v4261_v20 = vunpack.c.l.bf16 %v3861_v3  ;;  %v3886_v31 = vld [vmem:[%s3313_s20 + $0x108] sm:$0xf] }
  0xe1   : > { %3070 = vmatpush.msk.msra.mxu0 %vm236_vm0, %v3300_v15  ;;  %3076 = vmatpush.msk.msra.mxu1 %vm236_vm0, %v3282_v10  ;;  %v3006_v15 = vld [vmem:[%s3313_s20 + $0xb0] sm:$0xf]  ;;  %v3880_v10 = vsel %vm337_vm2, %v1817_v60, %v1818_v62  ;;  %v3009_v60 = vld [vmem:[%s3313_s20 + $0xbc] sm:$0x1] }
  0xe2   : > { %2981 = vmatmul.msk.f32.gmra.mxu3 %vm223_vm1, %v3848_v40  ;;  %v943_v51 = vadd.f32 %v931_v6, %v859_v39  ;;  %v2984_v6 = vld [vmem:[%s3313_s20 + $0xb8] sm:$0xf]  ;;  %v1799_v41 = vunpack.c.l.bf16 %v3006_v15 }
  0xe3   : > { %v1670_v39 = vunpack.c.l.bf16 %v2984_v6 }
  0xe4   : > { %2965 = vmatmul.msk.f32.gmra.mxu2 %vm223_vm1, %v4262_v1  ;;  %v1820_v29 = vrot.slane %v1799_v41, 1  ;;  %v1671_v41 = vunpack.c.l.bf16 %v2985_v0 }
  0xe5   : > { %v934_v14 = vpop.f32.mrf.mxu3  ;;  %v3871_v45 = vpop.f32.mrf.mxu0 }
  0xe6   : > { %v835_v57 = vpop.f32.mrf.mxu1 }
  0xe7   : > { %v861_v8 = vpop.f32.mrf.mxu2 }
  0xe8   : > { %v862_v9 = vadd.f32 %v861_v8, %v832_v61  ;;  %2989 = vmatmul.msk.f32.gmra.mxu0 %vm223_vm1, %v1669_v53  ;;  %3000 = vmatmul.msk.f32.gmra.mxu1 %vm223_vm1, %v4261_v20  ;;  %v1821_v53 = vrot.slane %v1800_v58, 1 }
  0xea   : > { %3021 = vmatmul.msk.f32.vlgmr.msra.gmra.mxu3 %vm223_vm1, %v3711_v48  ;;  %v944_v61 = vadd.f32 %v934_v14, %v862_v9  ;;  %v4259_v48 = vunpack.c.l.bf16 %v3886_v31  ;;  %v3008_v14 = vld [vmem:[%s3313_s20 + $0xb8] sm:$0xf]  ;;  %v3904_v15 = vsel %vm337_vm2, %v1820_v29, %v1821_v53  ;;  %v1802_v9 = vunpack.c.l.bf16 %v3009_v60 }
  0xeb   : > { %3098 = vmatpush.msk.msra.mxu3 %vm236_vm0, %v3370_v55  ;;  %v1801_v8 = vunpack.c.l.bf16 %v3008_v14  ;;  %v3011_v14 = vld [vmem:[%s3313_s20 + $0xc4] sm:$0x1] }
  0xec   : > { %3015 = vmatmul.msk.f32.vlgmr.msra.gmra.mxu2 %vm223_vm1, %v3880_v10 }
  0xed   : > { %v937_v37 = vpop.f32.mrf.mxu3  ;;  %v3893_v49 = vpop.f32.mrf.mxu0  ;;  %3082 = vmatpush.msk.msra.mxu2 %vm236_vm0, %v3284_v11  ;;  %v3910_v11 = vld [vmem:[%s3313_s20 + $0x110] sm:$0xf]  ;;  %v1823_v53 = vrot.slane %v1801_v8, 1  ;;  %v2986_v8 = vld [vmem:[%s3313_s20 + $0xc8] sm:$0xf] }
  0xee   : > { %v838_v26 = vpop.f32.mrf.mxu1  ;;  %v4260_v58 = vunpack.c.l.bf16 %v3910_v11 }
  0xef   : > { %v864_v55 = vpop.f32.mrf.mxu2 }
  0xf0   : > { %v865_v62 = vadd.f32 %v864_v55, %v835_v57  ;;  %2990 = vmatmul.msk.f32.gmra.mxu0 %vm223_vm1, %v1670_v39  ;;  %3001 = vmatmul.msk.f32.gmra.mxu1 %vm223_vm1, %v4259_v48  ;;  %v3010_v48 = vld [vmem:[%s3313_s20 + $0xc0] sm:$0xf] }
  0xf2   : > { %3022 = vmatmul.msk.f32.gmra.mxu3 %vm223_vm1, %v3736_v5  ;;  %v945_v57 = vadd.f32 %v937_v37, %v865_v62  ;;  %v1824_v5 = vrot.slane %v1802_v9, 1  ;;  %v1803_v9 = vunpack.c.l.bf16 %v3010_v48  ;;  %v3012_v48 = vld [vmem:[%s3313_s20 + $0xc8] sm:$0xf] }
  0xf4   : > { %3016 = vmatmul.msk.f32.gmra.mxu2 %vm223_vm1, %v3904_v15  ;;  %v3922_v0 = vsel %vm337_vm2, %v1823_v53, %v1824_v5 }
  0xf5   : > { %v940_v6 = vpop.f32.mrf.mxu3  ;;  %v964_v39 = vpop.f32.mrf.mxu0 }
  0xf6   : > { %v997_v29 = vpop.f32.mrf.mxu1  ;;  %v976_v55 = vadd.f32 %v964_v39, %v943_v51  ;;  %v3928_v51 = vld [vmem:[%s3313_s20 + $0x118] sm:$0xf]  ;;  %v1804_v39 = vunpack.c.l.bf16 %v3011_v14 }
  0xf7   : > { %v867_v60 = vpop.f32.mrf.mxu2  ;;  %v1734_v53 = vunpack.c.l.bf16 %v3928_v51 }
  0xf8   : > { %v868_v37 = vadd.f32 %v867_v60, %v838_v26  ;;  %v1009_v62 = vadd.f32 %v997_v29, %v976_v55  ;;  %2991 = vmatmul.msk.f32.gmra.mxu0 %vm223_vm1, %v1671_v41  ;;  %3002 = vmatmul.msk.f32.gmra.mxu1 %vm223_vm1, %v4260_v58  ;;  %v3032_v29 = vld [vmem:[%s3313_s20 + $0xf0] sm:$0xf]  ;;  %v3033_v41 = vld [vmem:[%s3313_s20 + $0xf4] sm:$0x1]  ;;  %v1672_v60 = vunpack.c.l.bf16 %v2986_v8  ;;  %v1827_v20 = vrot.slane %v1804_v39, 1 }
  0xf9   : > { %v1953_v1 = vunpack.c.l.bf16 %v3032_v29  ;;  %v1954_v24 = vunpack.c.l.bf16 %v3033_v41  ;;  %v1805_v8 = vunpack.c.l.bf16 %v3012_v48 }
  0xfa   : > { %3023 = vmatmul.msk.f32.gmra.mxu3 %vm223_vm1, %v3764_v23  ;;  %v946_v26 = vadd.f32 %v940_v6, %v868_v37  ;;  %v1826_v23 = vrot.slane %v1803_v9, 1  ;;  %v3013_v6 = vld [vmem:[%s3313_s20 + $0xcc] sm:$0x1] }
  0xfb   : > { %v1973_v39 = vrot.slane %v1953_v1, 1  ;;  %v1974_v29 = vrot.slane %v1954_v24, 1 }
  0xfc   : > { %3017 = vmatmul.msk.f32.gmra.mxu2 %vm223_vm1, %v3922_v0  ;;  %v3942_v9 = vsel %vm337_vm2, %v1826_v23, %v1827_v20 }
  0xfd   : > { %v1107_v55 = vpop.f32.mrf.mxu3  ;;  %v967_v5 = vpop.f32.mrf.mxu0  ;;  %v1975_v20 = vsel %vm337_vm2, %v1973_v39, %v1974_v29 }
  0xfe   : > { %v1000_v58 = vpop.f32.mrf.mxu1  ;;  %v977_v14 = vadd.f32 %v967_v5, %v944_v61  ;;  %v1806_v61 = vunpack.c.l.bf16 %v3013_v6  ;;  %v3034_v5 = vld [vmem:[%s3313_s20 + $0xf8] sm:$0xf] }
  0xff   : > { %v1074_v37 = vpop.f32.mrf.mxu2  ;;  %v1955_v48 = vunpack.c.l.bf16 %v3034_v5 }
 0x100   : > { %v1086_v56 = vadd.f32 %v1074_v37, %v1009_v62  ;;  %v1010_v16 = vadd.f32 %v1000_v58, %v977_v14  ;;  %2992 = vmatmul.msk.f32.gmra.mxu0 %vm223_vm1, %v1672_v60  ;;  %3003 = vmatmul.msk.f32.gmra.mxu1 %vm223_vm1, %v1734_v53  ;;  %v3035_v62 = vld [vmem:[%s3313_s20 + $0xfc] sm:$0x1]  ;;  %v1829_v60 = vrot.slane %v1805_v8, 1  ;;  %v1830_v23 = vrot.slane %v1806_v61, 1  ;;  %v3036_v61 = vld [vmem:[%s3313_s20 + $0x100] sm:$0xf] }
 0x101   : > { %v1976_v8 = vrot.slane %v1955_v48, 1  ;;  %v2367_v48 = vlaneseq }
 0x102   : > { %3024 = vmatmul.msk.f32.gmra.mxu3 %vm223_vm1, %v3792_v21  ;;  %v1119_v41 = vadd.f32 %v1107_v55, %v1086_v56  ;;  %v1956_v21 = vunpack.c.l.bf16 %v3035_v62  ;;  %v3956_v55 = vsel %vm337_vm2, %v1829_v60, %v1830_v23  ;;  %v1957_v62 = vunpack.c.l.bf16 %v3036_v61 }
 0x104   : > { %3018 = vmatmul.msk.f32.gmra.mxu2 %vm223_vm1, %v3942_v9  ;;  %v1977_v39 = vrot.slane %v1956_v21, 1 }
 0x105   : > { %v1110_v58 = vpop.f32.mrf.mxu3  ;;  %v970_v14 = vpop.f32.mrf.mxu0 }
 0x106   : > { %v1003_v37 = vpop.f32.mrf.mxu1  ;;  %v978_v1 = vadd.f32 %v970_v14, %v945_v57  ;;  %v3037_v57 = vld [vmem:[%s3313_s20 + $0x104] sm:$0x1]  ;;  %v1978_v5 = vsel %vm337_vm2, %v1976_v8, %v1977_v39 }
 0x107   : > { %v1077_v24 = vpop.f32.mrf.mxu2  ;;  %v1958_v60 = vunpack.c.l.bf16 %v3037_v57  ;;  %v3983_v57 = vadd.f32 %v3815_v34, %v3752_v38  ;;  %v3040_v34 = vld [vmem:[%s3313_s20 + $0x110] sm:$0xf] }
 0x108   : > { %v1087_v6 = vadd.f32 %v1077_v24, %v1010_v16  ;;  %v1011_v56 = vadd.f32 %v1003_v37, %v978_v1  ;;  %3027 = vmatmul.msk.f32.vlgmr.msrb.gmra.mxu0 %vm223_vm1, %v1256_v33  ;;  %3043 = vmatmul.msk.f32.vlgmr.msrb.gmra.mxu1 %vm223_vm1, %v1975_v20  ;;  %v3038_v1 = vld [vmem:[%s3313_s20 + $0x108] sm:$0xf]  ;;  %v3039_v24 = vld [vmem:[%s3313_s20 + $0x10c] sm:$0x1] }
 0x109   : > { %v1980_v23 = vrot.slane %v1958_v60, 1  ;;  %v1960_v8 = vunpack.c.l.bf16 %v3039_v24  ;;  %v3061_v24 = vld [vmem:[%s3313_s20 + $0x5c] sm:$0x1] }
 0x10a   : > { %3025 = vmatmul.msk.f32.gmra.mxu3 %vm223_vm1, %v3818_v54  ;;  %v1120_v29 = vadd.f32 %v1110_v58, %v1087_v6  ;;  %v1979_v58 = vrot.slane %v1957_v62, 1 }
 0x10c   : > { %3019 = vmatmul.msk.f32.gmra.mxu2 %vm223_vm1, %v3956_v55 }
 0x10d   : > { %v1113_v16 = vpop.f32.mrf.mxu3  ;;  %v973_v43 = vpop.f32.mrf.mxu0 }
 0x10e   : > { %v1006_v33 = vpop.f32.mrf.mxu1  ;;  %v979_v14 = vadd.f32 %v973_v43, %v946_v26  ;;  %v1983_v43 = vrot.slane %v1960_v8, 1 }
 0x10f   : > { %v1080_v37 = vpop.f32.mrf.mxu2 }
 0x110   : > { %v1088_v54 = vadd.f32 %v1080_v37, %v1011_v56  ;;  %v1012_v20 = vadd.f32 %v1006_v33, %v979_v14  ;;  %3028 = vmatmul.msk.f32.gmra.mxu0 %vm223_vm1, %v1257_v18  ;;  %3044 = vmatmul.msk.f32.gmra.mxu1 %vm223_vm1, %v1978_v5  ;;  %v1981_v18 = vsel %vm337_vm2, %v1979_v58, %v1980_v23  ;;  %v3979_v56 = vshrl.u32 %v2367_v48, 7  ;;  %v3041_v5 = vld [vmem:[%s3313_s20 + $0x114] sm:$0x1] }
 0x111   : > { %v1961_v14 = vunpack.c.l.bf16 %v3040_v34  ;;  %v1962_v37 = vunpack.c.l.bf16 %v3041_v5  ;;  %v809_v58 = vadd.f32 %v3842_v30, %v3782_v52  ;;  %v4268_v34 = vunpack.c.l.bf16 %v3714_v50  ;;  %v3062_v5 = vld [vmem:[%s3313_s20 + $0x60] sm:$0xf]  ;;  %v3088_v50 = vld [vmem:[%s3313_s20 + $0xf8] sm:$0xf] }
 0x112   : > { %3055 = vmatmul.msk.f32.vlgmr.msrb.gmra.mxu3 %vm223_vm1, %v3743_v28  ;;  %v3971_v21 = vadd.f32 %v1113_v16, %v1088_v54  ;;  %v1959_v28 = vunpack.c.l.bf16 %v3038_v1  ;;  %vm2433_vm4 = vcmp.lt.s32.totalorder %v3979_v56, 1 }
 0x113   : > { %v1985_v52 = vrot.slane %v1961_v14, 1  ;;  %v1986_v30 = vrot.slane %v1962_v37, 1  ;;  %v2121_v14 = vunpack.c.l.bf16 %v3062_v5 }
 0x114   : > { %3049 = vmatmul.msk.f32.vlgmr.msrb.gmra.mxu2 %vm223_vm1, %v1514_v36  ;;  %v2369_v36 = vadd.s32 8, %v3979_v56 }
 0x115   : > { %v1116_v26 = vpop.f32.mrf.mxu3  ;;  %v1140_v46 = vpop.f32.mrf.mxu0  ;;  %v1987_v8 = vsel %vm337_vm2, %v1985_v52, %v1986_v30  ;;  %v2285_v30 = vunpack.c.l.bf16 %v3088_v50 }
 0x116   : > { %v1217_v6 = vpop.f32.mrf.mxu1  ;;  %v1152_v39 = vadd.f32 %v1140_v46, %v1119_v41  ;;  %v1982_v41 = vrot.slane %v1959_v28, 1  ;;  %v2388_v60 = vand.u32 7, %v2369_v36 }
 0x117   : > { %v1083_v61 = vpop.f32.mrf.mxu2 }
 0x118   : > { %v1089_v4 = vadd.f32 %v1083_v61, %v1012_v20  ;;  %v3985_v16 = vadd.f32 %v1217_v6, %v1152_v39  ;;  %3029 = vmatmul.msk.f32.gmra.mxu0 %vm223_vm1, %v1258_v47  ;;  %3045 = vmatmul.msk.f32.gmra.mxu1 %vm223_vm1, %v1981_v18  ;;  %vm4013_vm3 = vcmp.eq.s32.totalorder %v2388_v60, 0  ;;  %v2120_v61 = vunpack.c.l.bf16 %v3061_v24 }
 0x119   : > { %v2371_v60 = vadd.s32 24, %v3979_v56 }
 0x11a   : > { %3056 = vmatmul.msk.f32.gmra.mxu3 %vm223_vm1, %v3773_v35  ;;  %v3994_v33 = vadd.f32 %v1116_v26, %v1089_v4  ;;  %v2373_v38 = vmax.f32 %v3983_v57, %v3985_v16  ;;  %v1984_v35 = vsel %vm337_vm2, %v1982_v41, %v1983_v43  ;;  %v3067_v57 = vld [vmem:[%s3313_s20 + $0x74] sm:$0x1] }
 0x11b   : > { %v2402_v24 = vand.u32 7, %v2371_v60 }
 0x11c   : > { %3050 = vmatmul.msk.f32.gmra.mxu2 %vm223_vm1, %v1515_v7  ;;  %v2370_v7 = vadd.s32 16, %v3979_v56 }
 0x11d   : > { %v1340_v19 = vpop.f32.mrf.mxu3  ;;  %v1143_v47 = vpop.f32.mrf.mxu0  ;;  %vm4083_vm7 = vcmp.eq.s32.totalorder %v2402_v24, 0 }
 0x11e   : > { %v1220_v62 = vpop.f32.mrf.mxu1  ;;  %v1153_v54 = vadd.f32 %v1143_v47, %v1120_v29  ;;  %v2429_v29 = vrot.slane %v3985_v16, 7  ;;  %v3092_v16 = vld [vmem:[%s3313_s20 + $0x108] sm:$0xf] }
 0x11f   : > { %v1293_v20 = vpop.f32.mrf.mxu2 }
 0x120   : > { %v4006_v23 = vadd.f32 %v1340_v19, %v1293_v20  ;;  %v1230_v27 = vadd.f32 %v1220_v62, %v1153_v54  ;;  %3030 = vmatmul.msk.f32.gmra.mxu0 %vm223_vm1, %v1259_v22  ;;  %3046 = vmatmul.msk.f32.gmra.mxu1 %vm223_vm1, %v1984_v35  ;;  %v3060_v22 = vld [vmem:[%s3313_s20 + $0x58] sm:$0xf]  ;;  %v3063_v19 = vld [vmem:[%s3313_s20 + $0x64] sm:$0x1]  ;;  %v3089_v35 = vld [vmem:[%s3313_s20 + $0xfc] sm:$0x1]  ;;  %v4271_v20 = vunpack.c.l.bf16 %v3821_v42 }
 0x121   : > { %v2119_v39 = vunpack.c.l.bf16 %v3060_v22  ;;  %v2122_v37 = vunpack.c.l.bf16 %v3063_v19  ;;  %v2381_v42 = vand.u32 7, %v3979_v56  ;;  %v4277_v19 = vunpack.c.l.bf16 %v3845_v2 }
 0x122   : > { %3057 = vmatmul.msk.f32.gmra.mxu3 %vm223_vm1, %v3799_v32  ;;  %v2374_v13 = vmax.f32 %v809_v58, %v1230_v27  ;;  %v2430_v1 = vrot.slane %v1230_v27, 7  ;;  %v2395_v32 = vand.u32 7, %v2370_v7 }
 0x123   : > { %vm4079_vm6 = vcmp.eq.s32.totalorder %v2381_v42, 0 }
 0x124   : > { %v2436_v26 = vsel %vm2433_vm4, %v2429_v29, %v2430_v1  ;;  %3051 = vmatmul.msk.f32.gmra.mxu2 %vm223_vm1, %v1516_v44  ;;  %v810_v44 = vadd.f32 %v3871_v45, %v3808_v59  ;;  %vm4046_vm5 = vcmp.eq.s32.totalorder %v2395_v32, 0  ;;  %v2140_v59 = vrot.slane %v2120_v61, 1  ;;  %v3064_v61 = vld [vmem:[%s3313_s20 + $0x68] sm:$0xf] }
 0x125   : > { %v1343_v46 = vpop.f32.mrf.mxu3  ;;  %v2447_v6 = vsel %vm4013_vm3, -inf, %v2436_v26  ;;  %v1146_v18 = vpop.f32.mrf.mxu0  ;;  %v2143_v32 = vrot.slane %v2122_v37, 1 }
 0x126   : > { %v1223_v28 = vpop.f32.mrf.mxu1  ;;  %v4033_v4 = vmax.f32 %v2374_v13, %v2447_v6  ;;  %v1154_v36 = vadd.f32 %v1146_v18, %v3971_v21  ;;  %v2139_v21 = vrot.slane %v2119_v39, 1  ;;  %v2286_v13 = vunpack.c.l.bf16 %v3089_v35 }
 0x127   : > { %v1296_v17 = vpop.f32.mrf.mxu2  ;;  %v811_v6 = vadd.f32 %v3893_v49, %v3836_v63 }
 0x128   : > { %v4038_v41 = vadd.f32 %v1343_v46, %v1296_v17  ;;  %v1231_v43 = vadd.f32 %v1223_v28, %v1154_v36  ;;  %3031 = vmatmul.msk.f32.gmra.mxu0 %vm223_vm1, %v4268_v34  ;;  %3047 = vmatmul.msk.f32.gmra.mxu1 %vm223_vm1, %v1987_v8  ;;  %v2141_v52 = vsel %vm337_vm2, %v2139_v21, %v2140_v59  ;;  %v2142_v46 = vrot.slane %v2121_v14, 1  ;;  %v3065_v36 = vld [vmem:[%s3313_s20 + $0x6c] sm:$0x1]  ;;  %v3091_v34 = vld [vmem:[%s3313_s20 + $0x104] sm:$0x1] }
 0x129   : > { %v4272_v8 = vunpack.c.l.bf16 %v3834_v12  ;;  %v2306_v39 = vrot.slane %v2286_v13, 1  ;;  %v3090_v12 = vld [vmem:[%s3313_s20 + $0x100] sm:$0xf]  ;;  %v2123_v59 = vunpack.c.l.bf16 %v3064_v61 }
 0x12a   : > { %3058 = vmatmul.msk.f32.gmra.mxu3 %vm223_vm1, %v3824_v25  ;;  %v2375_v45 = vmax.f32 %v810_v44, %v1231_v43  ;;  %v2431_v62 = vrot.slane %v1231_v43, 7  ;;  %v2144_v43 = vsel %vm337_vm2, %v2142_v46, %v2143_v32  ;;  %v2287_v37 = vunpack.c.l.bf16 %v3090_v12 }
 0x12b   : > { %v2126_v32 = vunpack.c.l.bf16 %v3067_v57 }
 0x12c   : > { %v2435_v54 = vsel %vm2433_vm4, %v2430_v1, %v2431_v62  ;;  %3052 = vmatmul.msk.f32.gmra.mxu2 %vm223_vm1, %v4271_v20 }
 0x12d   : > { %v1346_v58 = vpop.f32.mrf.mxu3  ;;  %v2448_v25 = vsel %vm4046_vm5, -inf, %v2435_v54  ;;  %v1149_v27 = vpop.f32.mrf.mxu0  ;;  %v2288_v54 = vunpack.c.l.bf16 %v3091_v34  ;;  %v3069_v34 = vld [vmem:[%s3313_s20 + $0x7c] sm:$0x1] }
 0x12e   : > { %v1226_v7 = vpop.f32.mrf.mxu1  ;;  %v4063_v22 = vmax.f32 %v2375_v45, %v2448_v25  ;;  %v1155_v1 = vadd.f32 %v1149_v27, %v3994_v33  ;;  %v2305_v33 = vrot.slane %v2285_v30, 1  ;;  %v2124_v45 = vunpack.c.l.bf16 %v3065_v36 }
 0x12f   : > { %v1299_v26 = vpop.f32.mrf.mxu2  ;;  %v2308_v30 = vrot.slane %v2287_v37, 1  ;;  %v2309_v13 = vrot.slane %v2288_v54, 1  ;;  %v4279_v36 = vunpack.c.l.bf16 %v3886_v31 }
 0x130   : > { %v4069_v18 = vadd.f32 %v1346_v58, %v1299_v26  ;;  %v1232_v28 = vadd.f32 %v1226_v7, %v1155_v1  ;;  %3071 = vmatmul.msk.f32.vlgmr.msra.gmra.mxu0 %vm223_vm1, %v2141_v52  ;;  %3077 = vmatmul.msk.f32.vlgmr.msra.gmra.mxu1 %vm223_vm1, %v4272_v8  ;;  %v2307_v14 = vsel %vm337_vm2, %v2305_v33, %v2306_v39  ;;  %v4278_v7 = vunpack.c.l.bf16 %v3861_v3  ;;  %v3066_v1 = vld [vmem:[%s3313_s20 + $0x70] sm:$0xf] }
 0x131   : > { %v2146_v52 = vrot.slane %v2124_v45, 1  ;;  %v2125_v46 = vunpack.c.l.bf16 %v3066_v1  ;;  %v2289_v8 = vunpack.c.l.bf16 %v3092_v16 }
 0x132   : > { %3059 = vmatmul.msk.f32.gmra.mxu3 %vm223_vm1, %v3848_v40  ;;  %v2376_v17 = vmax.f32 %v811_v6, %v1232_v28  ;;  %v2432_v44 = vrot.slane %v1232_v28, 7  ;;  %v2310_v28 = vsel %vm337_vm2, %v2308_v30, %v2309_v13  ;;  %v3096_v30 = vld [vmem:[%s3313_s20 + $0x118] sm:$0xf]  ;;  %v3097_v13 = vld [vmem:[%s3313_s20 + $0x11c] sm:$0x1] }
 0x134   : > { %v2434_v40 = vsel %vm2433_vm4, %v2431_v62, %v2432_v44  ;;  %v2437_v5 = vsel %vm2433_vm4, %v2432_v44, %v2429_v29  ;;  %3053 = vmatmul.msk.f32.gmra.mxu2 %vm223_vm1, %v4277_v19  ;;  %v2149_v44 = vrot.slane %v2126_v32, 1 }
 0x135   : > { %v1349_v21 = vpop.f32.mrf.mxu3  ;;  %v2446_v60 = vsel %vm4079_vm6, -inf, %v2437_v5  ;;  %v2449_v50 = vsel %vm4083_vm7, -inf, %v2434_v40  ;;  %v1427_v35 = vpop.f32.mrf.mxu0  ;;  %v3094_v40 = vld [vmem:[%s3313_s20 + $0x110] sm:$0xf]  ;;  %v3095_v5 = vld [vmem:[%s3313_s20 + $0x114] sm:$0x1] }
 0x136   : > { %v1489_v62 = vpop.f32.mrf.mxu1  ;;  %v4104_v29 = vmax.f32 %v2376_v17, %v2449_v50  ;;  %v1442_v2 = vadd.f32 %v1427_v35, %v4006_v23  ;;  %v4110_v20 = vmax.f32 %v2373_v38, %v2446_v60  ;;  %v2145_v23 = vrot.slane %v2123_v59, 1  ;;  %v3093_v38 = vld [vmem:[%s3313_s20 + $0x10c] sm:$0x1] }
 0x137   : > { %v1302_v58 = vpop.f32.mrf.mxu2  ;;  %v2290_v33 = vunpack.c.l.bf16 %v3093_v38  ;;  %v2148_v17 = vrot.slane %v2125_v46, 1  ;;  %v2128_v60 = vunpack.c.l.bf16 %v3069_v34 }
 0x138   : > { %v4112_v25 = vadd.f32 %v1349_v21, %v1302_v58  ;;  %v1504_v27 = vadd.f32 %v1489_v62, %v1442_v2  ;;  %3072 = vmatmul.msk.f32.gmra.mxu0 %vm223_vm1, %v2144_v43  ;;  %3078 = vmatmul.msk.f32.gmra.mxu1 %vm223_vm1, %v4278_v7  ;;  %v2147_v3 = vsel %vm337_vm2, %v2145_v23, %v2146_v52  ;;  %v3068_v43 = vld [vmem:[%s3313_s20 + $0x78] sm:$0xf]  ;;  %v2291_v62 = vunpack.c.l.bf16 %v3094_v40 }
 0x139   : > { %v2312_v12 = vrot.slane %v2290_v33, 1  ;;  %v2150_v31 = vsel %vm337_vm2, %v2148_v17, %v2149_v44  ;;  %v2127_v45 = vunpack.c.l.bf16 %v3068_v43  ;;  %v2152_v7 = vrot.slane %v2128_v60, 1 }
 0x13a   : > { %3099 = vmatmul.msk.f32.vlgmr.msra.gmra.mxu3 %vm223_vm1, %v2307_v14  ;;  %v2292_v14 = vunpack.c.l.bf16 %v3095_v5 }
 0x13b   : > { %v2151_v58 = vrot.slane %v2127_v45, 1 }
 0x13c   : > { %3083 = vmatmul.msk.f32.vlgmr.msra.gmra.mxu2 %vm223_vm1, %v3880_v10  ;;  %v2315_v52 = vrot.slane %v2292_v14, 1 }
 0x13d   : > { %v1352_v42 = vpop.f32.mrf.mxu3  ;;  %v1430_v24 = vpop.f32.mrf.mxu0  ;;  %v2153_v16 = vsel %vm337_vm2, %v2151_v58, %v2152_v7 }
 0x13e   : > { %v1492_v26 = vpop.f32.mrf.mxu1  ;;  %v1443_v6 = vadd.f32 %v1430_v24, %v4038_v41  ;;  %v2311_v41 = vrot.slane %v2289_v8, 1  ;;  %v2294_v24 = vunpack.c.l.bf16 %v3097_v13 }
 0x13f   : > { %v1305_v39 = vpop.f32.mrf.mxu2 }
 0x140   : > { %v1353_v61 = vadd.f32 %v1352_v42, %v1305_v39  ;;  %v1505_v10 = vadd.f32 %v1492_v26, %v1443_v6  ;;  %3073 = vmatmul.msk.f32.gmra.mxu0 %vm223_vm1, %v2147_v3  ;;  %3079 = vmatmul.msk.f32.gmra.mxu1 %vm223_vm1, %v4279_v36  ;;  %v2313_v35 = vsel %vm337_vm2, %v2311_v41, %v2312_v12  ;;  %v2293_v42 = vunpack.c.l.bf16 %v3096_v30 }
 0x141   : > { %v2318_v6 = vrot.slane %v2294_v24, 1 }
 0x142   : > { %3100 = vmatmul.msk.f32.gmra.mxu3 %vm223_vm1, %v2310_v28  ;;  %v2317_v32 = vrot.slane %v2293_v42, 1 }
 0x144   : > { %3084 = vmatmul.msk.f32.gmra.mxu2 %vm223_vm1, %v3904_v15  ;;  %v4280_v15 = vunpack.c.l.bf16 %v3910_v11  ;;  %v2319_v39 = vsel %vm337_vm2, %v2317_v32, %v2318_v6 }
 0x145   : > { %v1643_v19 = vpop.f32.mrf.mxu3  ;;  %v1433_v21 = vpop.f32.mrf.mxu0 }
 0x146   : > { %v1495_v59 = vpop.f32.mrf.mxu1  ;;  %v1444_v50 = vadd.f32 %v1433_v21, %v4069_v18  ;;  %v2314_v18 = vrot.slane %v2291_v62, 1 }
 0x147   : > { %v1551_v37 = vpop.f32.mrf.mxu2 }
 0x148   : > { %v1566_v2 = vadd.f32 %v1551_v37, %v1504_v27  ;;  %v1506_v54 = vadd.f32 %v1495_v59, %v1444_v50  ;;  %3074 = vmatmul.msk.f32.gmra.mxu0 %vm223_vm1, %v2150_v31  ;;  %3080 = vmatmul.msk.f32.gmra.mxu1 %vm223_vm1, %v4280_v15  ;;  %v2316_v38 = vsel %vm337_vm2, %v2314_v18, %v2315_v52 }
 0x14a   : > { %3101 = vmatmul.msk.f32.gmra.mxu3 %vm223_vm1, %v2313_v35  ;;  %v1658_v23 = vadd.f32 %v1643_v19, %v1566_v2 }
 0x14c   : > { %3085 = vmatmul.msk.f32.gmra.mxu2 %vm223_vm1, %v3922_v0 }
 0x14d   : > { %v1646_v27 = vpop.f32.mrf.mxu3  ;;  %v1436_v1 = vpop.f32.mrf.mxu0 }
 0x14e   : > { %v1498_v57 = vpop.f32.mrf.mxu1  ;;  %v1445_v11 = vadd.f32 %v1436_v1, %v4112_v25 }
 0x14f   : > { %v1554_v26 = vpop.f32.mrf.mxu2 }
 0x150   : > { %v1567_v3 = vadd.f32 %v1554_v26, %v1505_v10  ;;  %v1507_v46 = vadd.f32 %v1498_v57, %v1445_v11  ;;  %3075 = vmatmul.msk.f32.gmra.mxu0 %vm223_vm1, %v2153_v16  ;;  %3081 = vmatmul.msk.f32.gmra.mxu1 %vm223_vm1, %v1734_v53 }
 0x152   : > { %3102 = vmatmul.msk.f32.gmra.mxu3 %vm223_vm1, %v2316_v38  ;;  %v1659_v0 = vadd.f32 %v1646_v27, %v1567_v3 }
 0x154   : > { %3086 = vmatmul.msk.f32.gmra.mxu2 %vm223_vm1, %v3942_v9 }
 0x155   : > { %v1649_v25 = vpop.f32.mrf.mxu3  ;;  %v1439_v28 = vpop.f32.mrf.mxu0 }
 0x156   : > { %v1501_v8 = vpop.f32.mrf.mxu1  ;;  %v1446_v33 = vadd.f32 %v1439_v28, %v1353_v61 }
 0x157   : > { %v1557_v10 = vpop.f32.mrf.mxu2 }
 0x158   : > { %v1568_v36 = vadd.f32 %v1557_v10, %v1506_v54  ;;  %v1508_v17 = vadd.f32 %v1501_v8, %v1446_v33 }
 0x15a   : > { %3103 = vmatmul.msk.f32.gmra.mxu3 %vm223_vm1, %v2319_v39  ;;  %v1660_v51 = vadd.f32 %v1649_v25, %v1568_v36 }
 0x15c   : > { %3087 = vmatmul.msk.f32.gmra.mxu2 %vm223_vm1, %v3956_v55 }
 0x15d   : > { %v1652_v53 = vpop.f32.mrf.mxu3  ;;  %v1705_v44 = vpop.f32.mrf.mxu0 }
 0x15e   : > { %v1767_v41 = vpop.f32.mrf.mxu1  ;;  %v1720_v12 = vadd.f32 %v1705_v44, %v1658_v23 }
 0x15f   : > { %v1560_v9 = vpop.f32.mrf.mxu2 }
 0x160   : > { %v1569_v43 = vadd.f32 %v1560_v9, %v1507_v46  ;;  %v1782_v34 = vadd.f32 %v1767_v41, %v1720_v12 }
 0x162   : > { %v1661_v40 = vadd.f32 %v1652_v53, %v1569_v43 }
 0x165   : > { %v1655_v61 = vpop.f32.mrf.mxu3  ;;  %v1708_v5 = vpop.f32.mrf.mxu0 }
 0x166   : > { %v1770_v19 = vpop.f32.mrf.mxu1  ;;  %v1721_v21 = vadd.f32 %v1708_v5, %v1659_v0 }
 0x167   : > { %v1563_v59 = vpop.f32.mrf.mxu2 }
 0x168   : > { %v1570_v31 = vadd.f32 %v1563_v59, %v1508_v17  ;;  %v1783_v45 = vadd.f32 %v1770_v19, %v1721_v21 }
 0x16a   : > { %v1662_v60 = vadd.f32 %v1655_v61, %v1570_v31 }
 0x16d   : > { %v1896_v50 = vpop.f32.mrf.mxu3  ;;  %v1711_v35 = vpop.f32.mrf.mxu0 }
 0x16e   : > { %v1773_v62 = vpop.f32.mrf.mxu1  ;;  %v1722_v55 = vadd.f32 %v1711_v35, %v1660_v51 }
 0x16f   : > { %v1859_v14 = vpop.f32.mrf.mxu2 }
 0x170   : > { %v4165_v37 = vadd.f32 %v1859_v14, %v1782_v34  ;;  %v1784_v2 = vadd.f32 %v1773_v62, %v1722_v55 }
 0x175   : > { %v1899_v54 = vpop.f32.mrf.mxu3  ;;  %v1714_v15 = vpop.f32.mrf.mxu0 }
 0x176   : > { %v1776_v58 = vpop.f32.mrf.mxu1  ;;  %v1723_v7 = vadd.f32 %v1714_v15, %v1661_v40 }
 0x177   : > { %v1862_v23 = vpop.f32.mrf.mxu2 }
 0x178   : > { %v4167_v18 = vadd.f32 %v1862_v23, %v1783_v45  ;;  %v1785_v52 = vadd.f32 %v1776_v58, %v1723_v7 }
 0x17d   : > { %v1902_v30 = vpop.f32.mrf.mxu3  ;;  %v1717_v13 = vpop.f32.mrf.mxu0 }
 0x17e   : > { %v1779_v27 = vpop.f32.mrf.mxu1  ;;  %v1724_v1 = vadd.f32 %v1717_v13, %v1662_v60 }
 0x17f   : > { %v1865_v57 = vpop.f32.mrf.mxu2 }
 0x180   : > { %v4169_v16 = vadd.f32 %v1865_v57, %v1784_v2  ;;  %v1786_v11 = vadd.f32 %v1779_v27, %v1724_v1 }
 0x185   : > { %v1905_v38 = vpop.f32.mrf.mxu3  ;;  %v1928_v42 = vpop.f32.mrf.mxu0 }
 0x186   : > { %v2015_v24 = vpop.f32.mrf.mxu1  ;;  %v1929_v43 = vadd.f32 %v1928_v42, %v1896_v50 }
 0x187   : > { %v1868_v26 = vpop.f32.mrf.mxu2 }
 0x188   : > { %v4171_v3 = vadd.f32 %v1868_v26, %v1785_v52  ;;  %v2030_v61 = vadd.f32 %v2015_v24, %v1929_v43 }
 0x18d   : > { %v1908_v46 = vpop.f32.mrf.mxu3  ;;  %v1931_v0 = vpop.f32.mrf.mxu0 }
 0x18e   : > { %v2018_v32 = vpop.f32.mrf.mxu1  ;;  %v1932_v59 = vadd.f32 %v1931_v0, %v1899_v54 }
 0x18f   : > { %v1871_v6 = vpop.f32.mrf.mxu2 }
 0x190   : > { %v4173_v25 = vadd.f32 %v1871_v6, %v1786_v11  ;;  %v2031_v35 = vadd.f32 %v2018_v32, %v1932_v59 }
 0x195   : > { %v2089_v28 = vpop.f32.mrf.mxu3  ;;  %v1934_v8 = vpop.f32.mrf.mxu0 }
 0x196   : > { %v2021_v33 = vpop.f32.mrf.mxu1  ;;  %v1935_v15 = vadd.f32 %v1934_v8, %v1902_v30 }
 0x197   : > { %v2052_v39 = vpop.f32.mrf.mxu2 }
 0x198   : > { %v2067_v19 = vadd.f32 %v2052_v39, %v2030_v61  ;;  %v2032_v52 = vadd.f32 %v2021_v33, %v1935_v15 }
 0x19a   : > { %v2104_v45 = vadd.f32 %v2089_v28, %v2067_v19 }
 0x19d   : > { %v2092_v10 = vpop.f32.mrf.mxu3  ;;  %v1937_v36 = vpop.f32.mrf.mxu0 }
 0x19e   : > { %v2024_v51 = vpop.f32.mrf.mxu1  ;;  %v1938_v42 = vadd.f32 %v1937_v36, %v1905_v38 }
 0x19f   : > { %v2055_v17 = vpop.f32.mrf.mxu2 }
 0x1a0   : > { %v2068_v55 = vadd.f32 %v2055_v17, %v2031_v35  ;;  %v2033_v6 = vadd.f32 %v2024_v51, %v1938_v42 }
 0x1a2   : > { %v2105_v50 = vadd.f32 %v2092_v10, %v2068_v55 }
 0x1a5   : > { %v2095_v53 = vpop.f32.mrf.mxu3  ;;  %v1940_v44 = vpop.f32.mrf.mxu0 }
 0x1a6   : > { %v2027_v12 = vpop.f32.mrf.mxu1 }
 0x1a7   : > { %v2058_v41 = vpop.f32.mrf.mxu2 }
 0x1a8   : > { %v2069_v57 = vadd.f32 %v2058_v41, %v2032_v52 }
 0x1aa   : > { %v2106_v30 = vadd.f32 %v2095_v53, %v2069_v57 }
 0x1ad   : > { %v2098_v9 = vpop.f32.mrf.mxu3  ;;  %v2181_v34 = vpop.f32.mrf.mxu0 }
 0x1ae   : > { %v2218_v5 = vpop.f32.mrf.mxu1  ;;  %v2196_v62 = vadd.f32 %v2181_v34, %v2104_v45  ;;  %v1941_v34 = vadd.f32 %v1940_v44, %v1908_v46 }
 0x1af   : > { %v2061_v40 = vpop.f32.mrf.mxu2 }
 0x1b0   : > { %v2233_v58 = vadd.f32 %v2218_v5, %v2196_v62  ;;  %v2070_v33 = vadd.f32 %v2061_v40, %v2033_v6  ;;  %v2034_v19 = vadd.f32 %v2027_v12, %v1941_v34 }
 0x1b2   : > { %v2107_v40 = vadd.f32 %v2098_v9, %v2070_v33 }
 0x1b5   : > { %v4175_v21 = vpop.f32.mrf.mxu3  ;;  %v2184_v60 = vpop.f32.mrf.mxu0 }
 0x1b6   : > { %v2221_v2 = vpop.f32.mrf.mxu1  ;;  %v2197_v13 = vadd.f32 %v2184_v60, %v2105_v50 }
 0x1b7   : > { %v2064_v31 = vpop.f32.mrf.mxu2 }
 0x1b8   : > { %v2234_v24 = vadd.f32 %v2221_v2, %v2197_v13  ;;  %v2071_v45 = vadd.f32 %v2064_v31, %v2034_v19 }
 0x1bd   : > { %v2347_v14 = vpop.f32.mrf.mxu3  ;;  %v2187_v1 = vpop.f32.mrf.mxu0 }
 0x1be   : > { %v2224_v26 = vpop.f32.mrf.mxu1  ;;  %v2198_v28 = vadd.f32 %v2187_v1, %v2106_v30 }
 0x1bf   : > { %v2255_v7 = vpop.f32.mrf.mxu2 }
 0x1c0   : > { %v2270_v23 = vadd.f32 %v2255_v7, %v2233_v58  ;;  %v2235_v38 = vadd.f32 %v2224_v26, %v2198_v28  ;;  %v3159_v58 = vld [vmem:[%s4257_s2] ss:$0 sm:$0xff] }
 0x1c2   : > { %v4177_v27 = vadd.f32 %v2347_v14, %v2270_v23  ;;  %v2372_v23 = vadd.s32 32, %v3979_v56 }
 0x1c4   : > { %v2454_v54 = vmax.f32 %v4165_v37, %v4177_v27  ;;  %v2472_v39 = vrot.slane %v4177_v27, 7 }
 0x1c5   : > { %v2350_v11 = vpop.f32.mrf.mxu3  ;;  %v2190_v43 = vpop.f32.mrf.mxu0 }
 0x1c6   : > { %v2227_v5 = vpop.f32.mrf.mxu1  ;;  %v2199_v59 = vadd.f32 %v2190_v43, %v2107_v40 }
 0x1c7   : > { %v2258_v0 = vpop.f32.mrf.mxu2 }
 0x1c8   : > { %v2271_v32 = vadd.f32 %v2258_v0, %v2234_v24  ;;  %v2236_v62 = vadd.f32 %v2227_v5, %v2199_v59 }
 0x1ca   : > { %v2363_v8 = vadd.f32 %v2350_v11, %v2271_v32 }
 0x1cc   : > { %v2455_v10 = vmax.f32 %v4167_v18, %v2363_v8  ;;  %v2473_v17 = vrot.slane %v2363_v8, 7  ;;  %v2548_v8 = vstv %s2547_s12 }
 0x1cd   : > { %v2353_v41 = vpop.f32.mrf.mxu3  ;;  %v2193_v55 = vpop.f32.mrf.mxu0  ;;  %vm2549_vm10 = vcmp.eq.s32.totalorder %v2548_v8, 1 }
 0x1ce   : > { %v2480_v36 = vsel %vm2433_vm4, %v2472_v39, %v2473_v17  ;;  %v2230_v50 = vpop.f32.mrf.mxu1 }
 0x1cf   : > { %v2485_v51 = vsel %vm4013_vm3, -inf, %v2480_v36  ;;  %v2261_v53 = vpop.f32.mrf.mxu2 }
 0x1d0   : > { %v4190_v61 = vmax.f32 %v2455_v10, %v2485_v51  ;;  %v2272_v18 = vadd.f32 %v2261_v53, %v2235_v38 }
 0x1d2   : > { %v2566_v46 = vmax.f32 %v4110_v20, %v4190_v61  ;;  %v2364_v44 = vadd.f32 %v2353_v41, %v2272_v18  ;;  %v2108_v20 = vadd.f32 %v4175_v21, %v2071_v45 }
 0x1d4   : > { %v2456_v60 = vmax.f32 %v4169_v16, %v2364_v44  ;;  %v2474_v48 = vrot.slane %v2364_v44, 7  ;;  %v2200_v15 = vadd.f32 %v2193_v55, %v2108_v20 }
 0x1d5   : > { %v2356_v35 = vpop.f32.mrf.mxu3 }
 0x1d6   : > { %v2479_v9 = vsel %vm2433_vm4, %v2473_v17, %v2474_v48 }
 0x1d7   : > { %v2486_v12 = vsel %vm4046_vm5, -inf, %v2479_v9  ;;  %v2264_v14 = vpop.f32.mrf.mxu2 }
 0x1d8   : > { %v2491_v2 = vmax.f32 %v2456_v60, %v2486_v12  ;;  %v2273_v31 = vadd.f32 %v2264_v14, %v2236_v62 }
 0x1da   : > { %v2567_v16 = vmax.f32 %v4033_v4, %v2491_v2  ;;  %v2365_v7 = vadd.f32 %v2356_v35, %v2273_v31  ;;  %v2237_v4 = vadd.f32 %v2230_v50, %v2200_v15 }
 0x1dc   : > { %v2571_v47 = vmax.f32 %v2567_v16, %v4190_v61  ;;  %v2457_v52 = vmax.f32 %v4171_v3, %v2365_v7  ;;  %v2475_v13 = vrot.slane %v2365_v7, 7  ;;  %v2463_v3 = vand.u32 7, %v2372_v23 }
 0x1dd   : > { %v2359_v42 = vpop.f32.mrf.mxu3 }
 0x1de   : > { %v2579_v21 = vadd.f32 %v3159_v58, %v2571_v47  ;;  %v2478_v1 = vsel %vm2433_vm4, %v2474_v48, %v2475_v13  ;;  %vm2471_vm9 = vcmp.eq.s32.totalorder %v2463_v3, 0 }
 0x1df   : > { %v2487_v57 = vsel %vm4083_vm7, -inf, %v2478_v1  ;;  %v2267_v11 = vpop.f32.mrf.mxu2 }
 0x1e0   : > { %2584 = vst.msk [vmem:[%s4212_s30 + $0x8] sm:$0xff] %vm2582_vm8, %v2579_v21  ;;  %v2492_v24 = vmax.f32 %v2457_v52, %v2487_v57  ;;  %v2274_v26 = vadd.f32 %v2267_v11, %v2237_v4 }
 0x1e2   : > { %v2568_v0 = vmax.f32 %v4063_v22, %v2492_v24  ;;  %v2366_v30 = vadd.f32 %v2359_v42, %v2274_v26 }
 0x1e4   : > { %v2572_v32 = vmax.f32 %v2568_v0, %v2491_v2  ;;  %v2458_v6 = vmax.f32 %v4173_v25, %v2366_v30  ;;  %v2476_v28 = vrot.slane %v2366_v30, 7 }
 0x1e6   : > { %v2580_v49 = vadd.f32 %v3159_v58, %v2572_v32  ;;  %v2477_v33 = vsel %vm2433_vm4, %v2475_v13, %v2476_v28  ;;  %v2481_v10 = vsel %vm2433_vm4, %v2476_v28, %v2472_v39 }
 0x1e7   : > { %v2484_v22 = vsel %vm4079_vm6, -inf, %v2481_v10  ;;  %v2488_v17 = vsel %vm2471_vm9, -inf, %v2477_v33 }
 0x1e8   : > { %2585 = vst.msk [vmem:[%s4212_s30 + $0x10] sm:$0xff] %vm2582_vm8, %v2580_v49  ;;  %v2489_v25 = vmax.f32 %v2454_v54, %v2484_v22  ;;  %v2493_v41 = vmax.f32 %v2458_v6, %v2488_v17 }
 0x1ea   : > { %v2562_v43 = vsel %vm2549_vm10, -inf, %v2489_v25  ;;  %v2569_v34 = vmax.f32 %v4104_v29, %v2493_v41 }
 0x1eb   : > { %v2570_v38 = vmax.f32 %v2566_v46, %v2562_v43 }
 0x1ec   : > { %v2573_v36 = vmax.f32 %v2569_v34, %v2492_v24 }
 0x1ed   : > { %v2578_v51 = vadd.f32 %v3159_v58, %v2570_v38 }
 0x1ee   : > { %v2581_v56 = vadd.f32 %v3159_v58, %v2573_v36 }
 0x1ef   : > { %2583 = vst.msk [vmem:[%s4212_s30] sm:$0xff] %vm2582_vm8, %v2578_v51 }
 0x1f0   : > { %2586 = vst.msk [vmem:[%s4212_s30 + $0x18] sm:$0xff] %vm2582_vm8, %v2581_v56 }
 0x1f1 PF: > { %s13_s16 = sadd.s32 1, %s3198_s16   ;;  %s4281_s12 = smov %s3190_s14 }
 0x1f2   : > { %p10_p8 = scmp.ge.s32.totalorder %s13_s16, 6   ;;  %s4282_s13 = smov %s3194_s15 }
 0x1f3   : > { %s4283_s14 = smov %s4286_s17  ;;  %s4284_s15 = smov %s4290_s18 }
 0x1f4   :  { %12 = sbr.rel (!%p10_p8) target bundleno = 3 (0x3), region = 78 }

</bundles_post_ra>
